<compile_context>
chip_gen: v6e
topology: v6e:2x2x1
jax: 0.10.0
libtpu: 0.0.40
codegen_flags: <defaults>
</compile_context>

<pallas_src>
import functools

import jax
import jax.numpy as jnp
from jax.experimental import pallas as pl
from jax.experimental.pallas import tpu as pltpu

# ----------------------------- config ---------------------------------------
VOCAB = 64
SEQ = 8
T_HID = 32          # text hidden size
I_HID = 32          # image hidden size
N_HEADS = 2
HEAD_DIM = 16
FFN = 64
N_LAYERS = 2
CHANNELS = 3
IMG = 16
PATCH = 8
PROJ_DIM = 16
PROJ_PAD = 128      # lane-dense padded projection width (sliced back to PROJ_DIM)

LAYER_KEYS = ("ln1_g", "ln1_b", "wqkv", "bqkv", "wo", "bo",
              "ln2_g", "ln2_b", "w1", "b1", "w2", "b2")

_VMEM_SPEC = pl.BlockSpec(memory_space=pltpu.MemorySpace.VMEM)


# ----------------------------- in-kernel helpers -----------------------------
def _layernorm(x, g, b, eps=1e-5):
    mean = jnp.mean(x, axis=-1, keepdims=True)
    var = jnp.mean(jnp.square(x - mean), axis=-1, keepdims=True)
    return (x - mean) * jax.lax.rsqrt(var + eps) * g + b


def _transformer_tower(x, mask_add, lw, *, n_layers, n_heads, head_dim):
    """All transformer layers on the folded (M, D) residual stream.

    x        : (M, D) f32 residual stream, M = B * S.
    mask_add : (M, M) f32 additive mask (block-diagonal + key padding).
    lw       : dict of stacked-weight refs (leading dim = layer).
    Returns (M, D) f32.
    """
    M, D = x.shape
    # Hoisted once: (H, M, M) additive mask (JAX does not CSE broadcast_in_dim).
    mask_h = jnp.broadcast_to(mask_add[None, :, :], (n_heads, M, M))

    for layer in range(n_layers):
        # --- self-attention block (pre-LN) ---
        h = _layernorm(x, lw["ln1_g"][layer], lw["ln1_b"][layer])
        qkv = (jnp.dot(h.astype(jnp.bfloat16), lw["wqkv"][layer],
                       preferred_element_type=jnp.float32)
               + lw["bqkv"][layer])                        # (M, 3D), fused QKV

        def _heads(t):                                     # (M, D) -> (H, M, Dh)
            return jnp.swapaxes(
                t.reshape(M, n_heads, head_dim), 0, 1).astype(jnp.bfloat16)

        q = _heads(qkv[:, :D])          # 1/sqrt(Dh) already folded into Wq/bq
        k = _heads(qkv[:, D:2 * D])
        v = _heads(qkv[:, 2 * D:3 * D])

        # One batched matmul for all heads' scores, one for all heads' P.V.
        s = jnp.einsum('hmd,hnd->hmn', q, k,
                       preferred_element_type=jnp.float32)     # (H, M, M)
        s = s + mask_h
        s = s - jnp.max(s, axis=-1, keepdims=True)
        p = jnp.exp(s)
        p = p * pl.reciprocal(jnp.sum(p, axis=-1, keepdims=True), approx=True)
        ctx = jnp.einsum('hmn,hnd->hmd', p.astype(jnp.bfloat16), v,
                         preferred_element_type=jnp.float32)    # (H, M, Dh)
        attn = jnp.swapaxes(ctx, 0, 1).reshape(M, D)            # (M, D)

        x = x + (jnp.dot(attn.astype(jnp.bfloat16), lw["wo"][layer],
                         preferred_element_type=jnp.float32)
                 + lw["bo"][layer])

        # --- feed-forward block (pre-LN) ---
        h2 = _layernorm(x, lw["ln2_g"][layer], lw["ln2_b"][layer])
        ff = (jnp.dot(h2.astype(jnp.bfloat16), lw["w1"][layer],
                      preferred_element_type=jnp.float32)
              + lw["b1"][layer])
        ff = jax.nn.gelu(ff, approximate=True)
        ff = (jnp.dot(ff.astype(jnp.bfloat16), lw["w2"][layer],
                      preferred_element_type=jnp.float32)
              + lw["b2"][layer])
        x = x + ff
    return x


def _cls_project(x, wp_ref, bp_ref, *, batch, seq):
    """last_hidden_state[:, 0, :] pooling + linear projection (lane-padded)."""
    cls = jnp.concatenate([x[b * seq:b * seq + 1, :] for b in range(batch)],
                          axis=0)                               # (B, D)
    return (jnp.dot(cls.astype(jnp.bfloat16), wp_ref[...],
                    preferred_element_type=jnp.float32)
            + bp_ref[...])                                      # (B, PROJ_PAD)


# ----------------------------- fused kernels ---------------------------------
def _text_encoder_kernel(ids_ref, mask_ref, tok_emb_ref, pos_ref,
                         ln1_g, ln1_b, wqkv, bqkv, wo, bo,
                         ln2_g, ln2_b, w1, b1, w2, b2,
                         wp, bp, o_ref,
                         *, batch, seq, n_layers, n_heads, head_dim):
    M = batch * seq
    vocab, _ = tok_emb_ref.shape
    # Fused token-embedding gather: one-hot(ids) @ tok_emb on the MXU.
    ids = ids_ref[...]                                          # (M, 1) int32
    iota = jax.lax.broadcasted_iota(jnp.int32, (M, vocab), 1)
    onehot = (iota == ids).astype(jnp.bfloat16)                 # (M, V)
    x = jnp.dot(onehot, tok_emb_ref[...],
                preferred_element_type=jnp.float32)             # (M, D)
    x = x + jnp.concatenate([pos_ref[...]] * batch, axis=0)     # + pos

    lw = dict(ln1_g=ln1_g, ln1_b=ln1_b, wqkv=wqkv, bqkv=bqkv, wo=wo, bo=bo,
              ln2_g=ln2_g, ln2_b=ln2_b, w1=w1, b1=b1, w2=w2, b2=b2)
    x = _transformer_tower(x, mask_ref[...], lw, n_layers=n_layers,
                           n_heads=n_heads, head_dim=head_dim)
    o_ref[...] = _cls_project(x, wp, bp, batch=batch, seq=seq)


def _vision_encoder_kernel(patches_ref, mask_ref, patch_w, cls_pos0_ref,
                           pos_rest_ref,
                           ln1_g, ln1_b, wqkv, bqkv, wo, bo,
                           ln2_g, ln2_b, w1, b1, w2, b2,
                           wp, bp, o_ref,
                           *, batch, n_patches, n_layers, n_heads, head_dim):
    seq = 1 + n_patches
    # Patch-embed conv-as-matmul over all images at once.
    pe = jnp.dot(patches_ref[...].astype(jnp.bfloat16), patch_w[...],
                 preferred_element_type=jnp.float32)            # (B*np, D)
    pos_rest = pos_rest_ref[...]                                # (np, D)
    cls0 = cls_pos0_ref[...]                                    # (1, D) cls+pos0
    rows = []
    for b in range(batch):
        rows.append(cls0)
        rows.append(pe[b * n_patches:(b + 1) * n_patches, :] + pos_rest)
    x = jnp.concatenate(rows, axis=0)                           # (M, D)

    lw = dict(ln1_g=ln1_g, ln1_b=ln1_b, wqkv=wqkv, bqkv=bqkv, wo=wo, bo=bo,
              ln2_g=ln2_g, ln2_b=ln2_b, w1=w1, b1=b1, w2=w2, b2=b2)
    x = _transformer_tower(x, mask_ref[...], lw, n_layers=n_layers,
                           n_heads=n_heads, head_dim=head_dim)
    o_ref[...] = _cls_project(x, wp, bp, batch=batch, seq=seq)


# ----------------------------- wrappers --------------------------------------
def text_encoder_forward(text_params, proj_params, input_ids, attention_mask):
    B, S = input_ids.shape
    M = B * S
    ids = input_ids.reshape(M, 1).astype(jnp.int32)
    # Block-diagonal (keep batches independent) + key-padding additive mask.
    bid = jnp.repeat(jnp.arange(B, dtype=jnp.int32), S)
    same_batch = bid[:, None] == bid[None, :]
    key_ok = attention_mask.reshape(M) > 0
    mask_add = jnp.where(same_batch & key_ok[None, :], 0.0, -1e9
                         ).astype(jnp.float32)                  # (M, M)

    lw = text_params["layers"]
    kern = functools.partial(_text_encoder_kernel, batch=B, seq=S,
                             n_layers=N_LAYERS, n_heads=N_HEADS,
                             head_dim=HEAD_DIM)
    inputs = (ids, mask_add, text_params["tok_emb"], text_params["pos_emb"],
              *[lw[k] for k in LAYER_KEYS],
              proj_params["w"], proj_params["b"])
    out = pl.pallas_call(
        kern,
        out_shape=jax.ShapeDtypeStruct((B, PROJ_PAD), jnp.float32),
        in_specs=[_VMEM_SPEC] * len(inputs),
        out_specs=_VMEM_SPEC,
    )(*inputs)
    return out[:, :PROJ_DIM]


def image_encoder_forward(image_params, proj_params, pixel_values):
    B, C, H, W = pixel_values.shape
    ph = PATCH
    nH, nW = H // ph, W // ph
    n_patches = nH * nW
    S = 1 + n_patches
    M = B * S
    # patchify NCHW -> (B*n_patches, C*ph*ph), channel-major flattening
    # (matches torch Conv2d weight.reshape(hidden, C*ph*pw)).
    patches = (pixel_values.reshape(B, C, nH, ph, nW, ph)
                           .transpose(0, 2, 4, 1, 3, 5)
                           .reshape(B * n_patches, C * ph * ph))
    bid = jnp.repeat(jnp.arange(B, dtype=jnp.int32), S)
    mask_add = jnp.where(bid[:, None] == bid[None, :], 0.0, -1e9
                         ).astype(jnp.float32)                  # (M, M)

    lw = image_params["layers"]
    kern = functools.partial(_vision_encoder_kernel, batch=B,
                             n_patches=n_patches, n_layers=N_LAYERS,
                             n_heads=N_HEADS, head_dim=HEAD_DIM)
    inputs = (patches, mask_add, image_params["patch_w"],
              image_params["cls_pos0"], image_params["pos_rest"],
              *[lw[k] for k in LAYER_KEYS],
              proj_params["w"], proj_params["b"])
    out = pl.pallas_call(
        kern,
        out_shape=jax.ShapeDtypeStruct((B, PROJ_PAD), jnp.float32),
        in_specs=[_VMEM_SPEC] * len(inputs),
        out_specs=_VMEM_SPEC,
    )(*inputs)
    return out[:, :PROJ_DIM]


def multilingual_clip_forward(params, input_ids, attention_mask, pixel_values=None):
    text_embeddings = text_encoder_forward(
        params["text"], params["text_proj"], input_ids, attention_mask)
    if pixel_values is not None:
        image_embeddings = image_encoder_forward(
            params["image"], params["image_proj"], pixel_values)
        return text_embeddings, image_embeddings
    return text_embeddings


# ----------------------------- parameter init --------------------------------
def _dense(key, d_in, d_out):
    # PyTorch nn.Linear stores weight as (out, in); kept pre-transposed (in, out).
    return {"w": jax.random.normal(key, (d_in, d_out), jnp.float32) * 0.02,
            "b": jnp.zeros((1, d_out), jnp.float32)}


def _stacked_layer_params(key, d, ffn, n_layers):
    ks = jax.random.split(key, 4)

    def w(k, shape):
        return jax.random.normal(k, shape, jnp.float32) * 0.02

    return {
        "ln1_g": jnp.ones((n_layers, 1, d), jnp.float32),
        "ln1_b": jnp.zeros((n_layers, 1, d), jnp.float32),
        "ln2_g": jnp.ones((n_layers, 1, d), jnp.float32),
        "ln2_b": jnp.zeros((n_layers, 1, d), jnp.float32),
        "wqkv": w(ks[0], (n_layers, d, 3 * d)),          # fused Q|K|V
        "bqkv": jnp.zeros((n_layers, 1, 3 * d), jnp.float32),
        "wo": w(ks[1], (n_layers, d, d)),
        "bo": jnp.zeros((n_layers, 1, d), jnp.float32),
        "w1": w(ks[2], (n_layers, d, ffn)),
        "b1": jnp.zeros((n_layers, 1, ffn), jnp.float32),
        "w2": w(ks[3], (n_layers, ffn, d)),
        "b2": jnp.zeros((n_layers, 1, d), jnp.float32),
    }


def init_params(key):
    kt, ki, ktp, kip = jax.random.split(key, 4)

    kte = jax.random.split(kt, 3)
    text = {
        "tok_emb": jax.random.normal(kte[0], (VOCAB, T_HID), jnp.float32) * 0.02,
        "pos_emb": jax.random.normal(kte[1], (SEQ, T_HID), jnp.float32) * 0.02,
        "layers": _stacked_layer_params(kte[2], T_HID, FFN, N_LAYERS),
    }

    n_patches = (IMG // PATCH) ** 2
    kie = jax.random.split(ki, 4)
    image = {
        # CLIP patch conv has no bias
        "patch_w": jax.random.normal(kie[0], (CHANNELS * PATCH * PATCH, I_HID),
                                     jnp.float32) * 0.02,
        "cls": jax.random.normal(kie[1], (1, I_HID), jnp.float32) * 0.02,
        "img_pos": jax.random.normal(kie[2], (1 + n_patches, I_HID),
                                     jnp.float32) * 0.02,
        "layers": _stacked_layer_params(kie[3], I_HID, FFN, N_LAYERS),
    }

    return {
        "text": text,
        "image": image,
        "text_proj": _dense(ktp, T_HID, PROJ_DIM),
        "image_proj": _dense(kip, I_HID, PROJ_DIM),
    }


def prepare_params(params):
    """One-time inference-time weight transforms:
      * fold 1/sqrt(head_dim) into the Q columns of the fused QKV weight/bias,
      * cast matmul weights to bf16 (MXU native path),
      * pad projection weights to 128 output lanes (lane-dense store),
      * fold cls embedding into the vision positional table row 0.
    """
    scale = 1.0 / (HEAD_DIM ** 0.5)

    def prep_layers(lw, d):
        wqkv = lw["wqkv"].at[:, :, :d].multiply(scale)
        bqkv = lw["bqkv"].at[:, :, :d].multiply(scale)
        out = dict(lw)
        out["wqkv"] = wqkv.astype(jnp.bfloat16)
        out["bqkv"] = bqkv
        out["wo"] = lw["wo"].astype(jnp.bfloat16)
        out["w1"] = lw["w1"].astype(jnp.bfloat16)
        out["w2"] = lw["w2"].astype(jnp.bfloat16)
        return out

    def prep_proj(p, d):
        wp = jnp.zeros((d, PROJ_PAD), jnp.float32).at[:, :PROJ_DIM].set(p["w"])
        bp = jnp.zeros((1, PROJ_PAD), jnp.float32).at[:, :PROJ_DIM].set(p["b"])
        return {"w": wp.astype(jnp.bfloat16), "b": bp}

    text = dict(params["text"])
    text["tok_emb"] = params["text"]["tok_emb"].astype(jnp.bfloat16)
    text["layers"] = prep_layers(params["text"]["layers"], T_HID)

    image = {
        "patch_w": params["image"]["patch_w"].astype(jnp.bfloat16),
        "cls_pos0": params["image"]["img_pos"][0:1, :] + params["image"]["cls"],
        "pos_rest": params["image"]["img_pos"][1:, :],
        "layers": prep_layers(params["image"]["layers"], I_HID),
    }

    return {
        "text": text,
        "image": image,
        "text_proj": prep_proj(params["text_proj"], T_HID),
        "image_proj": prep_proj(params["image_proj"], I_HID),
    }


# ----------------------------- main ------------------------------------------
if __name__ == "__main__":
    key = jax.random.PRNGKey(0)
    kp, kid, kpix = jax.random.split(key, 3)

    params = prepare_params(init_params(kp))   # one-time weight transforms

    B = 2
    input_ids = jax.random.randint(kid, (B, SEQ), 0, VOCAB)
    attention_mask = jnp.concatenate(
        [jnp.ones((B, SEQ - 2), jnp.int32), jnp.zeros((B, 2), jnp.int32)], axis=1)
    pixel_values = jax.random.normal(kpix, (B, CHANNELS, IMG, IMG), jnp.float32)

    clip_forward = jax.jit(multilingual_clip_forward)

    text_emb, image_emb = clip_forward(params, input_ids, attention_mask,
                                       pixel_values)
    jax.block_until_ready((text_emb, image_emb))

    assert text_emb.shape == (B, PROJ_DIM) and text_emb.dtype == jnp.float32
    assert image_emb.shape == (B, PROJ_DIM) and image_emb.dtype == jnp.float32
    assert bool(jnp.all(jnp.isfinite(text_emb)))
    assert bool(jnp.all(jnp.isfinite(image_emb)))

    # text-only path (pixel_values=None) returns just text embeddings
    text_only = clip_forward(params, input_ids, attention_mask)
    jax.block_until_ready(text_only)
    assert text_only.shape == (B, PROJ_DIM)

    print("KERNEL_OK")
</pallas_src>

<mosaic_0001>
module attributes {stable_mosaic.version = 11 : i64} {
  func.func @_vision_encoder_kernel(%arg0: memref<8x192xf32, #tpu.memory_space<vmem>>, %arg1: memref<10x10xf32, #tpu.memory_space<vmem>>, %arg2: memref<192x32xbf16, #tpu.memory_space<vmem>>, %arg3: memref<1x32xf32, #tpu.memory_space<vmem>>, %arg4: memref<4x32xf32, #tpu.memory_space<vmem>>, %arg5: memref<2x1x32xf32, #tpu.memory_space<vmem>>, %arg6: memref<2x1x32xf32, #tpu.memory_space<vmem>>, %arg7: memref<2x32x96xbf16, #tpu.memory_space<vmem>>, %arg8: memref<2x1x96xf32, #tpu.memory_space<vmem>>, %arg9: memref<2x32x32xbf16, #tpu.memory_space<vmem>>, %arg10: memref<2x1x32xf32, #tpu.memory_space<vmem>>, %arg11: memref<2x1x32xf32, #tpu.memory_space<vmem>>, %arg12: memref<2x1x32xf32, #tpu.memory_space<vmem>>, %arg13: memref<2x32x64xbf16, #tpu.memory_space<vmem>>, %arg14: memref<2x1x64xf32, #tpu.memory_space<vmem>>, %arg15: memref<2x64x32xbf16, #tpu.memory_space<vmem>>, %arg16: memref<2x1x32xf32, #tpu.memory_space<vmem>>, %arg17: memref<32x128xbf16, #tpu.memory_space<vmem>>, %arg18: memref<1x128xf32, #tpu.memory_space<vmem>>, %arg19: memref<2x128xf32, #tpu.memory_space<vmem>>) attributes {dimension_semantics = [], scalar_prefetch = 0 : i64, scratch_operands = 0 : i64, tpu.core_type = #tpu.core_type<tc>} {
    %c0 = arith.constant 0 : index
    %c0_0 = arith.constant 0 : index
    %0 = vector.load %arg0[%c0, %c0_0] : memref<8x192xf32, #tpu.memory_space<vmem>>, vector<8x192xf32>
    %1 = arith.truncf %0 : vector<8x192xf32> to vector<8x192xbf16>
    %c0_1 = arith.constant 0 : index
    %c0_2 = arith.constant 0 : index
    %2 = vector.load %arg2[%c0_1, %c0_2] : memref<192x32xbf16, #tpu.memory_space<vmem>>, vector<192x32xbf16>
    %cst = arith.constant dense<0.000000e+00> : vector<8x32xf32>
    %3 = tpu.matmul %1, %2, %cst {dimension_numbers = #tpu.dot_dimension_numbers<[1], [0], [0], [1], [0, 0, 1, 1], [], []>} : vector<8x192xbf16>, vector<192x32xbf16>, vector<8x32xf32> -> vector<8x32xf32>
    %c0_3 = arith.constant 0 : index
    %c0_4 = arith.constant 0 : index
    %4 = vector.load %arg4[%c0_3, %c0_4] : memref<4x32xf32, #tpu.memory_space<vmem>>, vector<4x32xf32>
    %c0_5 = arith.constant 0 : index
    %c0_6 = arith.constant 0 : index
    %5 = vector.load %arg3[%c0_5, %c0_6] : memref<1x32xf32, #tpu.memory_space<vmem>>, vector<1x32xf32>
    %6 = vector.extract_strided_slice %3 {offsets = [0, 0], sizes = [4, 32], strides = [1, 1]} : vector<8x32xf32> to vector<4x32xf32>
    %7 = arith.addf %6, %4 : vector<4x32xf32>
    %8 = vector.extract_strided_slice %3 {offsets = [4, 0], sizes = [4, 32], strides = [1, 1]} : vector<8x32xf32> to vector<4x32xf32>
    %9 = arith.addf %8, %4 : vector<4x32xf32>
    %10 = tpu.concatenate %5, %7, %5, %9 in 0 : vector<1x32xf32>, vector<4x32xf32>, vector<1x32xf32>, vector<4x32xf32> -> vector<10x32xf32>
    %c0_7 = arith.constant 0 : index
    %c0_8 = arith.constant 0 : index
    %11 = vector.load %arg1[%c0_7, %c0_8] : memref<10x10xf32, #tpu.memory_space<vmem>>, vector<10x10xf32>
    %12 = vector.shape_cast %11 : vector<10x10xf32> to vector<1x10x10xf32>
    %13 = vector.shape_cast %12 : vector<1x10x10xf32> to vector<1x10x10xf32>
    %14 = vector.broadcast %13 : vector<1x10x10xf32> to vector<2x10x10xf32>
    %c0_9 = arith.constant 0 : index
    %c0_10 = arith.constant 0 : index
    %c0_11 = arith.constant 0 : index
    %15 = vector.load %arg5[%c0_9, %c0_10, %c0_11] : memref<2x1x32xf32, #tpu.memory_space<vmem>>, vector<1x1x32xf32>
    %16 = vector.shape_cast %15 : vector<1x1x32xf32> to vector<1x32xf32>
    %c0_12 = arith.constant 0 : index
    %c0_13 = arith.constant 0 : index
    %c0_14 = arith.constant 0 : index
    %17 = vector.load %arg6[%c0_12, %c0_13, %c0_14] : memref<2x1x32xf32, #tpu.memory_space<vmem>>, vector<1x1x32xf32>
    %18 = vector.shape_cast %17 : vector<1x1x32xf32> to vector<1x32xf32>
    %cst_15 = arith.constant dense<0.000000e+00> : vector<10xf32>
    %19 = vector.multi_reduction <add>, %10, %cst_15 [1] : vector<10x32xf32> to vector<10xf32>
    %20 = vector.shape_cast %19 : vector<10xf32> to vector<10x1xf32>
    %cst_16 = arith.constant 3.200000e+01 : f32
    %21 = vector.broadcast %cst_16 : f32 to vector<10x1xf32>
    %22 = arith.divf %20, %21 : vector<10x1xf32>
    %23 = vector.broadcast %22 : vector<10x1xf32> to vector<10x32xf32>
    %24 = arith.subf %10, %23 : vector<10x32xf32>
    %25 = arith.mulf %24, %24 : vector<10x32xf32>
    %cst_17 = arith.constant dense<0.000000e+00> : vector<10xf32>
    %26 = vector.multi_reduction <add>, %25, %cst_17 [1] : vector<10x32xf32> to vector<10xf32>
    %27 = vector.shape_cast %26 : vector<10xf32> to vector<10x1xf32>
    %cst_18 = arith.constant 3.200000e+01 : f32
    %28 = vector.broadcast %cst_18 : f32 to vector<10x1xf32>
    %29 = arith.divf %27, %28 : vector<10x1xf32>
    %30 = vector.broadcast %22 : vector<10x1xf32> to vector<10x32xf32>
    %31 = arith.subf %10, %30 : vector<10x32xf32>
    %cst_19 = arith.constant 9.99999974E-6 : f32
    %32 = vector.broadcast %cst_19 : f32 to vector<10x1xf32>
    %33 = arith.addf %29, %32 : vector<10x1xf32>
    %34 = math.rsqrt %33 : vector<10x1xf32>
    %35 = vector.broadcast %34 : vector<10x1xf32> to vector<10x32xf32>
    %36 = arith.mulf %31, %35 : vector<10x32xf32>
    %37 = vector.broadcast %16 : vector<1x32xf32> to vector<10x32xf32>
    %38 = arith.mulf %36, %37 : vector<10x32xf32>
    %39 = vector.broadcast %18 : vector<1x32xf32> to vector<10x32xf32>
    %40 = arith.addf %38, %39 : vector<10x32xf32>
    %41 = arith.truncf %40 : vector<10x32xf32> to vector<10x32xbf16>
    %c0_20 = arith.constant 0 : index
    %c0_21 = arith.constant 0 : index
    %c0_22 = arith.constant 0 : index
    %42 = vector.load %arg7[%c0_20, %c0_21, %c0_22] : memref<2x32x96xbf16, #tpu.memory_space<vmem>>, vector<1x32x96xbf16>
    %43 = vector.shape_cast %42 : vector<1x32x96xbf16> to vector<32x96xbf16>
    %cst_23 = arith.constant dense<0.000000e+00> : vector<10x96xf32>
    %44 = tpu.matmul %41, %43, %cst_23 {dimension_numbers = #tpu.dot_dimension_numbers<[1], [0], [0], [1], [0, 0, 1, 1], [], []>} : vector<10x32xbf16>, vector<32x96xbf16>, vector<10x96xf32> -> vector<10x96xf32>
    %c0_24 = arith.constant 0 : index
    %c0_25 = arith.constant 0 : index
    %c0_26 = arith.constant 0 : index
    %45 = vector.load %arg8[%c0_24, %c0_25, %c0_26] : memref<2x1x96xf32, #tpu.memory_space<vmem>>, vector<1x1x96xf32>
    %46 = vector.shape_cast %45 : vector<1x1x96xf32> to vector<1x96xf32>
    %47 = vector.broadcast %46 : vector<1x96xf32> to vector<10x96xf32>
    %48 = arith.addf %44, %47 : vector<10x96xf32>
    %49 = vector.extract_strided_slice %48 {offsets = [0, 0], sizes = [10, 32], strides = [1, 1]} : vector<10x96xf32> to vector<10x32xf32>
    %50 = vector.shape_cast %49 : vector<10x32xf32> to vector<10x2x16xf32>
    %51 = tpu.transpose %50, [1, 0, 2] : vector<10x2x16xf32> -> vector<2x10x16xf32>
    %52 = arith.truncf %51 : vector<2x10x16xf32> to vector<2x10x16xbf16>
    %53 = vector.extract_strided_slice %48 {offsets = [0, 32], sizes = [10, 32], strides = [1, 1]} : vector<10x96xf32> to vector<10x32xf32>
    %54 = vector.shape_cast %53 : vector<10x32xf32> to vector<10x2x16xf32>
    %55 = tpu.transpose %54, [1, 0, 2] : vector<10x2x16xf32> -> vector<2x10x16xf32>
    %56 = arith.truncf %55 : vector<2x10x16xf32> to vector<2x10x16xbf16>
    %57 = vector.extract_strided_slice %48 {offsets = [0, 64], sizes = [10, 32], strides = [1, 1]} : vector<10x96xf32> to vector<10x32xf32>
    %58 = vector.shape_cast %57 : vector<10x32xf32> to vector<10x2x16xf32>
    %59 = tpu.transpose %58, [1, 0, 2] : vector<10x2x16xf32> -> vector<2x10x16xf32>
    %60 = arith.truncf %59 : vector<2x10x16xf32> to vector<2x10x16xbf16>
    "tpu.trace_start"() <{level = 10 : i32, message = "hmd,hnd->hmn"}> : () -> ()
    %cst_27 = arith.constant dense<0.000000e+00> : vector<2x10x10xf32>
    %61 = tpu.matmul %52, %56, %cst_27 {dimension_numbers = #tpu.dot_dimension_numbers<[2], [2], [1], [1], [0, 0, 0, 1, 1, 1], [0], [0]>} : vector<2x10x16xbf16>, vector<2x10x16xbf16>, vector<2x10x10xf32> -> vector<2x10x10xf32>
    "tpu.trace_stop"() : () -> ()
    %62 = arith.addf %61, %14 : vector<2x10x10xf32>
    %cst_28 = arith.constant dense<0xFF800000> : vector<2x10xf32>
    %63 = vector.multi_reduction <maximumf>, %62, %cst_28 [2] : vector<2x10x10xf32> to vector<2x10xf32>
    %64 = vector.shape_cast %63 : vector<2x10xf32> to vector<2x10x1xf32>
    %65 = vector.broadcast %64 : vector<2x10x1xf32> to vector<2x10x10xf32>
    %66 = arith.subf %62, %65 : vector<2x10x10xf32>
    %67 = math.exp %66 : vector<2x10x10xf32>
    %cst_29 = arith.constant dense<0.000000e+00> : vector<2x10xf32>
    %68 = vector.multi_reduction <add>, %67, %cst_29 [2] : vector<2x10x10xf32> to vector<2x10xf32>
    %69 = vector.shape_cast %68 : vector<2x10xf32> to vector<2x10x1xf32>
    %70 = tpu.reciprocal %69 {approx = true} : vector<2x10x1xf32> -> vector<2x10x1xf32>
    %71 = vector.broadcast %70 : vector<2x10x1xf32> to vector<2x10x10xf32>
    %72 = arith.mulf %67, %71 : vector<2x10x10xf32>
    %73 = arith.truncf %72 : vector<2x10x10xf32> to vector<2x10x10xbf16>
    "tpu.trace_start"() <{level = 10 : i32, message = "hmn,hnd->hmd"}> : () -> ()
    %cst_30 = arith.constant dense<0.000000e+00> : vector<2x10x16xf32>
    %74 = tpu.matmul %73, %60, %cst_30 {dimension_numbers = #tpu.dot_dimension_numbers<[2], [1], [1], [2], [0, 0, 0, 1, 1, 2], [0], [0]>} : vector<2x10x10xbf16>, vector<2x10x16xbf16>, vector<2x10x16xf32> -> vector<2x10x16xf32>
    "tpu.trace_stop"() : () -> ()
    %75 = tpu.transpose %74, [1, 0, 2] : vector<2x10x16xf32> -> vector<10x2x16xf32>
    %76 = vector.shape_cast %75 : vector<10x2x16xf32> to vector<10x32xf32>
    %77 = arith.truncf %76 : vector<10x32xf32> to vector<10x32xbf16>
    %c0_31 = arith.constant 0 : index
    %c0_32 = arith.constant 0 : index
    %c0_33 = arith.constant 0 : index
    %78 = vector.load %arg9[%c0_31, %c0_32, %c0_33] : memref<2x32x32xbf16, #tpu.memory_space<vmem>>, vector<1x32x32xbf16>
    %79 = vector.shape_cast %78 : vector<1x32x32xbf16> to vector<32x32xbf16>
    %cst_34 = arith.constant dense<0.000000e+00> : vector<10x32xf32>
    %80 = tpu.matmul %77, %79, %cst_34 {dimension_numbers = #tpu.dot_dimension_numbers<[1], [0], [0], [1], [0, 0, 1, 1], [], []>} : vector<10x32xbf16>, vector<32x32xbf16>, vector<10x32xf32> -> vector<10x32xf32>
    %c0_35 = arith.constant 0 : index
    %c0_36 = arith.constant 0 : index
    %c0_37 = arith.constant 0 : index
    %81 = vector.load %arg10[%c0_35, %c0_36, %c0_37] : memref<2x1x32xf32, #tpu.memory_space<vmem>>, vector<1x1x32xf32>
    %82 = vector.shape_cast %81 : vector<1x1x32xf32> to vector<1x32xf32>
    %83 = vector.broadcast %82 : vector<1x32xf32> to vector<10x32xf32>
    %84 = arith.addf %80, %83 : vector<10x32xf32>
    %85 = arith.addf %10, %84 : vector<10x32xf32>
    %c0_38 = arith.constant 0 : index
    %c0_39 = arith.constant 0 : index
    %c0_40 = arith.constant 0 : index
    %86 = vector.load %arg11[%c0_38, %c0_39, %c0_40] : memref<2x1x32xf32, #tpu.memory_space<vmem>>, vector<1x1x32xf32>
    %87 = vector.shape_cast %86 : vector<1x1x32xf32> to vector<1x32xf32>
    %c0_41 = arith.constant 0 : index
    %c0_42 = arith.constant 0 : index
    %c0_43 = arith.constant 0 : index
    %88 = vector.load %arg12[%c0_41, %c0_42, %c0_43] : memref<2x1x32xf32, #tpu.memory_space<vmem>>, vector<1x1x32xf32>
    %89 = vector.shape_cast %88 : vector<1x1x32xf32> to vector<1x32xf32>
    %cst_44 = arith.constant dense<0.000000e+00> : vector<10xf32>
    %90 = vector.multi_reduction <add>, %85, %cst_44 [1] : vector<10x32xf32> to vector<10xf32>
    %91 = vector.shape_cast %90 : vector<10xf32> to vector<10x1xf32>
    %cst_45 = arith.constant 3.200000e+01 : f32
    %92 = vector.broadcast %cst_45 : f32 to vector<10x1xf32>
    %93 = arith.divf %91, %92 : vector<10x1xf32>
    %94 = vector.broadcast %93 : vector<10x1xf32> to vector<10x32xf32>
    %95 = arith.subf %85, %94 : vector<10x32xf32>
    %96 = arith.mulf %95, %95 : vector<10x32xf32>
    %cst_46 = arith.constant dense<0.000000e+00> : vector<10xf32>
    %97 = vector.multi_reduction <add>, %96, %cst_46 [1] : vector<10x32xf32> to vector<10xf32>
    %98 = vector.shape_cast %97 : vector<10xf32> to vector<10x1xf32>
    %cst_47 = arith.constant 3.200000e+01 : f32
    %99 = vector.broadcast %cst_47 : f32 to vector<10x1xf32>
    %100 = arith.divf %98, %99 : vector<10x1xf32>
    %101 = vector.broadcast %93 : vector<10x1xf32> to vector<10x32xf32>
    %102 = arith.subf %85, %101 : vector<10x32xf32>
    %cst_48 = arith.constant 9.99999974E-6 : f32
    %103 = vector.broadcast %cst_48 : f32 to vector<10x1xf32>
    %104 = arith.addf %100, %103 : vector<10x1xf32>
    %105 = math.rsqrt %104 : vector<10x1xf32>
    %106 = vector.broadcast %105 : vector<10x1xf32> to vector<10x32xf32>
    %107 = arith.mulf %102, %106 : vector<10x32xf32>
    %108 = vector.broadcast %87 : vector<1x32xf32> to vector<10x32xf32>
    %109 = arith.mulf %107, %108 : vector<10x32xf32>
    %110 = vector.broadcast %89 : vector<1x32xf32> to vector<10x32xf32>
    %111 = arith.addf %109, %110 : vector<10x32xf32>
    %112 = arith.truncf %111 : vector<10x32xf32> to vector<10x32xbf16>
    %c0_49 = arith.constant 0 : index
    %c0_50 = arith.constant 0 : index
    %c0_51 = arith.constant 0 : index
    %113 = vector.load %arg13[%c0_49, %c0_50, %c0_51] : memref<2x32x64xbf16, #tpu.memory_space<vmem>>, vector<1x32x64xbf16>
    %114 = vector.shape_cast %113 : vector<1x32x64xbf16> to vector<32x64xbf16>
    %cst_52 = arith.constant dense<0.000000e+00> : vector<10x64xf32>
    %115 = tpu.matmul %112, %114, %cst_52 {dimension_numbers = #tpu.dot_dimension_numbers<[1], [0], [0], [1], [0, 0, 1, 1], [], []>} : vector<10x32xbf16>, vector<32x64xbf16>, vector<10x64xf32> -> vector<10x64xf32>
    %c0_53 = arith.constant 0 : index
    %c0_54 = arith.constant 0 : index
    %c0_55 = arith.constant 0 : index
    %116 = vector.load %arg14[%c0_53, %c0_54, %c0_55] : memref<2x1x64xf32, #tpu.memory_space<vmem>>, vector<1x1x64xf32>
    %117 = vector.shape_cast %116 : vector<1x1x64xf32> to vector<1x64xf32>
    %118 = vector.broadcast %117 : vector<1x64xf32> to vector<10x64xf32>
    %119 = arith.addf %115, %118 : vector<10x64xf32>
    %120 = arith.mulf %119, %119 : vector<10x64xf32>
    %121 = arith.mulf %119, %120 : vector<10x64xf32>
    %cst_56 = arith.constant 4.471500e-02 : f32
    %122 = vector.broadcast %cst_56 : f32 to vector<10x64xf32>
    %123 = arith.mulf %122, %121 : vector<10x64xf32>
    %124 = arith.addf %119, %123 : vector<10x64xf32>
    %cst_57 = arith.constant 0.797884583 : f32
    %125 = vector.broadcast %cst_57 : f32 to vector<10x64xf32>
    %126 = arith.mulf %125, %124 : vector<10x64xf32>
    %127 = math.tanh %126 : vector<10x64xf32>
    %cst_58 = arith.constant 1.000000e+00 : f32
    %128 = vector.broadcast %cst_58 : f32 to vector<10x64xf32>
    %129 = arith.addf %128, %127 : vector<10x64xf32>
    %cst_59 = arith.constant 5.000000e-01 : f32
    %130 = vector.broadcast %cst_59 : f32 to vector<10x64xf32>
    %131 = arith.mulf %130, %129 : vector<10x64xf32>
    %132 = arith.mulf %119, %131 : vector<10x64xf32>
    %133 = arith.truncf %132 : vector<10x64xf32> to vector<10x64xbf16>
    %c0_60 = arith.constant 0 : index
    %c0_61 = arith.constant 0 : index
    %c0_62 = arith.constant 0 : index
    %134 = vector.load %arg15[%c0_60, %c0_61, %c0_62] : memref<2x64x32xbf16, #tpu.memory_space<vmem>>, vector<1x64x32xbf16>
    %135 = vector.shape_cast %134 : vector<1x64x32xbf16> to vector<64x32xbf16>
    %cst_63 = arith.constant dense<0.000000e+00> : vector<10x32xf32>
    %136 = tpu.matmul %133, %135, %cst_63 {dimension_numbers = #tpu.dot_dimension_numbers<[1], [0], [0], [1], [0, 0, 1, 1], [], []>} : vector<10x64xbf16>, vector<64x32xbf16>, vector<10x32xf32> -> vector<10x32xf32>
    %c0_64 = arith.constant 0 : index
    %c0_65 = arith.constant 0 : index
    %c0_66 = arith.constant 0 : index
    %137 = vector.load %arg16[%c0_64, %c0_65, %c0_66] : memref<2x1x32xf32, #tpu.memory_space<vmem>>, vector<1x1x32xf32>
    %138 = vector.shape_cast %137 : vector<1x1x32xf32> to vector<1x32xf32>
    %139 = vector.broadcast %138 : vector<1x32xf32> to vector<10x32xf32>
    %140 = arith.addf %136, %139 : vector<10x32xf32>
    %141 = arith.addf %85, %140 : vector<10x32xf32>
    %c1 = arith.constant 1 : index
    %c0_67 = arith.constant 0 : index
    %c0_68 = arith.constant 0 : index
    %142 = vector.load %arg5[%c1, %c0_67, %c0_68] : memref<2x1x32xf32, #tpu.memory_space<vmem>>, vector<1x1x32xf32>
    %143 = vector.shape_cast %142 : vector<1x1x32xf32> to vector<1x32xf32>
    %c1_69 = arith.constant 1 : index
    %c0_70 = arith.constant 0 : index
    %c0_71 = arith.constant 0 : index
    %144 = vector.load %arg6[%c1_69, %c0_70, %c0_71] : memref<2x1x32xf32, #tpu.memory_space<vmem>>, vector<1x1x32xf32>
    %145 = vector.shape_cast %144 : vector<1x1x32xf32> to vector<1x32xf32>
    %cst_72 = arith.constant dense<0.000000e+00> : vector<10xf32>
    %146 = vector.multi_reduction <add>, %141, %cst_72 [1] : vector<10x32xf32> to vector<10xf32>
    %147 = vector.shape_cast %146 : vector<10xf32> to vector<10x1xf32>
    %cst_73 = arith.constant 3.200000e+01 : f32
    %148 = vector.broadcast %cst_73 : f32 to vector<10x1xf32>
    %149 = arith.divf %147, %148 : vector<10x1xf32>
    %150 = vector.broadcast %149 : vector<10x1xf32> to vector<10x32xf32>
    %151 = arith.subf %141, %150 : vector<10x32xf32>
    %152 = arith.mulf %151, %151 : vector<10x32xf32>
    %cst_74 = arith.constant dense<0.000000e+00> : vector<10xf32>
    %153 = vector.multi_reduction <add>, %152, %cst_74 [1] : vector<10x32xf32> to vector<10xf32>
    %154 = vector.shape_cast %153 : vector<10xf32> to vector<10x1xf32>
    %cst_75 = arith.constant 3.200000e+01 : f32
    %155 = vector.broadcast %cst_75 : f32 to vector<10x1xf32>
    %156 = arith.divf %154, %155 : vector<10x1xf32>
    %157 = vector.broadcast %149 : vector<10x1xf32> to vector<10x32xf32>
    %158 = arith.subf %141, %157 : vector<10x32xf32>
    %cst_76 = arith.constant 9.99999974E-6 : f32
    %159 = vector.broadcast %cst_76 : f32 to vector<10x1xf32>
    %160 = arith.addf %156, %159 : vector<10x1xf32>
    %161 = math.rsqrt %160 : vector<10x1xf32>
    %162 = vector.broadcast %161 : vector<10x1xf32> to vector<10x32xf32>
    %163 = arith.mulf %158, %162 : vector<10x32xf32>
    %164 = vector.broadcast %143 : vector<1x32xf32> to vector<10x32xf32>
    %165 = arith.mulf %163, %164 : vector<10x32xf32>
    %166 = vector.broadcast %145 : vector<1x32xf32> to vector<10x32xf32>
    %167 = arith.addf %165, %166 : vector<10x32xf32>
    %168 = arith.truncf %167 : vector<10x32xf32> to vector<10x32xbf16>
    %c1_77 = arith.constant 1 : index
    %c0_78 = arith.constant 0 : index
    %c0_79 = arith.constant 0 : index
    %169 = vector.load %arg7[%c1_77, %c0_78, %c0_79] : memref<2x32x96xbf16, #tpu.memory_space<vmem>>, vector<1x32x96xbf16>
    %170 = vector.shape_cast %169 : vector<1x32x96xbf16> to vector<32x96xbf16>
    %cst_80 = arith.constant dense<0.000000e+00> : vector<10x96xf32>
    %171 = tpu.matmul %168, %170, %cst_80 {dimension_numbers = #tpu.dot_dimension_numbers<[1], [0], [0], [1], [0, 0, 1, 1], [], []>} : vector<10x32xbf16>, vector<32x96xbf16>, vector<10x96xf32> -> vector<10x96xf32>
    %c1_81 = arith.constant 1 : index
    %c0_82 = arith.constant 0 : index
    %c0_83 = arith.constant 0 : index
    %172 = vector.load %arg8[%c1_81, %c0_82, %c0_83] : memref<2x1x96xf32, #tpu.memory_space<vmem>>, vector<1x1x96xf32>
    %173 = vector.shape_cast %172 : vector<1x1x96xf32> to vector<1x96xf32>
    %174 = vector.broadcast %173 : vector<1x96xf32> to vector<10x96xf32>
    %175 = arith.addf %171, %174 : vector<10x96xf32>
    %176 = vector.extract_strided_slice %175 {offsets = [0, 0], sizes = [10, 32], strides = [1, 1]} : vector<10x96xf32> to vector<10x32xf32>
    %177 = vector.shape_cast %176 : vector<10x32xf32> to vector<10x2x16xf32>
    %178 = tpu.transpose %177, [1, 0, 2] : vector<10x2x16xf32> -> vector<2x10x16xf32>
    %179 = arith.truncf %178 : vector<2x10x16xf32> to vector<2x10x16xbf16>
    %180 = vector.extract_strided_slice %175 {offsets = [0, 32], sizes = [10, 32], strides = [1, 1]} : vector<10x96xf32> to vector<10x32xf32>
    %181 = vector.shape_cast %180 : vector<10x32xf32> to vector<10x2x16xf32>
    %182 = tpu.transpose %181, [1, 0, 2] : vector<10x2x16xf32> -> vector<2x10x16xf32>
    %183 = arith.truncf %182 : vector<2x10x16xf32> to vector<2x10x16xbf16>
    %184 = vector.extract_strided_slice %175 {offsets = [0, 64], sizes = [10, 32], strides = [1, 1]} : vector<10x96xf32> to vector<10x32xf32>
    %185 = vector.shape_cast %184 : vector<10x32xf32> to vector<10x2x16xf32>
    %186 = tpu.transpose %185, [1, 0, 2] : vector<10x2x16xf32> -> vector<2x10x16xf32>
    %187 = arith.truncf %186 : vector<2x10x16xf32> to vector<2x10x16xbf16>
    "tpu.trace_start"() <{level = 10 : i32, message = "hmd,hnd->hmn"}> : () -> ()
    %cst_84 = arith.constant dense<0.000000e+00> : vector<2x10x10xf32>
    %188 = tpu.matmul %179, %183, %cst_84 {dimension_numbers = #tpu.dot_dimension_numbers<[2], [2], [1], [1], [0, 0, 0, 1, 1, 1], [0], [0]>} : vector<2x10x16xbf16>, vector<2x10x16xbf16>, vector<2x10x10xf32> -> vector<2x10x10xf32>
    "tpu.trace_stop"() : () -> ()
    %189 = arith.addf %188, %14 : vector<2x10x10xf32>
    %cst_85 = arith.constant dense<0xFF800000> : vector<2x10xf32>
    %190 = vector.multi_reduction <maximumf>, %189, %cst_85 [2] : vector<2x10x10xf32> to vector<2x10xf32>
    %191 = vector.shape_cast %190 : vector<2x10xf32> to vector<2x10x1xf32>
    %192 = vector.broadcast %191 : vector<2x10x1xf32> to vector<2x10x10xf32>
    %193 = arith.subf %189, %192 : vector<2x10x10xf32>
    %194 = math.exp %193 : vector<2x10x10xf32>
    %cst_86 = arith.constant dense<0.000000e+00> : vector<2x10xf32>
    %195 = vector.multi_reduction <add>, %194, %cst_86 [2] : vector<2x10x10xf32> to vector<2x10xf32>
    %196 = vector.shape_cast %195 : vector<2x10xf32> to vector<2x10x1xf32>
    %197 = tpu.reciprocal %196 {approx = true} : vector<2x10x1xf32> -> vector<2x10x1xf32>
    %198 = vector.broadcast %197 : vector<2x10x1xf32> to vector<2x10x10xf32>
    %199 = arith.mulf %194, %198 : vector<2x10x10xf32>
    %200 = arith.truncf %199 : vector<2x10x10xf32> to vector<2x10x10xbf16>
    "tpu.trace_start"() <{level = 10 : i32, message = "hmn,hnd->hmd"}> : () -> ()
    %cst_87 = arith.constant dense<0.000000e+00> : vector<2x10x16xf32>
    %201 = tpu.matmul %200, %187, %cst_87 {dimension_numbers = #tpu.dot_dimension_numbers<[2], [1], [1], [2], [0, 0, 0, 1, 1, 2], [0], [0]>} : vector<2x10x10xbf16>, vector<2x10x16xbf16>, vector<2x10x16xf32> -> vector<2x10x16xf32>
    "tpu.trace_stop"() : () -> ()
    %202 = tpu.transpose %201, [1, 0, 2] : vector<2x10x16xf32> -> vector<10x2x16xf32>
    %203 = vector.shape_cast %202 : vector<10x2x16xf32> to vector<10x32xf32>
    %204 = arith.truncf %203 : vector<10x32xf32> to vector<10x32xbf16>
    %c1_88 = arith.constant 1 : index
    %c0_89 = arith.constant 0 : index
    %c0_90 = arith.constant 0 : index
    %205 = vector.load %arg9[%c1_88, %c0_89, %c0_90] : memref<2x32x32xbf16, #tpu.memory_space<vmem>>, vector<1x32x32xbf16>
    %206 = vector.shape_cast %205 : vector<1x32x32xbf16> to vector<32x32xbf16>
    %cst_91 = arith.constant dense<0.000000e+00> : vector<10x32xf32>
    %207 = tpu.matmul %204, %206, %cst_91 {dimension_numbers = #tpu.dot_dimension_numbers<[1], [0], [0], [1], [0, 0, 1, 1], [], []>} : vector<10x32xbf16>, vector<32x32xbf16>, vector<10x32xf32> -> vector<10x32xf32>
    %c1_92 = arith.constant 1 : index
    %c0_93 = arith.constant 0 : index
    %c0_94 = arith.constant 0 : index
    %208 = vector.load %arg10[%c1_92, %c0_93, %c0_94] : memref<2x1x32xf32, #tpu.memory_space<vmem>>, vector<1x1x32xf32>
    %209 = vector.shape_cast %208 : vector<1x1x32xf32> to vector<1x32xf32>
    %210 = vector.broadcast %209 : vector<1x32xf32> to vector<10x32xf32>
    %211 = arith.addf %207, %210 : vector<10x32xf32>
    %212 = arith.addf %141, %211 : vector<10x32xf32>
    %c1_95 = arith.constant 1 : index
    %c0_96 = arith.constant 0 : index
    %c0_97 = arith.constant 0 : index
    %213 = vector.load %arg11[%c1_95, %c0_96, %c0_97] : memref<2x1x32xf32, #tpu.memory_space<vmem>>, vector<1x1x32xf32>
    %214 = vector.shape_cast %213 : vector<1x1x32xf32> to vector<1x32xf32>
    %c1_98 = arith.constant 1 : index
    %c0_99 = arith.constant 0 : index
    %c0_100 = arith.constant 0 : index
    %215 = vector.load %arg12[%c1_98, %c0_99, %c0_100] : memref<2x1x32xf32, #tpu.memory_space<vmem>>, vector<1x1x32xf32>
    %216 = vector.shape_cast %215 : vector<1x1x32xf32> to vector<1x32xf32>
    %cst_101 = arith.constant dense<0.000000e+00> : vector<10xf32>
    %217 = vector.multi_reduction <add>, %212, %cst_101 [1] : vector<10x32xf32> to vector<10xf32>
    %218 = vector.shape_cast %217 : vector<10xf32> to vector<10x1xf32>
    %cst_102 = arith.constant 3.200000e+01 : f32
    %219 = vector.broadcast %cst_102 : f32 to vector<10x1xf32>
    %220 = arith.divf %218, %219 : vector<10x1xf32>
    %221 = vector.broadcast %220 : vector<10x1xf32> to vector<10x32xf32>
    %222 = arith.subf %212, %221 : vector<10x32xf32>
    %223 = arith.mulf %222, %222 : vector<10x32xf32>
    %cst_103 = arith.constant dense<0.000000e+00> : vector<10xf32>
    %224 = vector.multi_reduction <add>, %223, %cst_103 [1] : vector<10x32xf32> to vector<10xf32>
    %225 = vector.shape_cast %224 : vector<10xf32> to vector<10x1xf32>
    %cst_104 = arith.constant 3.200000e+01 : f32
    %226 = vector.broadcast %cst_104 : f32 to vector<10x1xf32>
    %227 = arith.divf %225, %226 : vector<10x1xf32>
    %228 = vector.broadcast %220 : vector<10x1xf32> to vector<10x32xf32>
    %229 = arith.subf %212, %228 : vector<10x32xf32>
    %cst_105 = arith.constant 9.99999974E-6 : f32
    %230 = vector.broadcast %cst_105 : f32 to vector<10x1xf32>
    %231 = arith.addf %227, %230 : vector<10x1xf32>
    %232 = math.rsqrt %231 : vector<10x1xf32>
    %233 = vector.broadcast %232 : vector<10x1xf32> to vector<10x32xf32>
    %234 = arith.mulf %229, %233 : vector<10x32xf32>
    %235 = vector.broadcast %214 : vector<1x32xf32> to vector<10x32xf32>
    %236 = arith.mulf %234, %235 : vector<10x32xf32>
    %237 = vector.broadcast %216 : vector<1x32xf32> to vector<10x32xf32>
    %238 = arith.addf %236, %237 : vector<10x32xf32>
    %239 = arith.truncf %238 : vector<10x32xf32> to vector<10x32xbf16>
    %c1_106 = arith.constant 1 : index
    %c0_107 = arith.constant 0 : index
    %c0_108 = arith.constant 0 : index
    %240 = vector.load %arg13[%c1_106, %c0_107, %c0_108] : memref<2x32x64xbf16, #tpu.memory_space<vmem>>, vector<1x32x64xbf16>
    %241 = vector.shape_cast %240 : vector<1x32x64xbf16> to vector<32x64xbf16>
    %cst_109 = arith.constant dense<0.000000e+00> : vector<10x64xf32>
    %242 = tpu.matmul %239, %241, %cst_109 {dimension_numbers = #tpu.dot_dimension_numbers<[1], [0], [0], [1], [0, 0, 1, 1], [], []>} : vector<10x32xbf16>, vector<32x64xbf16>, vector<10x64xf32> -> vector<10x64xf32>
    %c1_110 = arith.constant 1 : index
    %c0_111 = arith.constant 0 : index
    %c0_112 = arith.constant 0 : index
    %243 = vector.load %arg14[%c1_110, %c0_111, %c0_112] : memref<2x1x64xf32, #tpu.memory_space<vmem>>, vector<1x1x64xf32>
    %244 = vector.shape_cast %243 : vector<1x1x64xf32> to vector<1x64xf32>
    %245 = vector.broadcast %244 : vector<1x64xf32> to vector<10x64xf32>
    %246 = arith.addf %242, %245 : vector<10x64xf32>
    %247 = arith.mulf %246, %246 : vector<10x64xf32>
    %248 = arith.mulf %246, %247 : vector<10x64xf32>
    %cst_113 = arith.constant 4.471500e-02 : f32
    %249 = vector.broadcast %cst_113 : f32 to vector<10x64xf32>
    %250 = arith.mulf %249, %248 : vector<10x64xf32>
    %251 = arith.addf %246, %250 : vector<10x64xf32>
    %cst_114 = arith.constant 0.797884583 : f32
    %252 = vector.broadcast %cst_114 : f32 to vector<10x64xf32>
    %253 = arith.mulf %252, %251 : vector<10x64xf32>
    %254 = math.tanh %253 : vector<10x64xf32>
    %cst_115 = arith.constant 1.000000e+00 : f32
    %255 = vector.broadcast %cst_115 : f32 to vector<10x64xf32>
    %256 = arith.addf %255, %254 : vector<10x64xf32>
    %cst_116 = arith.constant 5.000000e-01 : f32
    %257 = vector.broadcast %cst_116 : f32 to vector<10x64xf32>
    %258 = arith.mulf %257, %256 : vector<10x64xf32>
    %259 = arith.mulf %246, %258 : vector<10x64xf32>
    %260 = arith.truncf %259 : vector<10x64xf32> to vector<10x64xbf16>
    %c1_117 = arith.constant 1 : index
    %c0_118 = arith.constant 0 : index
    %c0_119 = arith.constant 0 : index
    %261 = vector.load %arg15[%c1_117, %c0_118, %c0_119] : memref<2x64x32xbf16, #tpu.memory_space<vmem>>, vector<1x64x32xbf16>
    %262 = vector.shape_cast %261 : vector<1x64x32xbf16> to vector<64x32xbf16>
    %cst_120 = arith.constant dense<0.000000e+00> : vector<10x32xf32>
    %263 = tpu.matmul %260, %262, %cst_120 {dimension_numbers = #tpu.dot_dimension_numbers<[1], [0], [0], [1], [0, 0, 1, 1], [], []>} : vector<10x64xbf16>, vector<64x32xbf16>, vector<10x32xf32> -> vector<10x32xf32>
    %c1_121 = arith.constant 1 : index
    %c0_122 = arith.constant 0 : index
    %c0_123 = arith.constant 0 : index
    %264 = vector.load %arg16[%c1_121, %c0_122, %c0_123] : memref<2x1x32xf32, #tpu.memory_space<vmem>>, vector<1x1x32xf32>
    %265 = vector.shape_cast %264 : vector<1x1x32xf32> to vector<1x32xf32>
    %266 = vector.broadcast %265 : vector<1x32xf32> to vector<10x32xf32>
    %267 = arith.addf %263, %266 : vector<10x32xf32>
    %268 = arith.addf %212, %267 : vector<10x32xf32>
    %269 = vector.extract_strided_slice %268 {offsets = [0, 0], sizes = [1, 32], strides = [1, 1]} : vector<10x32xf32> to vector<1x32xf32>
    %270 = vector.extract_strided_slice %268 {offsets = [5, 0], sizes = [1, 32], strides = [1, 1]} : vector<10x32xf32> to vector<1x32xf32>
    %271 = tpu.concatenate %269, %270 in 0 : vector<1x32xf32>, vector<1x32xf32> -> vector<2x32xf32>
    %272 = arith.truncf %271 : vector<2x32xf32> to vector<2x32xbf16>
    %c0_124 = arith.constant 0 : index
    %c0_125 = arith.constant 0 : index
    %273 = vector.load %arg17[%c0_124, %c0_125] : memref<32x128xbf16, #tpu.memory_space<vmem>>, vector<32x128xbf16>
    %cst_126 = arith.constant dense<0.000000e+00> : vector<2x128xf32>
    %274 = tpu.matmul %272, %273, %cst_126 {dimension_numbers = #tpu.dot_dimension_numbers<[1], [0], [0], [1], [0, 0, 1, 1], [], []>} : vector<2x32xbf16>, vector<32x128xbf16>, vector<2x128xf32> -> vector<2x128xf32>
    %c0_127 = arith.constant 0 : index
    %c0_128 = arith.constant 0 : index
    %275 = vector.load %arg18[%c0_127, %c0_128] : memref<1x128xf32, #tpu.memory_space<vmem>>, vector<1x128xf32>
    %276 = vector.broadcast %275 : vector<1x128xf32> to vector<2x128xf32>
    %277 = arith.addf %274, %276 : vector<2x128xf32>
    %c0_129 = arith.constant 0 : index
    %c0_130 = arith.constant 0 : index
    %278 = vector.load %arg19[%c0_129, %c0_130] : memref<2x128xf32, #tpu.memory_space<vmem>>, vector<2x128xf32>
    tpu.vector_store %arg19[%c0_129, %c0_130], %277 {strides = array<i32>} : memref<2x128xf32, #tpu.memory_space<vmem>>, vector<2x128xf32>,
    return
  }
}

module attributes {stable_mosaic.version = 11 : i64} {
  func.func @_text_encoder_kernel(%arg0: memref<16x1xi32, #tpu.memory_space<vmem>>, %arg1: memref<16x16xf32, #tpu.memory_space<vmem>>, %arg2: memref<64x32xbf16, #tpu.memory_space<vmem>>, %arg3: memref<8x32xf32, #tpu.memory_space<vmem>>, %arg4: memref<2x1x32xf32, #tpu.memory_space<vmem>>, %arg5: memref<2x1x32xf32, #tpu.memory_space<vmem>>, %arg6: memref<2x32x96xbf16, #tpu.memory_space<vmem>>, %arg7: memref<2x1x96xf32, #tpu.memory_space<vmem>>, %arg8: memref<2x32x32xbf16, #tpu.memory_space<vmem>>, %arg9: memref<2x1x32xf32, #tpu.memory_space<vmem>>, %arg10: memref<2x1x32xf32, #tpu.memory_space<vmem>>, %arg11: memref<2x1x32xf32, #tpu.memory_space<vmem>>, %arg12: memref<2x32x64xbf16, #tpu.memory_space<vmem>>, %arg13: memref<2x1x64xf32, #tpu.memory_space<vmem>>, %arg14: memref<2x64x32xbf16, #tpu.memory_space<vmem>>, %arg15: memref<2x1x32xf32, #tpu.memory_space<vmem>>, %arg16: memref<32x128xbf16, #tpu.memory_space<vmem>>, %arg17: memref<1x128xf32, #tpu.memory_space<vmem>>, %arg18: memref<2x128xf32, #tpu.memory_space<vmem>>) attributes {dimension_semantics = [], scalar_prefetch = 0 : i64, scratch_operands = 0 : i64, tpu.core_type = #tpu.core_type<tc>} {
    %c0 = arith.constant 0 : index
    %c0_0 = arith.constant 0 : index
    %0 = vector.load %arg0[%c0, %c0_0] : memref<16x1xi32, #tpu.memory_space<vmem>>, vector<16x1xi32>
    %1 = tpu.iota {dimensions = array<i32: 1>} : vector<16x64xi32>
    %2 = vector.broadcast %0 : vector<16x1xi32> to vector<16x64xi32>
    %3 = arith.cmpi eq, %1, %2 : vector<16x64xi32>
    %4 = arith.extui %3 : vector<16x64xi1> to vector<16x64xi32>
    %5 = arith.sitofp %4 : vector<16x64xi32> to vector<16x64xf32>
    %6 = arith.truncf %5 : vector<16x64xf32> to vector<16x64xbf16>
    %c0_1 = arith.constant 0 : index
    %c0_2 = arith.constant 0 : index
    %7 = vector.load %arg2[%c0_1, %c0_2] : memref<64x32xbf16, #tpu.memory_space<vmem>>, vector<64x32xbf16>
    %cst = arith.constant dense<0.000000e+00> : vector<16x32xf32>
    %8 = tpu.matmul %6, %7, %cst {dimension_numbers = #tpu.dot_dimension_numbers<[1], [0], [0], [1], [0, 0, 1, 1], [], []>} : vector<16x64xbf16>, vector<64x32xbf16>, vector<16x32xf32> -> vector<16x32xf32>
    %c0_3 = arith.constant 0 : index
    %c0_4 = arith.constant 0 : index
    %9 = vector.load %arg3[%c0_3, %c0_4] : memref<8x32xf32, #tpu.memory_space<vmem>>, vector<8x32xf32>
    %10 = tpu.concatenate %9, %9 in 0 : vector<8x32xf32>, vector<8x32xf32> -> vector<16x32xf32>
    %11 = arith.addf %8, %10 : vector<16x32xf32>
    %c0_5 = arith.constant 0 : index
    %c0_6 = arith.constant 0 : index
    %12 = vector.load %arg1[%c0_5, %c0_6] : memref<16x16xf32, #tpu.memory_space<vmem>>, vector<16x16xf32>
    %13 = vector.shape_cast %12 : vector<16x16xf32> to vector<1x16x16xf32>
    %14 = vector.shape_cast %13 : vector<1x16x16xf32> to vector<1x16x16xf32>
    %15 = vector.broadcast %14 : vector<1x16x16xf32> to vector<2x16x16xf32>
    %c0_7 = arith.constant 0 : index
    %c0_8 = arith.constant 0 : index
    %c0_9 = arith.constant 0 : index
    %16 = vector.load %arg4[%c0_7, %c0_8, %c0_9] : memref<2x1x32xf32, #tpu.memory_space<vmem>>, vector<1x1x32xf32>
    %17 = vector.shape_cast %16 : vector<1x1x32xf32> to vector<1x32xf32>
    %c0_10 = arith.constant 0 : index
    %c0_11 = arith.constant 0 : index
    %c0_12 = arith.constant 0 : index
    %18 = vector.load %arg5[%c0_10, %c0_11, %c0_12] : memref<2x1x32xf32, #tpu.memory_space<vmem>>, vector<1x1x32xf32>
    %19 = vector.shape_cast %18 : vector<1x1x32xf32> to vector<1x32xf32>
    %cst_13 = arith.constant dense<0.000000e+00> : vector<16xf32>
    %20 = vector.multi_reduction <add>, %11, %cst_13 [1] : vector<16x32xf32> to vector<16xf32>
    %21 = vector.shape_cast %20 : vector<16xf32> to vector<16x1xf32>
    %cst_14 = arith.constant 3.200000e+01 : f32
    %22 = vector.broadcast %cst_14 : f32 to vector<16x1xf32>
    %23 = arith.divf %21, %22 : vector<16x1xf32>
    %24 = vector.broadcast %23 : vector<16x1xf32> to vector<16x32xf32>
    %25 = arith.subf %11, %24 : vector<16x32xf32>
    %26 = arith.mulf %25, %25 : vector<16x32xf32>
    %cst_15 = arith.constant dense<0.000000e+00> : vector<16xf32>
    %27 = vector.multi_reduction <add>, %26, %cst_15 [1] : vector<16x32xf32> to vector<16xf32>
    %28 = vector.shape_cast %27 : vector<16xf32> to vector<16x1xf32>
    %cst_16 = arith.constant 3.200000e+01 : f32
    %29 = vector.broadcast %cst_16 : f32 to vector<16x1xf32>
    %30 = arith.divf %28, %29 : vector<16x1xf32>
    %31 = vector.broadcast %23 : vector<16x1xf32> to vector<16x32xf32>
    %32 = arith.subf %11, %31 : vector<16x32xf32>
    %cst_17 = arith.constant 9.99999974E-6 : f32
    %33 = vector.broadcast %cst_17 : f32 to vector<16x1xf32>
    %34 = arith.addf %30, %33 : vector<16x1xf32>
    %35 = math.rsqrt %34 : vector<16x1xf32>
    %36 = vector.broadcast %35 : vector<16x1xf32> to vector<16x32xf32>
    %37 = arith.mulf %32, %36 : vector<16x32xf32>
    %38 = vector.broadcast %17 : vector<1x32xf32> to vector<16x32xf32>
    %39 = arith.mulf %37, %38 : vector<16x32xf32>
    %40 = vector.broadcast %19 : vector<1x32xf32> to vector<16x32xf32>
    %41 = arith.addf %39, %40 : vector<16x32xf32>
    %42 = arith.truncf %41 : vector<16x32xf32> to vector<16x32xbf16>
    %c0_18 = arith.constant 0 : index
    %c0_19 = arith.constant 0 : index
    %c0_20 = arith.constant 0 : index
    %43 = vector.load %arg6[%c0_18, %c0_19, %c0_20] : memref<2x32x96xbf16, #tpu.memory_space<vmem>>, vector<1x32x96xbf16>
    %44 = vector.shape_cast %43 : vector<1x32x96xbf16> to vector<32x96xbf16>
    %cst_21 = arith.constant dense<0.000000e+00> : vector<16x96xf32>
    %45 = tpu.matmul %42, %44, %cst_21 {dimension_numbers = #tpu.dot_dimension_numbers<[1], [0], [0], [1], [0, 0, 1, 1], [], []>} : vector<16x32xbf16>, vector<32x96xbf16>, vector<16x96xf32> -> vector<16x96xf32>
    %c0_22 = arith.constant 0 : index
    %c0_23 = arith.constant 0 : index
    %c0_24 = arith.constant 0 : index
    %46 = vector.load %arg7[%c0_22, %c0_23, %c0_24] : memref<2x1x96xf32, #tpu.memory_space<vmem>>, vector<1x1x96xf32>
    %47 = vector.shape_cast %46 : vector<1x1x96xf32> to vector<1x96xf32>
    %48 = vector.broadcast %47 : vector<1x96xf32> to vector<16x96xf32>
    %49 = arith.addf %45, %48 : vector<16x96xf32>
    %50 = vector.extract_strided_slice %49 {offsets = [0, 0], sizes = [16, 32], strides = [1, 1]} : vector<16x96xf32> to vector<16x32xf32>
    %51 = vector.shape_cast %50 : vector<16x32xf32> to vector<16x2x16xf32>
    %52 = tpu.transpose %51, [1, 0, 2] : vector<16x2x16xf32> -> vector<2x16x16xf32>
    %53 = arith.truncf %52 : vector<2x16x16xf32> to vector<2x16x16xbf16>
    %54 = vector.extract_strided_slice %49 {offsets = [0, 32], sizes = [16, 32], strides = [1, 1]} : vector<16x96xf32> to vector<16x32xf32>
    %55 = vector.shape_cast %54 : vector<16x32xf32> to vector<16x2x16xf32>
    %56 = tpu.transpose %55, [1, 0, 2] : vector<16x2x16xf32> -> vector<2x16x16xf32>
    %57 = arith.truncf %56 : vector<2x16x16xf32> to vector<2x16x16xbf16>
    %58 = vector.extract_strided_slice %49 {offsets = [0, 64], sizes = [16, 32], strides = [1, 1]} : vector<16x96xf32> to vector<16x32xf32>
    %59 = vector.shape_cast %58 : vector<16x32xf32> to vector<16x2x16xf32>
    %60 = tpu.transpose %59, [1, 0, 2] : vector<16x2x16xf32> -> vector<2x16x16xf32>
    %61 = arith.truncf %60 : vector<2x16x16xf32> to vector<2x16x16xbf16>
    "tpu.trace_start"() <{level = 10 : i32, message = "hmd,hnd->hmn"}> : () -> ()
    %cst_25 = arith.constant dense<0.000000e+00> : vector<2x16x16xf32>
    %62 = tpu.matmul %53, %57, %cst_25 {dimension_numbers = #tpu.dot_dimension_numbers<[2], [2], [1], [1], [0, 0, 0, 1, 1, 1], [0], [0]>} : vector<2x16x16xbf16>, vector<2x16x16xbf16>, vector<2x16x16xf32> -> vector<2x16x16xf32>
    "tpu.trace_stop"() : () -> ()
    %63 = arith.addf %62, %15 : vector<2x16x16xf32>
    %cst_26 = arith.constant dense<0xFF800000> : vector<2x16xf32>
    %64 = vector.multi_reduction <maximumf>, %63, %cst_26 [2] : vector<2x16x16xf32> to vector<2x16xf32>
    %65 = vector.shape_cast %64 : vector<2x16xf32> to vector<2x16x1xf32>
    %66 = vector.broadcast %65 : vector<2x16x1xf32> to vector<2x16x16xf32>
    %67 = arith.subf %63, %66 : vector<2x16x16xf32>
    %68 = math.exp %67 : vector<2x16x16xf32>
    %cst_27 = arith.constant dense<0.000000e+00> : vector<2x16xf32>
    %69 = vector.multi_reduction <add>, %68, %cst_27 [2] : vector<2x16x16xf32> to vector<2x16xf32>
    %70 = vector.shape_cast %69 : vector<2x16xf32> to vector<2x16x1xf32>
    %71 = tpu.reciprocal %70 {approx = true} : vector<2x16x1xf32> -> vector<2x16x1xf32>
    %72 = vector.broadcast %71 : vector<2x16x1xf32> to vector<2x16x16xf32>
    %73 = arith.mulf %68, %72 : vector<2x16x16xf32>
    %74 = arith.truncf %73 : vector<2x16x16xf32> to vector<2x16x16xbf16>
    "tpu.trace_start"() <{level = 10 : i32, message = "hmn,hnd->hmd"}> : () -> ()
    %cst_28 = arith.constant dense<0.000000e+00> : vector<2x16x16xf32>
    %75 = tpu.matmul %74, %61, %cst_28 {dimension_numbers = #tpu.dot_dimension_numbers<[2], [1], [1], [2], [0, 0, 0, 1, 1, 2], [0], [0]>} : vector<2x16x16xbf16>, vector<2x16x16xbf16>, vector<2x16x16xf32> -> vector<2x16x16xf32>
    "tpu.trace_stop"() : () -> ()
    %76 = tpu.transpose %75, [1, 0, 2] : vector<2x16x16xf32> -> vector<16x2x16xf32>
    %77 = vector.shape_cast %76 : vector<16x2x16xf32> to vector<16x32xf32>
    %78 = arith.truncf %77 : vector<16x32xf32> to vector<16x32xbf16>
    %c0_29 = arith.constant 0 : index
    %c0_30 = arith.constant 0 : index
    %c0_31 = arith.constant 0 : index
    %79 = vector.load %arg8[%c0_29, %c0_30, %c0_31] : memref<2x32x32xbf16, #tpu.memory_space<vmem>>, vector<1x32x32xbf16>
    %80 = vector.shape_cast %79 : vector<1x32x32xbf16> to vector<32x32xbf16>
    %cst_32 = arith.constant dense<0.000000e+00> : vector<16x32xf32>
    %81 = tpu.matmul %78, %80, %cst_32 {dimension_numbers = #tpu.dot_dimension_numbers<[1], [0], [0], [1], [0, 0, 1, 1], [], []>} : vector<16x32xbf16>, vector<32x32xbf16>, vector<16x32xf32> -> vector<16x32xf32>
    %c0_33 = arith.constant 0 : index
    %c0_34 = arith.constant 0 : index
    %c0_35 = arith.constant 0 : index
    %82 = vector.load %arg9[%c0_33, %c0_34, %c0_35] : memref<2x1x32xf32, #tpu.memory_space<vmem>>, vector<1x1x32xf32>
    %83 = vector.shape_cast %82 : vector<1x1x32xf32> to vector<1x32xf32>
    %84 = vector.broadcast %83 : vector<1x32xf32> to vector<16x32xf32>
    %85 = arith.addf %81, %84 : vector<16x32xf32>
    %86 = arith.addf %11, %85 : vector<16x32xf32>
    %c0_36 = arith.constant 0 : index
    %c0_37 = arith.constant 0 : index
    %c0_38 = arith.constant 0 : index
    %87 = vector.load %arg10[%c0_36, %c0_37, %c0_38] : memref<2x1x32xf32, #tpu.memory_space<vmem>>, vector<1x1x32xf32>
    %88 = vector.shape_cast %87 : vector<1x1x32xf32> to vector<1x32xf32>
    %c0_39 = arith.constant 0 : index
    %c0_40 = arith.constant 0 : index
    %c0_41 = arith.constant 0 : index
    %89 = vector.load %arg11[%c0_39, %c0_40, %c0_41] : memref<2x1x32xf32, #tpu.memory_space<vmem>>, vector<1x1x32xf32>
    %90 = vector.shape_cast %89 : vector<1x1x32xf32> to vector<1x32xf32>
    %cst_42 = arith.constant dense<0.000000e+00> : vector<16xf32>
    %91 = vector.multi_reduction <add>, %86, %cst_42 [1] : vector<16x32xf32> to vector<16xf32>
    %92 = vector.shape_cast %91 : vector<16xf32> to vector<16x1xf32>
    %cst_43 = arith.constant 3.200000e+01 : f32
    %93 = vector.broadcast %cst_43 : f32 to vector<16x1xf32>
    %94 = arith.divf %92, %93 : vector<16x1xf32>
    %95 = vector.broadcast %94 : vector<16x1xf32> to vector<16x32xf32>
    %96 = arith.subf %86, %95 : vector<16x32xf32>
    %97 = arith.mulf %96, %96 : vector<16x32xf32>
    %cst_44 = arith.constant dense<0.000000e+00> : vector<16xf32>
    %98 = vector.multi_reduction <add>, %97, %cst_44 [1] : vector<16x32xf32> to vector<16xf32>
    %99 = vector.shape_cast %98 : vector<16xf32> to vector<16x1xf32>
    %cst_45 = arith.constant 3.200000e+01 : f32
    %100 = vector.broadcast %cst_45 : f32 to vector<16x1xf32>
    %101 = arith.divf %99, %100 : vector<16x1xf32>
    %102 = vector.broadcast %94 : vector<16x1xf32> to vector<16x32xf32>
    %103 = arith.subf %86, %102 : vector<16x32xf32>
    %cst_46 = arith.constant 9.99999974E-6 : f32
    %104 = vector.broadcast %cst_46 : f32 to vector<16x1xf32>
    %105 = arith.addf %101, %104 : vector<16x1xf32>
    %106 = math.rsqrt %105 : vector<16x1xf32>
    %107 = vector.broadcast %106 : vector<16x1xf32> to vector<16x32xf32>
    %108 = arith.mulf %103, %107 : vector<16x32xf32>
    %109 = vector.broadcast %88 : vector<1x32xf32> to vector<16x32xf32>
    %110 = arith.mulf %108, %109 : vector<16x32xf32>
    %111 = vector.broadcast %90 : vector<1x32xf32> to vector<16x32xf32>
    %112 = arith.addf %110, %111 : vector<16x32xf32>
    %113 = arith.truncf %112 : vector<16x32xf32> to vector<16x32xbf16>
    %c0_47 = arith.constant 0 : index
    %c0_48 = arith.constant 0 : index
    %c0_49 = arith.constant 0 : index
    %114 = vector.load %arg12[%c0_47, %c0_48, %c0_49] : memref<2x32x64xbf16, #tpu.memory_space<vmem>>, vector<1x32x64xbf16>
    %115 = vector.shape_cast %114 : vector<1x32x64xbf16> to vector<32x64xbf16>
    %cst_50 = arith.constant dense<0.000000e+00> : vector<16x64xf32>
    %116 = tpu.matmul %113, %115, %cst_50 {dimension_numbers = #tpu.dot_dimension_numbers<[1], [0], [0], [1], [0, 0, 1, 1], [], []>} : vector<16x32xbf16>, vector<32x64xbf16>, vector<16x64xf32> -> vector<16x64xf32>
    %c0_51 = arith.constant 0 : index
    %c0_52 = arith.constant 0 : index
    %c0_53 = arith.constant 0 : index
    %117 = vector.load %arg13[%c0_51, %c0_52, %c0_53] : memref<2x1x64xf32, #tpu.memory_space<vmem>>, vector<1x1x64xf32>
    %118 = vector.shape_cast %117 : vector<1x1x64xf32> to vector<1x64xf32>
    %119 = vector.broadcast %118 : vector<1x64xf32> to vector<16x64xf32>
    %120 = arith.addf %116, %119 : vector<16x64xf32>
    %121 = arith.mulf %120, %120 : vector<16x64xf32>
    %122 = arith.mulf %120, %121 : vector<16x64xf32>
    %cst_54 = arith.constant 4.471500e-02 : f32
    %123 = vector.broadcast %cst_54 : f32 to vector<16x64xf32>
    %124 = arith.mulf %123, %122 : vector<16x64xf32>
    %125 = arith.addf %120, %124 : vector<16x64xf32>
    %cst_55 = arith.constant 0.797884583 : f32
    %126 = vector.broadcast %cst_55 : f32 to vector<16x64xf32>
    %127 = arith.mulf %126, %125 : vector<16x64xf32>
    %128 = math.tanh %127 : vector<16x64xf32>
    %cst_56 = arith.constant 1.000000e+00 : f32
    %129 = vector.broadcast %cst_56 : f32 to vector<16x64xf32>
    %130 = arith.addf %129, %128 : vector<16x64xf32>
    %cst_57 = arith.constant 5.000000e-01 : f32
    %131 = vector.broadcast %cst_57 : f32 to vector<16x64xf32>
    %132 = arith.mulf %131, %130 : vector<16x64xf32>
    %133 = arith.mulf %120, %132 : vector<16x64xf32>
    %134 = arith.truncf %133 : vector<16x64xf32> to vector<16x64xbf16>
    %c0_58 = arith.constant 0 : index
    %c0_59 = arith.constant 0 : index
    %c0_60 = arith.constant 0 : index
    %135 = vector.load %arg14[%c0_58, %c0_59, %c0_60] : memref<2x64x32xbf16, #tpu.memory_space<vmem>>, vector<1x64x32xbf16>
    %136 = vector.shape_cast %135 : vector<1x64x32xbf16> to vector<64x32xbf16>
    %cst_61 = arith.constant dense<0.000000e+00> : vector<16x32xf32>
    %137 = tpu.matmul %134, %136, %cst_61 {dimension_numbers = #tpu.dot_dimension_numbers<[1], [0], [0], [1], [0, 0, 1, 1], [], []>} : vector<16x64xbf16>, vector<64x32xbf16>, vector<16x32xf32> -> vector<16x32xf32>
    %c0_62 = arith.constant 0 : index
    %c0_63 = arith.constant 0 : index
    %c0_64 = arith.constant 0 : index
    %138 = vector.load %arg15[%c0_62, %c0_63, %c0_64] : memref<2x1x32xf32, #tpu.memory_space<vmem>>, vector<1x1x32xf32>
    %139 = vector.shape_cast %138 : vector<1x1x32xf32> to vector<1x32xf32>
    %140 = vector.broadcast %139 : vector<1x32xf32> to vector<16x32xf32>
    %141 = arith.addf %137, %140 : vector<16x32xf32>
    %142 = arith.addf %86, %141 : vector<16x32xf32>
    %c1 = arith.constant 1 : index
    %c0_65 = arith.constant 0 : index
    %c0_66 = arith.constant 0 : index
    %143 = vector.load %arg4[%c1, %c0_65, %c0_66] : memref<2x1x32xf32, #tpu.memory_space<vmem>>, vector<1x1x32xf32>
    %144 = vector.shape_cast %143 : vector<1x1x32xf32> to vector<1x32xf32>
    %c1_67 = arith.constant 1 : index
    %c0_68 = arith.constant 0 : index
    %c0_69 = arith.constant 0 : index
    %145 = vector.load %arg5[%c1_67, %c0_68, %c0_69] : memref<2x1x32xf32, #tpu.memory_space<vmem>>, vector<1x1x32xf32>
    %146 = vector.shape_cast %145 : vector<1x1x32xf32> to vector<1x32xf32>
    %cst_70 = arith.constant dense<0.000000e+00> : vector<16xf32>
    %147 = vector.multi_reduction <add>, %142, %cst_70 [1] : vector<16x32xf32> to vector<16xf32>
    %148 = vector.shape_cast %147 : vector<16xf32> to vector<16x1xf32>
    %cst_71 = arith.constant 3.200000e+01 : f32
    %149 = vector.broadcast %cst_71 : f32 to vector<16x1xf32>
    %150 = arith.divf %148, %149 : vector<16x1xf32>
    %151 = vector.broadcast %150 : vector<16x1xf32> to vector<16x32xf32>
    %152 = arith.subf %142, %151 : vector<16x32xf32>
    %153 = arith.mulf %152, %152 : vector<16x32xf32>
    %cst_72 = arith.constant dense<0.000000e+00> : vector<16xf32>
    %154 = vector.multi_reduction <add>, %153, %cst_72 [1] : vector<16x32xf32> to vector<16xf32>
    %155 = vector.shape_cast %154 : vector<16xf32> to vector<16x1xf32>
    %cst_73 = arith.constant 3.200000e+01 : f32
    %156 = vector.broadcast %cst_73 : f32 to vector<16x1xf32>
    %157 = arith.divf %155, %156 : vector<16x1xf32>
    %158 = vector.broadcast %150 : vector<16x1xf32> to vector<16x32xf32>
    %159 = arith.subf %142, %158 : vector<16x32xf32>
    %cst_74 = arith.constant 9.99999974E-6 : f32
    %160 = vector.broadcast %cst_74 : f32 to vector<16x1xf32>
    %161 = arith.addf %157, %160 : vector<16x1xf32>
    %162 = math.rsqrt %161 : vector<16x1xf32>
    %163 = vector.broadcast %162 : vector<16x1xf32> to vector<16x32xf32>
    %164 = arith.mulf %159, %163 : vector<16x32xf32>
    %165 = vector.broadcast %144 : vector<1x32xf32> to vector<16x32xf32>
    %166 = arith.mulf %164, %165 : vector<16x32xf32>
    %167 = vector.broadcast %146 : vector<1x32xf32> to vector<16x32xf32>
    %168 = arith.addf %166, %167 : vector<16x32xf32>
    %169 = arith.truncf %168 : vector<16x32xf32> to vector<16x32xbf16>
    %c1_75 = arith.constant 1 : index
    %c0_76 = arith.constant 0 : index
    %c0_77 = arith.constant 0 : index
    %170 = vector.load %arg6[%c1_75, %c0_76, %c0_77] : memref<2x32x96xbf16, #tpu.memory_space<vmem>>, vector<1x32x96xbf16>
    %171 = vector.shape_cast %170 : vector<1x32x96xbf16> to vector<32x96xbf16>
    %cst_78 = arith.constant dense<0.000000e+00> : vector<16x96xf32>
    %172 = tpu.matmul %169, %171, %cst_78 {dimension_numbers = #tpu.dot_dimension_numbers<[1], [0], [0], [1], [0, 0, 1, 1], [], []>} : vector<16x32xbf16>, vector<32x96xbf16>, vector<16x96xf32> -> vector<16x96xf32>
    %c1_79 = arith.constant 1 : index
    %c0_80 = arith.constant 0 : index
    %c0_81 = arith.constant 0 : index
    %173 = vector.load %arg7[%c1_79, %c0_80, %c0_81] : memref<2x1x96xf32, #tpu.memory_space<vmem>>, vector<1x1x96xf32>
    %174 = vector.shape_cast %173 : vector<1x1x96xf32> to vector<1x96xf32>
    %175 = vector.broadcast %174 : vector<1x96xf32> to vector<16x96xf32>
    %176 = arith.addf %172, %175 : vector<16x96xf32>
    %177 = vector.extract_strided_slice %176 {offsets = [0, 0], sizes = [16, 32], strides = [1, 1]} : vector<16x96xf32> to vector<16x32xf32>
    %178 = vector.shape_cast %177 : vector<16x32xf32> to vector<16x2x16xf32>
    %179 = tpu.transpose %178, [1, 0, 2] : vector<16x2x16xf32> -> vector<2x16x16xf32>
    %180 = arith.truncf %179 : vector<2x16x16xf32> to vector<2x16x16xbf16>
    %181 = vector.extract_strided_slice %176 {offsets = [0, 32], sizes = [16, 32], strides = [1, 1]} : vector<16x96xf32> to vector<16x32xf32>
    %182 = vector.shape_cast %181 : vector<16x32xf32> to vector<16x2x16xf32>
    %183 = tpu.transpose %182, [1, 0, 2] : vector<16x2x16xf32> -> vector<2x16x16xf32>
    %184 = arith.truncf %183 : vector<2x16x16xf32> to vector<2x16x16xbf16>
    %185 = vector.extract_strided_slice %176 {offsets = [0, 64], sizes = [16, 32], strides = [1, 1]} : vector<16x96xf32> to vector<16x32xf32>
    %186 = vector.shape_cast %185 : vector<16x32xf32> to vector<16x2x16xf32>
    %187 = tpu.transpose %186, [1, 0, 2] : vector<16x2x16xf32> -> vector<2x16x16xf32>
    %188 = arith.truncf %187 : vector<2x16x16xf32> to vector<2x16x16xbf16>
    "tpu.trace_start"() <{level = 10 : i32, message = "hmd,hnd->hmn"}> : () -> ()
    %cst_82 = arith.constant dense<0.000000e+00> : vector<2x16x16xf32>
    %189 = tpu.matmul %180, %184, %cst_82 {dimension_numbers = #tpu.dot_dimension_numbers<[2], [2], [1], [1], [0, 0, 0, 1, 1, 1], [0], [0]>} : vector<2x16x16xbf16>, vector<2x16x16xbf16>, vector<2x16x16xf32> -> vector<2x16x16xf32>
    "tpu.trace_stop"() : () -> ()
    %190 = arith.addf %189, %15 : vector<2x16x16xf32>
    %cst_83 = arith.constant dense<0xFF800000> : vector<2x16xf32>
    %191 = vector.multi_reduction <maximumf>, %190, %cst_83 [2] : vector<2x16x16xf32> to vector<2x16xf32>
    %192 = vector.shape_cast %191 : vector<2x16xf32> to vector<2x16x1xf32>
    %193 = vector.broadcast %192 : vector<2x16x1xf32> to vector<2x16x16xf32>
    %194 = arith.subf %190, %193 : vector<2x16x16xf32>
    %195 = math.exp %194 : vector<2x16x16xf32>
    %cst_84 = arith.constant dense<0.000000e+00> : vector<2x16xf32>
    %196 = vector.multi_reduction <add>, %195, %cst_84 [2] : vector<2x16x16xf32> to vector<2x16xf32>
    %197 = vector.shape_cast %196 : vector<2x16xf32> to vector<2x16x1xf32>
    %198 = tpu.reciprocal %197 {approx = true} : vector<2x16x1xf32> -> vector<2x16x1xf32>
    %199 = vector.broadcast %198 : vector<2x16x1xf32> to vector<2x16x16xf32>
    %200 = arith.mulf %195, %199 : vector<2x16x16xf32>
    %201 = arith.truncf %200 : vector<2x16x16xf32> to vector<2x16x16xbf16>
    "tpu.trace_start"() <{level = 10 : i32, message = "hmn,hnd->hmd"}> : () -> ()
    %cst_85 = arith.constant dense<0.000000e+00> : vector<2x16x16xf32>
    %202 = tpu.matmul %201, %188, %cst_85 {dimension_numbers = #tpu.dot_dimension_numbers<[2], [1], [1], [2], [0, 0, 0, 1, 1, 2], [0], [0]>} : vector<2x16x16xbf16>, vector<2x16x16xbf16>, vector<2x16x16xf32> -> vector<2x16x16xf32>
    "tpu.trace_stop"() : () -> ()
    %203 = tpu.transpose %202, [1, 0, 2] : vector<2x16x16xf32> -> vector<16x2x16xf32>
    %204 = vector.shape_cast %203 : vector<16x2x16xf32> to vector<16x32xf32>
    %205 = arith.truncf %204 : vector<16x32xf32> to vector<16x32xbf16>
    %c1_86 = arith.constant 1 : index
    %c0_87 = arith.constant 0 : index
    %c0_88 = arith.constant 0 : index
    %206 = vector.load %arg8[%c1_86, %c0_87, %c0_88] : memref<2x32x32xbf16, #tpu.memory_space<vmem>>, vector<1x32x32xbf16>
    %207 = vector.shape_cast %206 : vector<1x32x32xbf16> to vector<32x32xbf16>
    %cst_89 = arith.constant dense<0.000000e+00> : vector<16x32xf32>
    %208 = tpu.matmul %205, %207, %cst_89 {dimension_numbers = #tpu.dot_dimension_numbers<[1], [0], [0], [1], [0, 0, 1, 1], [], []>} : vector<16x32xbf16>, vector<32x32xbf16>, vector<16x32xf32> -> vector<16x32xf32>
    %c1_90 = arith.constant 1 : index
    %c0_91 = arith.constant 0 : index
    %c0_92 = arith.constant 0 : index
    %209 = vector.load %arg9[%c1_90, %c0_91, %c0_92] : memref<2x1x32xf32, #tpu.memory_space<vmem>>, vector<1x1x32xf32>
    %210 = vector.shape_cast %209 : vector<1x1x32xf32> to vector<1x32xf32>
    %211 = vector.broadcast %210 : vector<1x32xf32> to vector<16x32xf32>
    %212 = arith.addf %208, %211 : vector<16x32xf32>
    %213 = arith.addf %142, %212 : vector<16x32xf32>
    %c1_93 = arith.constant 1 : index
    %c0_94 = arith.constant 0 : index
    %c0_95 = arith.constant 0 : index
    %214 = vector.load %arg10[%c1_93, %c0_94, %c0_95] : memref<2x1x32xf32, #tpu.memory_space<vmem>>, vector<1x1x32xf32>
    %215 = vector.shape_cast %214 : vector<1x1x32xf32> to vector<1x32xf32>
    %c1_96 = arith.constant 1 : index
    %c0_97 = arith.constant 0 : index
    %c0_98 = arith.constant 0 : index
    %216 = vector.load %arg11[%c1_96, %c0_97, %c0_98] : memref<2x1x32xf32, #tpu.memory_space<vmem>>, vector<1x1x32xf32>
    %217 = vector.shape_cast %216 : vector<1x1x32xf32> to vector<1x32xf32>
    %cst_99 = arith.constant dense<0.000000e+00> : vector<16xf32>
    %218 = vector.multi_reduction <add>, %213, %cst_99 [1] : vector<16x32xf32> to vector<16xf32>
    %219 = vector.shape_cast %218 : vector<16xf32> to vector<16x1xf32>
    %cst_100 = arith.constant 3.200000e+01 : f32
    %220 = vector.broadcast %cst_100 : f32 to vector<16x1xf32>
    %221 = arith.divf %219, %220 : vector<16x1xf32>
    %222 = vector.broadcast %221 : vector<16x1xf32> to vector<16x32xf32>
    %223 = arith.subf %213, %222 : vector<16x32xf32>
    %224 = arith.mulf %223, %223 : vector<16x32xf32>
    %cst_101 = arith.constant dense<0.000000e+00> : vector<16xf32>
    %225 = vector.multi_reduction <add>, %224, %cst_101 [1] : vector<16x32xf32> to vector<16xf32>
    %226 = vector.shape_cast %225 : vector<16xf32> to vector<16x1xf32>
    %cst_102 = arith.constant 3.200000e+01 : f32
    %227 = vector.broadcast %cst_102 : f32 to vector<16x1xf32>
    %228 = arith.divf %226, %227 : vector<16x1xf32>
    %229 = vector.broadcast %221 : vector<16x1xf32> to vector<16x32xf32>
    %230 = arith.subf %213, %229 : vector<16x32xf32>
    %cst_103 = arith.constant 9.99999974E-6 : f32
    %231 = vector.broadcast %cst_103 : f32 to vector<16x1xf32>
    %232 = arith.addf %228, %231 : vector<16x1xf32>
    %233 = math.rsqrt %232 : vector<16x1xf32>
    %234 = vector.broadcast %233 : vector<16x1xf32> to vector<16x32xf32>
    %235 = arith.mulf %230, %234 : vector<16x32xf32>
    %236 = vector.broadcast %215 : vector<1x32xf32> to vector<16x32xf32>
    %237 = arith.mulf %235, %236 : vector<16x32xf32>
    %238 = vector.broadcast %217 : vector<1x32xf32> to vector<16x32xf32>
    %239 = arith.addf %237, %238 : vector<16x32xf32>
    %240 = arith.truncf %239 : vector<16x32xf32> to vector<16x32xbf16>
    %c1_104 = arith.constant 1 : index
    %c0_105 = arith.constant 0 : index
    %c0_106 = arith.constant 0 : index
    %241 = vector.load %arg12[%c1_104, %c0_105, %c0_106] : memref<2x32x64xbf16, #tpu.memory_space<vmem>>, vector<1x32x64xbf16>
    %242 = vector.shape_cast %241 : vector<1x32x64xbf16> to vector<32x64xbf16>
    %cst_107 = arith.constant dense<0.000000e+00> : vector<16x64xf32>
    %243 = tpu.matmul %240, %242, %cst_107 {dimension_numbers = #tpu.dot_dimension_numbers<[1], [0], [0], [1], [0, 0, 1, 1], [], []>} : vector<16x32xbf16>, vector<32x64xbf16>, vector<16x64xf32> -> vector<16x64xf32>
    %c1_108 = arith.constant 1 : index
    %c0_109 = arith.constant 0 : index
    %c0_110 = arith.constant 0 : index
    %244 = vector.load %arg13[%c1_108, %c0_109, %c0_110] : memref<2x1x64xf32, #tpu.memory_space<vmem>>, vector<1x1x64xf32>
    %245 = vector.shape_cast %244 : vector<1x1x64xf32> to vector<1x64xf32>
    %246 = vector.broadcast %245 : vector<1x64xf32> to vector<16x64xf32>
    %247 = arith.addf %243, %246 : vector<16x64xf32>
    %248 = arith.mulf %247, %247 : vector<16x64xf32>
    %249 = arith.mulf %247, %248 : vector<16x64xf32>
    %cst_111 = arith.constant 4.471500e-02 : f32
    %250 = vector.broadcast %cst_111 : f32 to vector<16x64xf32>
    %251 = arith.mulf %250, %249 : vector<16x64xf32>
    %252 = arith.addf %247, %251 : vector<16x64xf32>
    %cst_112 = arith.constant 0.797884583 : f32
    %253 = vector.broadcast %cst_112 : f32 to vector<16x64xf32>
    %254 = arith.mulf %253, %252 : vector<16x64xf32>
    %255 = math.tanh %254 : vector<16x64xf32>
    %cst_113 = arith.constant 1.000000e+00 : f32
    %256 = vector.broadcast %cst_113 : f32 to vector<16x64xf32>
    %257 = arith.addf %256, %255 : vector<16x64xf32>
    %cst_114 = arith.constant 5.000000e-01 : f32
    %258 = vector.broadcast %cst_114 : f32 to vector<16x64xf32>
    %259 = arith.mulf %258, %257 : vector<16x64xf32>
    %260 = arith.mulf %247, %259 : vector<16x64xf32>
    %261 = arith.truncf %260 : vector<16x64xf32> to vector<16x64xbf16>
    %c1_115 = arith.constant 1 : index
    %c0_116 = arith.constant 0 : index
    %c0_117 = arith.constant 0 : index
    %262 = vector.load %arg14[%c1_115, %c0_116, %c0_117] : memref<2x64x32xbf16, #tpu.memory_space<vmem>>, vector<1x64x32xbf16>
    %263 = vector.shape_cast %262 : vector<1x64x32xbf16> to vector<64x32xbf16>
    %cst_118 = arith.constant dense<0.000000e+00> : vector<16x32xf32>
    %264 = tpu.matmul %261, %263, %cst_118 {dimension_numbers = #tpu.dot_dimension_numbers<[1], [0], [0], [1], [0, 0, 1, 1], [], []>} : vector<16x64xbf16>, vector<64x32xbf16>, vector<16x32xf32> -> vector<16x32xf32>
    %c1_119 = arith.constant 1 : index
    %c0_120 = arith.constant 0 : index
    %c0_121 = arith.constant 0 : index
    %265 = vector.load %arg15[%c1_119, %c0_120, %c0_121] : memref<2x1x32xf32, #tpu.memory_space<vmem>>, vector<1x1x32xf32>
    %266 = vector.shape_cast %265 : vector<1x1x32xf32> to vector<1x32xf32>
    %267 = vector.broadcast %266 : vector<1x32xf32> to vector<16x32xf32>
    %268 = arith.addf %264, %267 : vector<16x32xf32>
    %269 = arith.addf %213, %268 : vector<16x32xf32>
    %270 = vector.extract_strided_slice %269 {offsets = [0, 0], sizes = [1, 32], strides = [1, 1]} : vector<16x32xf32> to vector<1x32xf32>
    %271 = vector.extract_strided_slice %269 {offsets = [8, 0], sizes = [1, 32], strides = [1, 1]} : vector<16x32xf32> to vector<1x32xf32>
    %272 = tpu.concatenate %270, %271 in 0 : vector<1x32xf32>, vector<1x32xf32> -> vector<2x32xf32>
    %273 = arith.truncf %272 : vector<2x32xf32> to vector<2x32xbf16>
    %c0_122 = arith.constant 0 : index
    %c0_123 = arith.constant 0 : index
    %274 = vector.load %arg16[%c0_122, %c0_123] : memref<32x128xbf16, #tpu.memory_space<vmem>>, vector<32x128xbf16>
    %cst_124 = arith.constant dense<0.000000e+00> : vector<2x128xf32>
    %275 = tpu.matmul %273, %274, %cst_124 {dimension_numbers = #tpu.dot_dimension_numbers<[1], [0], [0], [1], [0, 0, 1, 1], [], []>} : vector<2x32xbf16>, vector<32x128xbf16>, vector<2x128xf32> -> vector<2x128xf32>
    %c0_125 = arith.constant 0 : index
    %c0_126 = arith.constant 0 : index
    %276 = vector.load %arg17[%c0_125, %c0_126] : memref<1x128xf32, #tpu.memory_space<vmem>>, vector<1x128xf32>
    %277 = vector.broadcast %276 : vector<1x128xf32> to vector<2x128xf32>
    %278 = arith.addf %275, %277 : vector<2x128xf32>
    %c0_127 = arith.constant 0 : index
    %c0_128 = arith.constant 0 : index
    %279 = vector.load %arg18[%c0_127, %c0_128] : memref<2x128xf32, #tpu.memory_space<vmem>>, vector<2x128xf32>
    tpu.vector_store %arg18[%c0_127, %c0_128], %278 {strides = array<i32>} : memref<2x128xf32, #tpu.memory_space<vmem>>, vector<2x128xf32>,
    return
  }
}

</mosaic_0001>

<bundles_post_ra>
// kernel: eq.22
= control target key start
LH: loop header
LB: loop body
LE: loop exit
PB: predicated region body
PF: predicated region fallthrough
CT: control target
= control target key end

     0   :  { %vm8_vm0 = vcmask 39936   ;;  %vm14_vm1 = vcmask 80936   ;;  %s42_s0 = inlined_call_operand.vmem [shape: s32[2,5], index: 0, kind: input, shape index: {}]   ;;  %s43_s1 = inlined_call_operand.vmem [shape: s32[10], index: 1, kind: output, shape index: {}]  }
   0x1   :  { %v5_v0 = vld [vmem:[%s42_s0] sm:$0x3]  ;;  %s25_s0 = smov 5  }
   0x2   :  { %6 = vst [vmem:[#allocation1] sm:$0x3] %v5_v0 }
   0x9   :  { %v11_v1 = vld [vmem:[#allocation1 + $0x1] sm:$0x1]   ;;  %v7_v2 = vld [vmem:[#allocation1] sm:$0x1]  }
   0xa   :  { %12 = vrot.lane.b32.xlu0 %v11_v1, %s25_s0  ;;  %9 = vst.msk [vmem:[#allocation0] sm:$0x1] %vm8_vm0, %v7_v2  }
  0x7c   :  { %v13_v3 = vpop.permute.xlu0 %12  }
  0x7d   :  { %15 = vst.msk [vmem:[#allocation0] sm:$0x1] %vm14_vm1, %v13_v3  }
  0x84   :  { %v20_v4 = vld [vmem:[#allocation0] sm:$0x1] }
  0x85   :  { %23 = vst [vmem:[%s43_s1] sm:$0x1] %v20_v4 }

// kernel: eq.15
= control target key start
LH: loop header
LB: loop body
LE: loop exit
PB: predicated region body
PF: predicated region fallthrough
CT: control target
= control target key end

     0   :  { %vm8_vm0 = vcmask 64512   ;;  %vm14_vm1 = vcmask 130112   ;;  %s42_s0 = inlined_call_operand.vmem [shape: s32[2,8], index: 0, kind: input, shape index: {}]   ;;  %s43_s1 = inlined_call_operand.vmem [shape: s32[16], index: 1, kind: output, shape index: {}]  }
   0x1   :  { %v5_v0 = vld [vmem:[%s42_s0] sm:$0x3]  ;;  %s25_s0 = smov 8  }
   0x2   :  { %6 = vst [vmem:[#allocation1] sm:$0x3] %v5_v0 }
   0x9   :  { %v11_v1 = vld [vmem:[#allocation1 + $0x1] sm:$0x1]   ;;  %v7_v2 = vld [vmem:[#allocation1] sm:$0x1]  }
   0xa   :  { %12 = vrot.lane.b32.xlu0 %v11_v1, %s25_s0  ;;  %9 = vst.msk [vmem:[#allocation0] sm:$0x1] %vm8_vm0, %v7_v2  }
  0x7c   :  { %v13_v3 = vpop.permute.xlu0 %12  }
  0x7d   :  { %15 = vst.msk [vmem:[#allocation0] sm:$0x1] %vm14_vm1, %v13_v3  }
  0x84   :  { %v20_v4 = vld [vmem:[#allocation0] sm:$0x1] }
  0x85   :  { %23 = vst [vmem:[%s43_s1] sm:$0x1] %v20_v4 }

// kernel: multilingual_clip_forward.2
= control target key start
LH: loop header
LB: loop body
LE: loop exit
PB: predicated region body
PF: predicated region fallthrough
CT: control target
= control target key end

     0   :  { %s4730_s0 = inlined_call_operand.vmem [shape: s32[16,1], index: 0, kind: input, shape index: {}]   ;;  %s4731_s1 = inlined_call_operand.vmem [shape: f32[16,16], index: 1, kind: input, shape index: {}]   ;;  %s4732_s2 = inlined_call_operand.vmem [shape: bf16[64,32], index: 2, kind: input, shape index: {}]   ;;  %s4733_s3 = inlined_call_operand.vmem [shape: f32[8,32], index: 3, kind: input, shape index: {}]   ;;  %s4734_s4 = inlined_call_operand.vmem [shape: f32[2,1,32], index: 4, kind: input, shape index: {}]   ;;  %s4735_s5 = inlined_call_operand.vmem [shape: f32[2,1,32], index: 5, kind: input, shape index: {}]   ;;  %s4736_s6 = inlined_call_operand.vmem [shape: bf16[2,32,96], index: 6, kind: input, shape index: {}]   ;;  %s4737_s7 = inlined_call_operand.vmem [shape: f32[2,1,96], index: 7, kind: input, shape index: {}]   ;;  %s4738_s8 = inlined_call_operand.vmem [shape: bf16[2,32,32], index: 8, kind: input, shape index: {}]   ;;  %s4739_s9 = inlined_call_operand.vmem [shape: f32[2,1,32], index: 9, kind: input, shape index: {}]   ;;  %s4740_s10 = inlined_call_operand.vmem [shape: f32[2,1,32], index: 10, kind: input, shape index: {}]   ;;  %s4741_s11 = inlined_call_operand.vmem [shape: f32[2,1,32], index: 11, kind: input, shape index: {}]   ;;  %s4742_s12 = inlined_call_operand.vmem [shape: bf16[2,32,64], index: 12, kind: input, shape index: {}]   ;;  %s4743_s13 = inlined_call_operand.vmem [shape: f32[2,1,64], index: 13, kind: input, shape index: {}]   ;;  %s4744_s14 = inlined_call_operand.vmem [shape: bf16[2,64,32], index: 14, kind: input, shape index: {}]   ;;  %s4745_s15 = inlined_call_operand.vmem [shape: f32[2,1,32], index: 15, kind: input, shape index: {}]   ;;  %s4746_s16 = inlined_call_operand.vmem [shape: bf16[32,128], index: 16, kind: input, shape index: {}]   ;;  %s4747_s17 = inlined_call_operand.vmem [shape: f32[1,128], index: 17, kind: input, shape index: {}]   ;;  %s4748_s18 = inlined_call_operand.hbm [shape: f32[2,128], index: 18, kind: output, shape index: {}]  }
   0x1   :  { %4752 = sst [smem:[#allocation5_spill]] %s4730_s0 }
   0x2   :  { %4753 = sst [smem:[#allocation6_spill]] %s4731_s1 }
   0x3   :  { %4754 = sst [smem:[#allocation7_spill]] %s4732_s2 }
   0x4   :  { %s4755_s29 = sld [smem:[#allocation5_spill]]  ;;  %v3906_v1 = vmov 0   ;;  %v3907_v2 = vmov 0.0   ;;  %vm3908_vm0 = vmmov 0  }
   0x5   :  { %3789 = vset.pattern.permute.xlu0 %v3906_v1  ;;  %3639 = vmatprep.subr.bf16.mxu0 %v3907_v2  ;;  %s4756_s19 = sld [smem:[#allocation7_spill]] }
   0x6   :  { %3651 = vmatprep.subr.bf16.mxu1 %v3907_v2  ;;  %3647 = vmatprep.mubr.msk.bf16.mxu0 %vm3908_vm0, %v3907_v2 }
   0x7   :  { %3655 = vmatprep.mubr.msk.bf16.mxu1 %vm3908_vm0, %v3907_v2 }
   0xa   :  { %v61_v0 = vld [vmem:[%s4755_s29] sm:$0xff]  ;;  %v62_v4 = vld [vmem:[%s4755_s29 + $0x8] sm:$0xff] }
   0xb   :  { %v3800_v3 = vld [vmem:[%s4756_s19 + $0x18] sm:$0xff]   ;;  %66 = vperm.xlu0 %3789, %v61_v0   ;;  %v3801_v5 = vld [vmem:[%s4756_s19 + $0x10] sm:$0xff]   ;;  %v3802_v6 = vld [vmem:[%s4756_s19 + $0x8] sm:$0xff]  }
   0xc   :  { %3640 = vmatpush3.bf16.msra.mxu0 %v3800_v3  ;;  %v3803_v7 = vld [vmem:[%s4756_s19] sm:$0xff]  }
   0xd   :  { %3641 = vmatprep.subr.bf16.mxu0 %v3907_v2 }
   0xf   :  { %69 = vperm.xlu0 %3789, %v62_v4  }
  0x10   :  { %3642 = vmatpush3.bf16.msra.mxu0 %v3801_v5 }
  0x11   :  { %3643 = vmatprep.subr.bf16.mxu0 %v3907_v2 }
  0x14   :  { %3644 = vmatpush3.bf16.msra.mxu0 %v3802_v6 }
  0x15   :  { %3645 = vmatprep.subr.bf16.mxu0 %v3907_v2 }
  0x18   :  { %3646 = vmatpush3.bf16.msra.mxu0 %v3803_v7 }
  0x19   :  { %3665 = vmatprep.subr.bf16.mxu0 %v3907_v2 }
  0x1a   :  { %23 = vsyncpa [#allocation3], 0  ;;  %v63_v8 = vlaneseq  ;;  %vm111_vm3 = vcmask 523264   ;;  %v86_v15 = vld [vmem:[%s4733_s3] sm:$0xff]  ;;  %vm160_vm4 = vcmask 261120   ;;  %v3804_v34 = vld [vmem:[%s4736_s6 + $0x8] sm:$0xff]  }
  0x1b   :  { %3652 = vmatpush3.bf16.msra.mxu1 %v3804_v34  ;;  %v3805_v35 = vld [vmem:[%s4736_s6] sm:$0xff]   ;;  %s3909_s2 = smov 112   ;;  %s3910_s23 = smov 96   ;;  %v3911_v62 = vmov 1983009808   ;;  %vm1006_vm5 = vcmask 130048  }
  0x1c   :  { %v64_v9 = vand.u32 127, %v63_v8  ;;  %3653 = vmatprep.subr.bf16.mxu1 %v3907_v2  ;;  %v3471_v44 = vld [vmem:[%s4734_s4] ss:$0 sm:$0xff]  ;;  %v282_v63 = vunpack.c.l.s4 %v3911_v62  ;;  %v285_v1 = vshrl.u32 %v63_v8, 7  ;;  %v3912_v5 = vmov 1934713408  }
  0x1d   :  { %v3472_v48 = vld [vmem:[%s4735_s5] ss:$0 sm:$0xff]  ;;  %v313_v6 = vunpack.c.l.s4 %v3912_v5  ;;  %s4757_s26 = sld [smem:[#allocation6_spill]]  ;;  %s3913_s28 = smov 64   ;;  %vm3380_vm6 = vcmask 1040384  }
  0x1e   :  { %v3473_v53 = vld [vmem:[%s4737_s7] ss:$0 sm:$0xff]  ;;  %v283_v0 = vunpack.c.0.s8 %v282_v63  ;;  %s3914_s1 = smov 16  }
  0x1f   :  { %3654 = vmatpush3.bf16.msra.mxu1 %v3805_v35 }
  0x20   :  { %3659 = vmatprep.subr.bf16.mxu1 %v3907_v2  ;;  %v4103_v4 = vsub.s32 %v283_v0, %v285_v1 }
  0x86   :  { %v67_v10 = vpop.permute.xlu0 %66 }
  0x87   :  { %vm71_vm1 = vcmp.eq.s32.totalorder %v64_v9, %v67_v10  ;;  %v314_v10 = vunpack.c.0.s8 %v313_v6 }
  0x88   :  { %v3464_v12 = vsel %vm71_vm1, 1.0, %v3907_v2 }
  0x8a   :  { %v70_v11 = vpop.permute.xlu0 %69 }
  0x8b   :  { %vm72_vm2 = vcmp.eq.s32.totalorder %v64_v9, %v70_v11 }
  0x8c   :  { %v3465_v13 = vsel %vm72_vm2, 1.0, %v3907_v2 }
  0x8d   :  { %v77_v14 = vpack.c.bf16 %v3465_v13, %v3464_v12 }
  0x8f   :  { %3648 = vmatmul.mubr.msk.bf16.vlgmr.msra.gmra.mxu0 %vm111_vm3, %v77_v14 }
  0x90   :  { %3667 = vmatprep.mubr.msk.bf16.mxu0 %vm3908_vm0, %v3907_v2 }
 0x14f   :  { %v149_v16 = vpop.f32.mrf.mxu0 }
 0x150   :  { %v4048_v17 = vadd.f32 %v149_v16, %v86_v15 }
 0x151   :  { %v3649_v18 = vpop.f32.mrf.mxu0 }
 0x152   :  { %v161_v19 = vsel %vm160_vm4, %v4048_v17, 0.0  ;;  %v4115_v18 = vsub.s32 %v314_v10, %v285_v1 }
 0x153   :  { %162 = vadd.xlane.f32.xlu1 %v161_v19  ;;  %v152_v20 = vpop.f32.mrf.mxu0 }
 0x154   :  { %v4052_v21 = vadd.f32 %v152_v20, %v86_v15 }
 0x155   :  { %v3650_v22 = vpop.f32.mrf.mxu0 }
 0x156   :  { %v164_v23 = vsel %vm160_vm4, %v4052_v21, 0.0 }
 0x157   :  { %165 = vadd.xlane.f32.xlu1 %v164_v23 }
 0x1dc   :  { %v163_v24 = vpop.xlane.xlu1 %162 }
 0x1dd   :  { %v168_v25 = vmul.f32 0.03125, %v163_v24 }
 0x1df   :  { %v170_v26 = vsub.f32 %v4048_v17, %v168_v25 }
 0x1e0   :  { %v166_v27 = vpop.xlane.xlu1 %165 }
 0x1e1   :  { %v169_v28 = vmul.f32 0.03125, %v166_v27  ;;  %v172_v29 = vmul.f32 %v170_v26, %v170_v26 }
 0x1e3   :  { %v171_v30 = vsub.f32 %v4052_v21, %v169_v28  ;;  %v174_v31 = vsel %vm160_vm4, %v172_v29, 0.0 }
 0x1e4   :  { %175 = vadd.xlane.f32.xlu0 %v174_v31 }
 0x1e5   :  { %v173_v32 = vmul.f32 %v171_v30, %v171_v30 }
 0x1e7   :  { %v177_v33 = vsel %vm160_vm4, %v173_v32, 0.0 }
 0x1e8   :  { %178 = vadd.xlane.f32.xlu1 %v177_v33 }
 0x26d   :  { %v176_v36 = vpop.xlane.xlu0 %175 }
 0x26e   :  { %v180_v37 = vmul.f32 0.03125, %v176_v36 }
 0x270   :  { %v182_v38 = vadd.f32 1e-05, %v180_v37 }
 0x271   :  { %v179_v39 = vpop.xlane.xlu1 %178 }
 0x272   :  { %3826 = vrsqrt.f32 %v182_v38  ;;  %v181_v40 = vmul.f32 0.03125, %v179_v39 }
 0x274   :  { %v183_v41 = vadd.f32 1e-05, %v181_v40 }
 0x276   :  { %3828 = vrsqrt.f32 %v183_v41 }
 0x27f   :  { %v3827_v42 = vpop.eup %3826 }
 0x280   :  { %v186_v43 = vmul.f32 %v3827_v42, %v170_v26 }
 0x282   :  { %v194_v47 = vmul.f32 %v3471_v44, %v186_v43 }
 0x283   :  { %v3829_v45 = vpop.eup %3828 }
 0x284   :  { %v187_v46 = vmul.f32 %v3829_v45, %v171_v30  ;;  %v202_v50 = vadd.f32 %v3472_v48, %v194_v47 }
 0x286   :  { %v195_v49 = vmul.f32 %v3471_v44, %v187_v46 }
 0x288   :  { %v203_v51 = vadd.f32 %v3472_v48, %v195_v49 }
 0x28a   :  { %v204_v52 = vpack.c.bf16 %v203_v51, %v202_v50 }
 0x28c   :  { %3656 = vmatmul.mubr.msk.bf16.vlgmr.msra.gmra.mxu1 %vm160_vm4, %v204_v52 }
 0x28d   :  { %3661 = vmatprep.mubr.msk.bf16.mxu1 %vm3908_vm0, %v3907_v2 }
 0x34c   :  { %v265_v54 = vpop.f32.mrf.mxu1 }
 0x34d   :  { %v4080_v55 = vadd.f32 %v3473_v53, %v265_v54 }
 0x34e   :  { %v3657_v56 = vpop.f32.mrf.mxu1 }
 0x34f   :  { %274 = vrot.lane.b32.xlu1 %v4080_v55, %s3909_s2  ;;  %v280_v7 = vcombine.high %v4080_v55, %v3907_v2  ;;  %v287_v19 = vrot.slane %v4080_v55, %v4103_v4 }
 0x350   :  { %v268_v57 = vpop.f32.mrf.mxu1 }
 0x351   :  { %v4084_v58 = vadd.f32 %v3473_v53, %v268_v57  ;;  %v294_v11 = vrot.slane %v280_v7, %v4103_v4 }
 0x352   :  { %v3658_v59 = vpop.f32.mrf.mxu1 }
 0x353   :  { %276 = vrot.lane.b32.xlu1 %v4084_v58, %s3909_s2  ;;  %v346_v8 = vcombine.high %v4084_v58, %v3907_v2  ;;  %v353_v23 = vrot.slane %v4084_v58, %v4103_v4 }
 0x355   :  { %v360_v24 = vrot.slane %v346_v8, %v4103_v4 }
 0x357   :  { %514 = vrot.lane.b32.xlu1 %v4080_v55, %s3910_s23 }
 0x35b   :  { %516 = vrot.lane.b32.xlu1 %v4084_v58, %s3910_s23 }
 0x3c1   :  { %v4092_v60 = vpop.permute.xlu1 %274 }
 0x3c2   :  { %518 = vrot.lane.b32.xlu0 %v4092_v60, %s3910_s23  ;;  %v295_v3 = vcombine.high %v4092_v60, %v3907_v2  ;;  %v302_v13 = vrot.slane %v4092_v60, %v4103_v4 }
 0x3c4   :  { %v309_v9 = vrot.slane %v295_v3, %v4103_v4  ;;  %v310_v25 = vcombine.low %v287_v19, %v302_v13  ;;  %v311_v26 = vcombine.high %v287_v19, %v302_v13 }
 0x3c5   :  { %v4096_v61 = vpop.permute.xlu1 %276 }
 0x3c6   :  { %520 = vrot.lane.b32.xlu1 %v4096_v61, %s3910_s23  ;;  %v361_v12 = vcombine.high %v4096_v61, %v3907_v2  ;;  %v326_v14 = vcombine.low %v294_v11, %v309_v9  ;;  %v327_v15 = vcombine.high %v294_v11, %v309_v9  ;;  %v368_v20 = vrot.slane %v4096_v61, %v4103_v4 }
 0x3c7   :  { %v4136_v38 = vrot.slane %v310_v25, %v4115_v18  ;;  %v4139_v39 = vrot.slane %v311_v26, %v4115_v18 }
 0x3c8   :  { %v375_v22 = vrot.slane %v361_v12, %v4103_v4  ;;  %v4126_v27 = vrot.slane %v326_v14, %v4115_v18  ;;  %v4129_v28 = vrot.slane %v327_v15, %v4115_v18  ;;  %v376_v30 = vcombine.low %v353_v23, %v368_v20 }
 0x3c9   :  { %v515_v16 = vpop.permute.xlu1 %514  ;;  %v377_v41 = vcombine.high %v353_v23, %v368_v20 }
 0x3ca   :  { %v526_v29 = vcombine.high %v515_v16, %v3907_v2  ;;  %v392_v31 = vcombine.low %v360_v24, %v375_v22  ;;  %v393_v32 = vcombine.high %v360_v24, %v375_v22  ;;  %v533_v35 = vrot.slane %v515_v16, %v4103_v4 }
 0x3cb   :  { %v428_v40 = vcombine.low %v4126_v27, %v4129_v28  ;;  %v384_v46 = vrot.slane %v376_v30, %v4115_v18  ;;  %v391_v56 = vrot.slane %v377_v41, %v4115_v18  ;;  %v3478_v30 = vcombine.high %v4126_v27, %v4129_v28 }
 0x3cc   :  { %v540_v42 = vrot.slane %v526_v29, %v4103_v4  ;;  %v400_v47 = vrot.slane %v392_v31, %v4115_v18  ;;  %v407_v48 = vrot.slane %v393_v32, %v4115_v18  ;;  %v412_v41 = vcombine.low %v4136_v38, %v4139_v39 }
 0x3cd   :  { %v517_v33 = vpop.permute.xlu1 %516  ;;  %v462_v31 = vcombine.low %v384_v46, %v391_v56  ;;  %v3479_v32 = vcombine.high %v384_v46, %v391_v56 }
 0x3ce   :  { %v592_v49 = vcombine.high %v517_v33, %v3907_v2  ;;  %v599_v57 = vrot.slane %v517_v33, %v4103_v4  ;;  %v478_v10 = vcombine.low %v400_v47, %v407_v48  ;;  %v3480_v11 = vcombine.high %v400_v47, %v407_v48 }
 0x3cf   :  { %v435_v47 = vrot.slane %v428_v40, %v4103_v4  ;;  %v443_v48 = vrot.slane %v3478_v30, %v4103_v4  ;;  %v157_v30 = vld [vmem:[%s4757_s26 + $0x8] sm:$0xff] }
 0x3d0   :  { %v606_v5 = vrot.slane %v592_v49, %v4103_v4  ;;  %v469_v49 = vrot.slane %v462_v31, %v4103_v4 }
 0x434   :  { %v519_v34 = vpop.permute.xlu0 %518 }
 0x435   :  { %v541_v36 = vcombine.high %v519_v34, %v3907_v2  ;;  %v548_v37 = vrot.slane %v519_v34, %v4103_v4 }
 0x437   :  { %v555_v43 = vrot.slane %v541_v36, %v4103_v4  ;;  %v556_v44 = vcombine.low %v533_v35, %v548_v37  ;;  %v557_v45 = vcombine.high %v533_v35, %v548_v37 }
 0x438   :  { %v521_v50 = vpop.permute.xlu1 %520 }
 0x439   :  { %v564_v51 = vrot.slane %v556_v44, %v4115_v18  ;;  %v571_v52 = vrot.slane %v557_v45, %v4115_v18  ;;  %v572_v53 = vcombine.low %v540_v42, %v555_v43  ;;  %v573_v54 = vcombine.high %v540_v42, %v555_v43 }
 0x43a   :  { %v607_v59 = vcombine.high %v521_v50, %v3907_v2  ;;  %v614_v62 = vrot.slane %v521_v50, %v4103_v4  ;;  %v3477_v42 = vcombine.high %v4136_v38, %v4139_v39  ;;  %v485_v43 = vrot.slane %v478_v10, %v4103_v4 }
 0x43b   :  { %v580_v63 = vrot.slane %v572_v53, %v4115_v18  ;;  %v587_v0 = vrot.slane %v573_v54, %v4115_v18  ;;  %v658_v1 = vcombine.low %v564_v51, %v571_v52  ;;  %v3481_v3 = vcombine.high %v564_v51, %v571_v52 }
 0x43c   :  { %v621_v6 = vrot.slane %v607_v59, %v4103_v4  ;;  %v622_v7 = vcombine.low %v599_v57, %v614_v62  ;;  %v623_v9 = vcombine.high %v599_v57, %v614_v62  ;;  %v493_v44 = vrot.slane %v3480_v11, %v4103_v4 }
 0x43d   :  { %v674_v12 = vcombine.low %v580_v63, %v587_v0  ;;  %v3482_v8 = vcombine.high %v580_v63, %v587_v0  ;;  %v665_v19 = vrot.slane %v658_v1, %v4103_v4  ;;  %v673_v20 = vrot.slane %v3481_v3, %v4103_v4 }
 0x43e   :  { %v630_v13 = vrot.slane %v622_v7, %v4115_v18  ;;  %v637_v14 = vrot.slane %v623_v9, %v4115_v18  ;;  %v638_v15 = vcombine.low %v606_v5, %v621_v6  ;;  %v639_v16 = vcombine.high %v606_v5, %v621_v6 }
 0x43f   :  { %v681_v22 = vrot.slane %v674_v12, %v4103_v4  ;;  %v689_v23 = vrot.slane %v3482_v8, %v4103_v4  ;;  %v690_v45 = vcombine.low %v665_v19, %v673_v20  ;;  %v477_v50 = vrot.slane %v3479_v32, %v4103_v4 }
 0x440   :  { %v646_v24 = vrot.slane %v638_v15, %v4115_v18  ;;  %v653_v25 = vrot.slane %v639_v16, %v4115_v18  ;;  %v708_v26 = vcombine.low %v630_v13, %v637_v14  ;;  %v3483_v29 = vcombine.high %v630_v13, %v637_v14 }
 0x441   :  { %v698_v33 = vcombine.low %v681_v22, %v689_v23  ;;  %v419_v51 = vrot.slane %v412_v41, %v4103_v4  ;;  %v427_v52 = vrot.slane %v3477_v42, %v4103_v4  ;;  %v502_v53 = vcombine.low %v485_v43, %v493_v44  ;;  %v156_v22 = vld [vmem:[%s4757_s26] sm:$0xff] }
 0x442   :  { %v715_v34 = vrot.slane %v708_v26, %v4103_v4  ;;  %v723_v35 = vrot.slane %v3483_v29, %v4103_v4  ;;  %v724_v36 = vcombine.low %v646_v24, %v653_v25  ;;  %v3484_v37 = vcombine.high %v646_v24, %v653_v25 }
 0x443   :  { %v705_v38 = vrot.slane %v698_v33, %v4115_v18  ;;  %v697_v54 = vrot.slane %v690_v45, %v4115_v18  ;;  %v452_v57 = vcombine.low %v435_v47, %v443_v48  ;;  %v494_v59 = vcombine.low %v469_v49, %v477_v50 }
 0x444   :  { %v731_v27 = vrot.slane %v724_v36, %v4103_v4  ;;  %v739_v28 = vrot.slane %v3484_v37, %v4103_v4  ;;  %v740_v46 = vcombine.low %v715_v34, %v723_v35  ;;  %v444_v3 = vcombine.low %v419_v51, %v427_v52 }
 0x445   :  { %v706_v62 = vcombine.low %v697_v54, %v705_v38  ;;  %v707_v0 = vcombine.high %v697_v54, %v705_v38  ;;  %v509_v7 = vrot.slane %v502_v53, %v4115_v18  ;;  %v459_v11 = vrot.slane %v452_v57, %v4115_v18 }
 0x446   :  { %v748_v39 = vcombine.low %v731_v27, %v739_v28  ;;  %v747_v56 = vrot.slane %v740_v46, %v4115_v18  ;;  %v501_v12 = vrot.slane %v494_v59, %v4115_v18  ;;  %v451_v8 = vrot.slane %v444_v3, %v4115_v18 }
 0x448   :  { %v755_v40 = vrot.slane %v748_v39, %v4115_v18  ;;  %v510_v13 = vcombine.low %v501_v12, %v509_v7  ;;  %v511_v14 = vcombine.high %v501_v12, %v509_v7  ;;  %v460_v15 = vcombine.low %v451_v8, %v459_v11 }
 0x449   :  { %v461_v16 = vcombine.high %v451_v8, %v459_v11 }
 0x44a   :  { %v756_v63 = vcombine.low %v747_v56, %v755_v40  ;;  %v757_v1 = vcombine.high %v747_v56, %v755_v40  ;;  %v512_v19 = vpack.c.bf16 %v510_v13, %v460_v15 }
 0x44b   :  { %v513_v20 = vpack.c.bf16 %v511_v14, %v461_v16 }
 0x44c   :  { %v758_v5 = vpack.c.bf16 %v756_v63, %v706_v62  ;;  %v759_v6 = vpack.c.bf16 %v757_v1, %v707_v0 }
 0x44e   :  { %v1011_v9 = vsel %vm1006_vm5, %v758_v5, 0  ;;  %v1058_v10 = vsel %vm1006_vm5, %v759_v6, 0 }
 0x44f   :  { %3660 = vmatpush3.bf16.xpose.msra.mxu1 %v1011_v9  ;;  %3666 = vmatpush3.bf16.xpose.msra.mxu0 %v1058_v10 }
 0x450   :  { %3671 = vmatprep.subr.bf16.mxu1 %v3907_v2  ;;  %3677 = vmatprep.subr.bf16.mxu0 %v3907_v2 }
 0x456   :  { %3662 = vmatmul.mubr.msk.bf16.vlgmr.msra.gmra.mxu1 %vm1006_vm5, %v512_v19  ;;  %3668 = vmatmul.mubr.msk.bf16.vlgmr.msra.gmra.mxu0 %vm1006_vm5, %v513_v20 }
 0x457   :  { %3673 = vmatprep.mubr.msk.bf16.mxu1 %vm3908_vm0, %v3907_v2  ;;  %3679 = vmatprep.mubr.msk.bf16.mxu0 %vm3908_vm0, %v3907_v2 }
 0x516   :  { %v1047_v23 = vpop.f32.mrf.mxu1  ;;  %v1094_v24 = vpop.f32.mrf.mxu0 }
 0x517   :  { %v1048_v25 = vadd.f32 %v1047_v23, %v156_v22  ;;  %v1095_v31 = vadd.f32 %v1094_v24, %v156_v22 }
 0x518   :  { %v3663_v26 = vpop.f32.mrf.mxu1  ;;  %v3669_v29 = vpop.f32.mrf.mxu0 }
 0x519   :  { %v1101_v32 = vsel %vm1006_vm5, %v1048_v25, -inf  ;;  %v1107_v43 = vsel %vm1006_vm5, %v1095_v31, -inf }
 0x51a   :  { %1102 = vmax.xlane.f32.xlu1 %v1101_v32  ;;  %v1050_v33 = vpop.f32.mrf.mxu1  ;;  %v1097_v34 = vpop.f32.mrf.mxu0 }
 0x51b   :  { %v1051_v35 = vadd.f32 %v1050_v33, %v157_v30  ;;  %v1098_v41 = vadd.f32 %v1097_v34, %v157_v30 }
 0x51c   :  { %v3664_v36 = vpop.f32.mrf.mxu1  ;;  %v3670_v37 = vpop.f32.mrf.mxu0 }
 0x51d   :  { %v1104_v42 = vsel %vm1006_vm5, %v1051_v35, -inf  ;;  %v1110_v44 = vsel %vm1006_vm5, %v1098_v41, -inf }
 0x51e   :  { %1105 = vmax.xlane.f32.xlu0 %v1104_v42  ;;  %1108 = vmax.xlane.f32.xlu1 %v1107_v43 }
 0x522   :  { %1111 = vmax.xlane.f32.xlu1 %v1110_v44 }
 0x533   :  { %760 = vrot.lane.b32.xlu1 %v4080_v55, %s3913_s28 }
 0x5a3   :  { %v1103_v27 = vpop.xlane.xlu1 %1102 }
 0x5a4   :  { %v1113_v28 = vsub.f32 %v1048_v25, %v1103_v27 }
 0x5a6   :  { %v1117_v45 = vmul.f32 1.442695, %v1113_v28 }
 0x5a7   :  { %v1106_v46 = vpop.xlane.xlu0 %1105  ;;  %v1109_v47 = vpop.xlane.xlu1 %1108 }
 0x5a8   :  { %3830 = vpow2.f32 %v1117_v45  ;;  %v1114_v48 = vsub.f32 %v1051_v35, %v1106_v46  ;;  %v1115_v49 = vsub.f32 %v1095_v31, %v1109_v47 }
 0x5aa   :  { %v1119_v50 = vmul.f32 1.442695, %v1114_v48  ;;  %v1121_v38 = vmul.f32 1.442695, %v1115_v49 }
 0x5ab   :  { %v1112_v39 = vpop.xlane.xlu1 %1111 }
 0x5ac   :  { %3832 = vpow2.f32 %v1119_v50  ;;  %v1116_v51 = vsub.f32 %v1098_v41, %v1112_v39 }
 0x5ad   :  { %3834 = vpow2.f32 %v1121_v38 }
 0x5ae   :  { %v1123_v52 = vmul.f32 1.442695, %v1116_v51 }
 0x5af   :  { %v761_v63 = vpop.permute.xlu1 %760 }
 0x5b0   :  { %3836 = vpow2.f32 %v1123_v52  ;;  %v772_v5 = vcombine.high %v761_v63, %v3907_v2  ;;  %v779_v9 = vrot.slane %v761_v63, %v4103_v4 }
 0x5b2   :  { %v786_v11 = vrot.slane %v772_v5, %v4103_v4 }
 0x5b5   :  { %v4215_v53 = vpop.eup %3830 }
 0x5b6   :  { %v1125_v55 = vsel %vm1006_vm5, %v4215_v53, 0.0 }
 0x5b7   :  { %1126 = vadd.xlane.f32.xlu1 %v1125_v55 }
 0x5b9   :  { %v4219_v54 = vpop.eup %3832 }
 0x5ba   :  { %v4221_v56 = vpop.eup %3834  ;;  %v1128_v40 = vsel %vm1006_vm5, %v4219_v54, 0.0 }
 0x5bb   :  { %1129 = vadd.xlane.f32.xlu0 %v1128_v40  ;;  %v1131_v57 = vsel %vm1006_vm5, %v4221_v56, 0.0 }
 0x5bc   :  { %1132 = vadd.xlane.f32.xlu1 %v1131_v57 }
 0x5bd   :  { %v4227_v59 = vpop.eup %3836 }
 0x5be   :  { %v1134_v62 = vsel %vm1006_vm5, %v4227_v59, 0.0 }
 0x5bf   :  { %1135 = vadd.xlane.f32.xlu0 %v1134_v62 }
 0x5cd   :  { %764 = vrot.lane.b32.xlu1 %v4092_v60, %s3913_s28 }
 0x5d1   :  { %766 = vrot.lane.b32.xlu1 %v4096_v61, %s3913_s28 }
 0x5d5   :  { %762 = vrot.lane.b32.xlu0 %v4084_v58, %s3913_s28 }
 0x640   :  { %v1127_v0 = vpop.xlane.xlu1 %1126 }
 0x644   :  { %v1130_v1 = vpop.xlane.xlu0 %1129 }
 0x645   :  { %v1133_v3 = vpop.xlane.xlu1 %1132  ;;  %3838 = vrcp.f32 %v1130_v1 }
 0x648   :  { %v1136_v6 = vpop.xlane.xlu0 %1135 }
 0x649   :  { %v765_v7 = vpop.permute.xlu1 %764  ;;  %3840 = vrcp.f32 %v1136_v6 }
 0x64a   :  { %v787_v10 = vcombine.high %v765_v7, %v3907_v2  ;;  %v794_v60 = vrot.slane %v765_v7, %v4103_v4  ;;  %3842 = vrcp.f32 %v1127_v0 }
 0x64b   :  { %3844 = vrcp.f32 %v1133_v3 }
 0x64c   :  { %v801_v61 = vrot.slane %v787_v10, %v4103_v4  ;;  %v802_v12 = vcombine.low %v779_v9, %v794_v60  ;;  %v803_v58 = vcombine.high %v779_v9, %v794_v60  ;;  %v763_v8 = vpop.permute.xlu0 %762 }
 0x64d   :  { %v838_v13 = vcombine.high %v763_v8, %v3907_v2  ;;  %v845_v14 = vrot.slane %v763_v8, %v4103_v4  ;;  %v767_v15 = vpop.permute.xlu1 %766 }
 0x64e   :  { %v810_v16 = vrot.slane %v802_v12, %v4115_v18  ;;  %v817_v19 = vrot.slane %v803_v58, %v4115_v18  ;;  %v818_v20 = vcombine.low %v786_v11, %v801_v61  ;;  %v819_v22 = vcombine.high %v786_v11, %v801_v61 }
 0x64f   :  { %v852_v23 = vrot.slane %v838_v13, %v4103_v4  ;;  %v853_v24 = vcombine.high %v767_v15, %v3907_v2  ;;  %v860_v25 = vrot.slane %v767_v15, %v4103_v4 }
 0x650   :  { %v826_v26 = vrot.slane %v818_v20, %v4115_v18  ;;  %v833_v29 = vrot.slane %v819_v22, %v4115_v18  ;;  %v904_v30 = vcombine.low %v810_v16, %v817_v19  ;;  %v3485_v31 = vcombine.high %v810_v16, %v817_v19 }
 0x651   :  { %v867_v32 = vrot.slane %v853_v24, %v4103_v4  ;;  %v868_v33 = vcombine.low %v845_v14, %v860_v25  ;;  %v869_v34 = vcombine.high %v845_v14, %v860_v25 }
 0x652   :  { %v920_v35 = vcombine.low %v826_v26, %v833_v29  ;;  %v3486_v36 = vcombine.high %v826_v26, %v833_v29  ;;  %v911_v44 = vrot.slane %v904_v30, %v4103_v4  ;;  %v919_v27 = vrot.slane %v3485_v31, %v4103_v4  ;;  %v3839_v63 = vpop.eup %3838 }
 0x653   :  { %v876_v37 = vrot.slane %v868_v33, %v4115_v18  ;;  %v883_v41 = vrot.slane %v869_v34, %v4115_v18  ;;  %v884_v42 = vcombine.low %v852_v23, %v867_v32  ;;  %v885_v43 = vcombine.high %v852_v23, %v867_v32 }
 0x654   :  { %v927_v28 = vrot.slane %v920_v35, %v4103_v4  ;;  %v935_v45 = vrot.slane %v3486_v36, %v4103_v4  ;;  %v936_v55 = vcombine.low %v911_v44, %v919_v27  ;;  %v1142_v58 = vmul.f32 %v3839_v63, %v4219_v54 }
 0x655   :  { %v892_v46 = vrot.slane %v884_v42, %v4115_v18  ;;  %v899_v47 = vrot.slane %v885_v43, %v4115_v18  ;;  %v954_v48 = vcombine.low %v876_v37, %v883_v41  ;;  %v3487_v49 = vcombine.high %v876_v37, %v883_v41 }
 0x656   :  { %v944_v50 = vcombine.low %v927_v28, %v935_v45  ;;  %v3841_v3 = vpop.eup %3840  ;;  %v943_v5 = vrot.slane %v936_v55, %v4115_v18 }
 0x657   :  { %v961_v38 = vrot.slane %v954_v48, %v4103_v4  ;;  %v969_v39 = vrot.slane %v3487_v49, %v4103_v4  ;;  %v970_v51 = vcombine.low %v892_v46, %v899_v47  ;;  %v3488_v52 = vcombine.high %v892_v46, %v899_v47  ;;  %v3843_v9 = vpop.eup %3842 }
 0x658   :  { %v951_v0 = vrot.slane %v944_v50, %v4115_v18  ;;  %v3845_v10 = vpop.eup %3844  ;;  %v1144_v8 = vmul.f32 %v3841_v3, %v4227_v59  ;;  %v1141_v15 = vmul.f32 %v3843_v9, %v4215_v53  ;;  %v3806_v53 = vld [vmem:[%s4738_s8 + $0x8] sm:$0xff]  }
 0x659   :  { %v977_v40 = vrot.slane %v970_v51, %v4103_v4  ;;  %v985_v57 = vrot.slane %v3488_v52, %v4103_v4  ;;  %v986_v62 = vcombine.low %v961_v38, %v969_v39  ;;  %v1143_v16 = vmul.f32 %v3845_v10, %v4221_v56 }
 0x65a   :  { %v952_v60 = vcombine.low %v943_v5, %v951_v0  ;;  %v953_v61 = vcombine.high %v943_v5, %v951_v0  ;;  %v1145_v19 = vpack.c.bf16 %v1142_v58, %v1141_v15 }
 0x65b   :  { %v994_v1 = vcombine.low %v977_v40, %v985_v57  ;;  %v993_v6 = vrot.slane %v986_v62, %v4115_v18  ;;  %v1146_v20 = vpack.c.bf16 %v1144_v8, %v1143_v16 }
 0x65d   :  { %v1001_v7 = vrot.slane %v994_v1, %v4115_v18 }
 0x65f   :  { %v1002_v11 = vcombine.low %v993_v6, %v1001_v7  ;;  %v1003_v12 = vcombine.high %v993_v6, %v1001_v7 }
 0x661   :  { %v1004_v13 = vpack.c.bf16 %v1002_v11, %v952_v60  ;;  %v1005_v14 = vpack.c.bf16 %v1003_v12, %v953_v61  ;;  %v3807_v61 = vld [vmem:[%s4738_s8] sm:$0xff]  }
 0x663   :  { %3672 = vmatpush3.bf16.msra.mxu1 %v1004_v13  ;;  %3678 = vmatpush3.bf16.msra.mxu0 %v1005_v14 }
 0x664   :  { %3683 = vmatprep.subr.bf16.mxu1 %v3907_v2  ;;  %3691 = vmatprep.subr.bf16.mxu0 %v3907_v2 }
 0x666   :  { %3674 = vmatmul.mubr.msk.bf16.vlgmr.msra.gmra.mxu1 %vm1006_vm5, %v1145_v19  ;;  %3680 = vmatmul.mubr.msk.bf16.vlgmr.msra.gmra.mxu0 %vm1006_vm5, %v1146_v20 }
 0x667   :  { %3687 = vmatprep.mubr.msk.bf16.mxu1 %vm3908_vm0, %v3907_v2  ;;  %3695 = vmatprep.mubr.msk.bf16.mxu0 %vm3908_vm0, %v3907_v2 }
 0x668   :  { %3684 = vmatpush3.bf16.msra.mxu1 %v3806_v53 }
 0x669   :  { %3685 = vmatprep.subr.bf16.mxu1 %v3907_v2 }
 0x66c   :  { %3686 = vmatpush3.bf16.msra.mxu1 %v3807_v61 }
 0x66d   :  { %3699 = vmatprep.subr.bf16.mxu1 %v3907_v2 }
 0x726   :  { %v1184_v54 = vpop.f32.mrf.mxu1  ;;  %v1228_v56 = vpop.f32.mrf.mxu0 }
 0x727   :  { %v1235_v59 = vcombine.high %v1184_v54, %v3907_v2  ;;  %v1242_v22 = vrot.slane %v1184_v54, %v4103_v4  ;;  %v1250_v23 = vcombine.high %v1228_v56, %v3907_v2  ;;  %v1257_v24 = vrot.slane %v1228_v56, %v4103_v4 }
 0x728   :  { %v3675_v25 = vpop.f32.mrf.mxu1  ;;  %v3681_v26 = vpop.f32.mrf.mxu0 }
 0x729   :  { %v1249_v29 = vrot.slane %v1235_v59, %v4103_v4  ;;  %v1264_v30 = vrot.slane %v1250_v23, %v4103_v4  ;;  %v1265_v31 = vcombine.low %v1242_v22, %v1257_v24  ;;  %v1266_v32 = vcombine.high %v1242_v22, %v1257_v24 }
 0x72a   :  { %v1187_v33 = vpop.f32.mrf.mxu1  ;;  %v1231_v34 = vpop.f32.mrf.mxu0 }
 0x72b   :  { %v1273_v35 = vrot.slane %v1265_v31, %v4115_v18  ;;  %v1280_v36 = vrot.slane %v1266_v32, %v4115_v18  ;;  %v1281_v37 = vcombine.low %v1249_v29, %v1264_v30  ;;  %v1282_v41 = vcombine.high %v1249_v29, %v1264_v30 }
 0x72c   :  { %v1301_v42 = vcombine.high %v1187_v33, %v3907_v2  ;;  %v1308_v43 = vrot.slane %v1187_v33, %v4103_v4  ;;  %v1316_v44 = vcombine.high %v1231_v34, %v3907_v2  ;;  %v1323_v27 = vrot.slane %v1231_v34, %v4103_v4  ;;  %v3676_v28 = vpop.f32.mrf.mxu1  ;;  %v3682_v45 = vpop.f32.mrf.mxu0  ;;  %v3497_v34 = vld [vmem:[%s4739_s9] ss:$0 sm:$0xff] }
 0x72d   :  { %v1289_v46 = vrot.slane %v1281_v37, %v4115_v18  ;;  %v1296_v47 = vrot.slane %v1282_v41, %v4115_v18  ;;  %v1367_v48 = vcombine.low %v1273_v35, %v1280_v36  ;;  %v3493_v49 = vcombine.high %v1273_v35, %v1280_v36 }
 0x72e   :  { %v1315_v50 = vrot.slane %v1301_v42, %v4103_v4  ;;  %v1330_v38 = vrot.slane %v1316_v44, %v4103_v4  ;;  %v1331_v39 = vcombine.low %v1308_v43, %v1323_v27  ;;  %v1332_v51 = vcombine.high %v1308_v43, %v1323_v27 }
 0x72f   :  { %v1374_v52 = vrot.slane %v1367_v48, %v4103_v4  ;;  %v1382_v55 = vrot.slane %v3493_v49, %v4103_v4  ;;  %v1383_v40 = vcombine.low %v1289_v46, %v1296_v47  ;;  %v3494_v57 = vcombine.high %v1289_v46, %v1296_v47 }
 0x730   :  { %v1339_v62 = vrot.slane %v1331_v39, %v4115_v18  ;;  %v1346_v63 = vrot.slane %v1332_v51, %v4115_v18  ;;  %v1347_v0 = vcombine.low %v1315_v50, %v1330_v38  ;;  %v1348_v1 = vcombine.high %v1315_v50, %v1330_v38 }
 0x731   :  { %v1390_v3 = vrot.slane %v1383_v40, %v4103_v4  ;;  %v1398_v5 = vrot.slane %v3494_v57, %v4103_v4  ;;  %v1399_v6 = vcombine.low %v1374_v52, %v1382_v55  ;;  %v3808_v52 = vld [vmem:[%s4742_s12 + $0x8] sm:$0xff]   ;;  %v3809_v55 = vld [vmem:[%s4742_s12] sm:$0xff]  }
 0x732   :  { %v1355_v7 = vrot.slane %v1347_v0, %v4115_v18  ;;  %v1362_v9 = vrot.slane %v1348_v1, %v4115_v18  ;;  %v1417_v10 = vcombine.low %v1339_v62, %v1346_v63  ;;  %v3495_v60 = vcombine.high %v1339_v62, %v1346_v63  ;;  %3692 = vmatpush3.bf16.msra.mxu0 %v3808_v52 }
 0x733   :  { %v1407_v11 = vcombine.low %v1390_v3, %v1398_v5  ;;  %v1406_v14 = vrot.slane %v1399_v6, %v4115_v18  ;;  %3693 = vmatprep.subr.bf16.mxu0 %v3907_v2  ;;  %v3501_v6 = vld [vmem:[%s4740_s10] ss:$0 sm:$0xff] }
 0x734   :  { %v1424_v12 = vrot.slane %v1417_v10, %v4103_v4  ;;  %v1432_v58 = vrot.slane %v3495_v60, %v4103_v4  ;;  %v1433_v8 = vcombine.low %v1355_v7, %v1362_v9  ;;  %v3496_v13 = vcombine.high %v1355_v7, %v1362_v9  ;;  %v3502_v60 = vld [vmem:[%s4741_s11] ss:$0 sm:$0xff] }
 0x735   :  { %v1414_v15 = vrot.slane %v1407_v11, %v4115_v18 }
 0x736   :  { %v1440_v16 = vrot.slane %v1433_v8, %v4103_v4  ;;  %v1448_v19 = vrot.slane %v3496_v13, %v4103_v4  ;;  %v1449_v20 = vcombine.low %v1424_v12, %v1432_v58  ;;  %3694 = vmatpush3.bf16.msra.mxu0 %v3809_v55  ;;  %v3810_v8 = vld [vmem:[%s4744_s14 + $0x18] sm:$0xff]   ;;  %v3811_v13 = vld [vmem:[%s4744_s14 + $0x10] sm:$0xff]  }
 0x737   :  { %v1415_v53 = vcombine.low %v1406_v14, %v1414_v15  ;;  %v1416_v22 = vcombine.high %v1406_v14, %v1414_v15  ;;  %3711 = vmatprep.subr.bf16.mxu0 %v3907_v2  ;;  %v3812_v14 = vld [vmem:[%s4744_s14 + $0x8] sm:$0xff]   ;;  %v3813_v15 = vld [vmem:[%s4744_s14] sm:$0xff]  }
 0x738   :  { %v1457_v54 = vcombine.low %v1440_v16, %v1448_v19  ;;  %v1456_v56 = vrot.slane %v1449_v20, %v4115_v18  ;;  %v3503_v16 = vld [vmem:[%s4743_s13] ss:$0 sm:$0xff] }
 0x73a   :  { %v1464_v59 = vrot.slane %v1457_v54, %v4115_v18 }
 0x73c   :  { %v1466_v23 = vcombine.high %v1456_v56, %v1464_v59  ;;  %v1465_v24 = vcombine.low %v1456_v56, %v1464_v59 }
 0x73e   :  { %v3790_v25 = vpack.i.bf16 %v1466_v23, %v1416_v22 }
 0x740   :  { %3791 = vrot.lane.b32.xlu0 %v3790_v25, %s3914_s1 }
 0x7b2   :  { %v3792_v26 = vpop.permute.xlu0 %3791 }
 0x7b3   :  { %v3794_v29 = vunpack.i.h.bf16 %v3792_v26  ;;  %v3793_v30 = vunpack.i.l.bf16 %v3792_v26 }
 0x7b5   :  { %v1475_v31 = vsel %vm1006_vm5, %v1415_v53, %v3793_v30  ;;  %v1476_v32 = vsel %vm1006_vm5, %v1465_v24, %v3794_v29 }
 0x7b6   :  { %v1477_v33 = vpack.c.bf16 %v1476_v32, %v1475_v31 }
 0x7b8   :  { %3688 = vmatmul.mubr.msk.bf16.vlgmr.msra.gmra.mxu1 %vm160_vm4, %v1477_v33 }
 0x7b9   :  { %3707 = vmatprep.mubr.msk.bf16.mxu1 %vm3908_vm0, %v3907_v2  ;;  %3700 = vmatpush3.bf16.msra.mxu1 %v3810_v8  ;;  %v3515_v8 = vld [vmem:[%s4734_s4 + $0x1] ss:$0 sm:$0xff] }
 0x7ba   :  { %3701 = vmatprep.subr.bf16.mxu1 %v3907_v2 }
 0x7bd   :  { %3702 = vmatpush3.bf16.msra.mxu1 %v3811_v13 }
 0x7be   :  { %3703 = vmatprep.subr.bf16.mxu1 %v3907_v2 }
 0x7c1   :  { %3704 = vmatpush3.bf16.msra.mxu1 %v3812_v14 }
 0x7c2   :  { %3705 = vmatprep.subr.bf16.mxu1 %v3907_v2 }
 0x7c5   :  { %3706 = vmatpush3.bf16.msra.mxu1 %v3813_v15 }
 0x7c6   :  { %3725 = vmatprep.subr.bf16.mxu1 %v3907_v2 }
 0x878   :  { %v1538_v35 = vpop.f32.mrf.mxu1 }
 0x879   :  { %v1539_v36 = vadd.f32 %v3497_v34, %v1538_v35 }
 0x87a   :  { %v3689_v37 = vpop.f32.mrf.mxu1 }
 0x87b   :  { %v4331_v41 = vadd.f32 %v1539_v36, %v4048_v17 }
 0x87c   :  { %v1541_v42 = vpop.f32.mrf.mxu1 }
 0x87d   :  { %v1542_v43 = vadd.f32 %v3497_v34, %v1541_v42  ;;  %v1549_v44 = vsel %vm160_vm4, %v4331_v41, 0.0 }
 0x87e   :  { %1550 = vadd.xlane.f32.xlu1 %v1549_v44  ;;  %v3690_v27 = vpop.f32.mrf.mxu1 }
 0x87f   :  { %v4336_v28 = vadd.f32 %v1542_v43, %v4052_v21 }
 0x881   :  { %v1552_v45 = vsel %vm160_vm4, %v4336_v28, 0.0 }
 0x882   :  { %1553 = vadd.xlane.f32.xlu0 %v1552_v45 }
 0x907   :  { %v1551_v46 = vpop.xlane.xlu1 %1550 }
 0x908   :  { %v1555_v47 = vmul.f32 0.03125, %v1551_v46  ;;  %v3507_v46 = vld [vmem:[%s4745_s15] ss:$0 sm:$0xff] }
 0x90a   :  { %v1557_v48 = vsub.f32 %v4331_v41, %v1555_v47 }
 0x90b   :  { %v1554_v17 = vpop.xlane.xlu0 %1553 }
 0x90c   :  { %v1556_v49 = vmul.f32 0.03125, %v1554_v17  ;;  %v1559_v50 = vmul.f32 %v1557_v48, %v1557_v48 }
 0x90e   :  { %v1558_v38 = vsub.f32 %v4336_v28, %v1556_v49  ;;  %v1561_v39 = vsel %vm160_vm4, %v1559_v50, 0.0 }
 0x90f   :  { %1562 = vadd.xlane.f32.xlu0 %v1561_v39 }
 0x910   :  { %v1560_v51 = vmul.f32 %v1558_v38, %v1558_v38 }
 0x912   :  { %v1564_v21 = vsel %vm160_vm4, %v1560_v51, 0.0 }
 0x913   :  { %1565 = vadd.xlane.f32.xlu1 %v1564_v21 }
 0x998   :  { %v1563_v40 = vpop.xlane.xlu0 %1562 }
 0x999   :  { %v1567_v57 = vmul.f32 0.03125, %v1563_v40 }
 0x99b   :  { %v1569_v62 = vadd.f32 1e-05, %v1567_v57 }
 0x99c   :  { %v1566_v63 = vpop.xlane.xlu1 %1565 }
 0x99d   :  { %3846 = vrsqrt.f32 %v1569_v62  ;;  %v1568_v0 = vmul.f32 0.03125, %v1566_v63 }
 0x99f   :  { %v1570_v1 = vadd.f32 1e-05, %v1568_v0 }
 0x9a1   :  { %3848 = vrsqrt.f32 %v1570_v1 }
 0x9aa   :  { %v3847_v3 = vpop.eup %3846 }
 0x9ab   :  { %v1573_v5 = vmul.f32 %v3847_v3, %v1557_v48 }
 0x9ad   :  { %v1581_v10 = vmul.f32 %v3501_v6, %v1573_v5  ;;  %v3814_v5 = vld [vmem:[%s4736_s6 + $0x18] sm:$0xff]  }
 0x9ae   :  { %v3849_v7 = vpop.eup %3848 }
 0x9af   :  { %v1574_v9 = vmul.f32 %v3849_v7, %v1558_v38  ;;  %v1589_v61 = vadd.f32 %v3502_v60, %v1581_v10 }
 0x9b1   :  { %v1582_v11 = vmul.f32 %v3501_v6, %v1574_v9  ;;  %v3815_v6 = vld [vmem:[%s4736_s6 + $0x10] sm:$0xff]  }
 0x9b3   :  { %v1590_v12 = vadd.f32 %v3502_v60, %v1582_v11 }
 0x9b5   :  { %v1591_v58 = vpack.c.bf16 %v1590_v12, %v1589_v61 }
 0x9b7   :  { %3696 = vmatmul.mubr.msk.bf16.vlgmr.msra.gmra.mxu0 %vm160_vm4, %v1591_v58 }
 0x9b8   :  { %3715 = vmatprep.mubr.msk.bf16.mxu0 %vm3908_vm0, %v3907_v2  ;;  %3712 = vmatpush3.bf16.msra.mxu0 %v3814_v5 }
 0x9b9   :  { %3713 = vmatprep.subr.bf16.mxu0 %v3907_v2 }
 0x9bc   :  { %3714 = vmatpush3.bf16.msra.mxu0 %v3815_v6 }
 0x9bd   :  { %3719 = vmatprep.subr.bf16.mxu0 %v3907_v2 }
 0xa77   :  { %v1652_v19 = vpop.f32.mrf.mxu0 }
 0xa78   :  { %v1653_v20 = vadd.f32 %v3503_v16, %v1652_v19 }
 0xa79   :  { %v3697_v53 = vpop.f32.mrf.mxu0 }
 0xa7a   :  { %v1659_v54 = vmul.f32 %v1653_v20, %v1653_v20 }
 0xa7b   :  { %v1655_v56 = vpop.f32.mrf.mxu0 }
 0xa7c   :  { %v1661_v59 = vmul.f32 %v1659_v54, %v1653_v20  ;;  %v1656_v22 = vadd.f32 %v3503_v16, %v1655_v56  ;;  %v3516_v16 = vld [vmem:[%s4735_s5 + $0x1] ss:$0 sm:$0xff] }
 0xa7d   :  { %v3698_v23 = vpop.f32.mrf.mxu0  ;;  %v3522_v56 = vld [vmem:[%s4737_s7 + $0x1] ss:$0 sm:$0xff] }
 0xa7e   :  { %v1663_v24 = vmul.f32 0.044715, %v1661_v59  ;;  %v1660_v25 = vmul.f32 %v1656_v22, %v1656_v22 }
 0xa80   :  { %v1665_v26 = vadd.f32 %v1663_v24, %v1653_v20  ;;  %v1662_v29 = vmul.f32 %v1660_v25, %v1656_v22 }
 0xa82   :  { %v1667_v30 = vmul.f32 0.7978846, %v1665_v26  ;;  %v1664_v31 = vmul.f32 0.044715, %v1662_v29 }
 0xa84   :  { %3850 = vtanh.f32 %v1667_v30  ;;  %v1666_v32 = vadd.f32 %v1664_v31, %v1656_v22 }
 0xa86   :  { %v1668_v33 = vmul.f32 0.7978846, %v1666_v32 }
 0xa88   :  { %3852 = vtanh.f32 %v1668_v33 }
 0xa91   :  { %v3851_v34 = vpop.eup %3850 }
 0xa92   :  { %v1671_v35 = vadd.f32 1.0, %v3851_v34 }
 0xa94   :  { %v1673_v37 = vmul.f32 0.5, %v1671_v35 }
 0xa95   :  { %v3853_v36 = vpop.eup %3852 }
 0xa96   :  { %v1672_v42 = vadd.f32 1.0, %v3853_v36  ;;  %v1675_v44 = vmul.f32 %v1673_v37, %v1653_v20 }
 0xa98   :  { %v1674_v43 = vmul.f32 0.5, %v1672_v42 }
 0xa9a   :  { %v1676_v27 = vmul.f32 %v1674_v43, %v1656_v22 }
 0xa9c   :  { %v1677_v45 = vpack.c.bf16 %v1676_v27, %v1675_v44 }
 0xa9e   :  { %3708 = vmatmul.mubr.msk.bf16.vlgmr.msra.gmra.mxu1 %vm111_vm3, %v1677_v45 }
 0xa9f   :  { %3727 = vmatprep.mubr.msk.bf16.mxu1 %vm3908_vm0, %v3907_v2 }
 0xb5e   :  { %v1754_v47 = vpop.f32.mrf.mxu1 }
 0xb5f   :  { %v1755_v48 = vadd.f32 %v3507_v46, %v1754_v47 }
 0xb60   :  { %v3709_v17 = vpop.f32.mrf.mxu1 }
 0xb61   :  { %v4387_v49 = vadd.f32 %v1755_v48, %v4331_v41 }
 0xb62   :  { %v1757_v50 = vpop.f32.mrf.mxu1 }
 0xb63   :  { %v1758_v38 = vadd.f32 %v3507_v46, %v1757_v50  ;;  %v1767_v39 = vsel %vm160_vm4, %v4387_v49, 0.0 }
 0xb64   :  { %1768 = vadd.xlane.f32.xlu0 %v1767_v39  ;;  %v3710_v51 = vpop.f32.mrf.mxu1 }
 0xb65   :  { %v4392_v21 = vadd.f32 %v1758_v38, %v4336_v28 }
 0xb67   :  { %v1770_v52 = vsel %vm160_vm4, %v4392_v21, 0.0 }
 0xb68   :  { %1771 = vadd.xlane.f32.xlu1 %v1770_v52 }
 0xbed   :  { %v1769_v55 = vpop.xlane.xlu0 %1768 }
 0xbee   :  { %v1773_v40 = vmul.f32 0.03125, %v1769_v55 }
 0xbf0   :  { %v1775_v57 = vsub.f32 %v4387_v49, %v1773_v40 }
 0xbf1   :  { %v1772_v41 = vpop.xlane.xlu1 %1771 }
 0xbf2   :  { %v1774_v62 = vmul.f32 0.03125, %v1772_v41  ;;  %v1777_v63 = vmul.f32 %v1775_v57, %v1775_v57 }
 0xbf4   :  { %v1776_v0 = vsub.f32 %v4392_v21, %v1774_v62  ;;  %v1779_v1 = vsel %vm160_vm4, %v1777_v63, 0.0 }
 0xbf5   :  { %1780 = vadd.xlane.f32.xlu0 %v1779_v1 }
 0xbf6   :  { %v1778_v3 = vmul.f32 %v1776_v0, %v1776_v0 }
 0xbf8   :  { %v1782_v28 = vsel %vm160_vm4, %v1778_v3, 0.0 }
 0xbf9   :  { %1783 = vadd.xlane.f32.xlu1 %v1782_v28 }
 0xc7e   :  { %v1781_v7 = vpop.xlane.xlu0 %1780 }
 0xc7f   :  { %v1785_v9 = vmul.f32 0.03125, %v1781_v7 }
 0xc81   :  { %v1787_v10 = vadd.f32 1e-05, %v1785_v9 }
 0xc82   :  { %v1784_v60 = vpop.xlane.xlu1 %1783 }
 0xc83   :  { %3854 = vrsqrt.f32 %v1787_v10  ;;  %v1786_v11 = vmul.f32 0.03125, %v1784_v60 }
 0xc85   :  { %v1788_v61 = vadd.f32 1e-05, %v1786_v11 }
 0xc87   :  { %3856 = vrsqrt.f32 %v1788_v61 }
 0xc90   :  { %v3855_v12 = vpop.eup %3854 }
 0xc91   :  { %v1791_v58 = vmul.f32 %v3855_v12, %v1775_v57 }
 0xc93   :  { %v1799_v15 = vmul.f32 %v3515_v8, %v1791_v58 }
 0xc94   :  { %v3857_v13 = vpop.eup %3856 }
 0xc95   :  { %v1792_v14 = vmul.f32 %v3857_v13, %v1776_v0  ;;  %v1807_v20 = vadd.f32 %v3516_v16, %v1799_v15 }
 0xc97   :  { %v1800_v19 = vmul.f32 %v3515_v8, %v1792_v14 }
 0xc99   :  { %v1808_v53 = vadd.f32 %v3516_v16, %v1800_v19 }
 0xc9b   :  { %v1809_v54 = vpack.c.bf16 %v1808_v53, %v1807_v20 }
 0xc9d   :  { %3716 = vmatmul.mubr.msk.bf16.vlgmr.msra.gmra.mxu0 %vm160_vm4, %v1809_v54 }
 0xc9e   :  { %3721 = vmatprep.mubr.msk.bf16.mxu0 %vm3908_vm0, %v3907_v2 }
 0xd5d   :  { %v1872_v59 = vpop.f32.mrf.mxu0 }
 0xd5e   :  { %v4420_v22 = vadd.f32 %v3522_v56, %v1872_v59 }
 0xd5f   :  { %v3717_v23 = vpop.f32.mrf.mxu0 }
 0xd60   :  { %1881 = vrot.lane.b32.xlu0 %v4420_v22, %s3909_s2  ;;  %v1887_v32 = vcombine.high %v4420_v22, %v3907_v2  ;;  %v1894_v36 = vrot.slane %v4420_v22, %v4103_v4 }
 0xd61   :  { %v1875_v24 = vpop.f32.mrf.mxu0 }
 0xd62   :  { %v4424_v25 = vadd.f32 %v3522_v56, %v1875_v24  ;;  %v1901_v42 = vrot.slane %v1887_v32, %v4103_v4 }
 0xd63   :  { %v3718_v26 = vpop.f32.mrf.mxu0 }
 0xd64   :  { %2123 = vrot.lane.b32.xlu0 %v4424_v25, %s3910_s23  ;;  %1883 = vrot.lane.b32.xlu1 %v4424_v25, %s3909_s2  ;;  %v1953_v35 = vcombine.high %v4424_v25, %v3907_v2  ;;  %v1960_v38 = vrot.slane %v4424_v25, %v4103_v4 }
 0xd66   :  { %v1967_v17 = vrot.slane %v1953_v35, %v4103_v4 }
 0xd68   :  { %2121 = vrot.lane.b32.xlu1 %v4420_v22, %s3910_s23 }
 0xdd2   :  { %v4432_v29 = vpop.permute.xlu0 %1881 }
 0xdd3   :  { %2125 = vrot.lane.b32.xlu1 %v4432_v29, %s3910_s23  ;;  %v1902_v31 = vcombine.high %v4432_v29, %v3907_v2  ;;  %v1909_v33 = vrot.slane %v4432_v29, %v4103_v4 }
 0xdd5   :  { %v1916_v37 = vrot.slane %v1902_v31, %v4103_v4  ;;  %v1917_v43 = vcombine.low %v1894_v36, %v1909_v33  ;;  %v1918_v45 = vcombine.high %v1894_v36, %v1909_v33 }
 0xdd6   :  { %v4436_v30 = vpop.permute.xlu1 %1883  ;;  %v2124_v46 = vpop.permute.xlu0 %2123 }
 0xdd7   :  { %2127 = vrot.lane.b32.xlu0 %v4436_v30, %s3910_s23  ;;  %v1968_v34 = vcombine.high %v4436_v30, %v3907_v2  ;;  %v1933_v47 = vcombine.low %v1901_v42, %v1916_v37  ;;  %v1934_v48 = vcombine.high %v1901_v42, %v1916_v37  ;;  %v1975_v50 = vrot.slane %v4436_v30, %v4103_v4 }
 0xdd8   :  { %v4462_v51 = vrot.slane %v1917_v43, %v4115_v18  ;;  %v2199_v52 = vcombine.high %v2124_v46, %v3907_v2  ;;  %v4466_v41 = vrot.slane %v1918_v45, %v4115_v18  ;;  %v2206_v28 = vrot.slane %v2124_v46, %v4103_v4 }
 0xdd9   :  { %v1982_v44 = vrot.slane %v1968_v34, %v4103_v4  ;;  %v4472_v1 = vrot.slane %v1933_v47, %v4115_v18  ;;  %v1948_v3 = vrot.slane %v1934_v48, %v4115_v18  ;;  %v1983_v5 = vcombine.low %v1960_v38, %v1975_v50 }
 0xdda   :  { %v2122_v27 = vpop.permute.xlu1 %2121  ;;  %v2213_v60 = vrot.slane %v2199_v52, %v4103_v4  ;;  %v1984_v11 = vcombine.high %v1960_v38, %v1975_v50 }
 0xddb   :  { %v2133_v39 = vcombine.high %v2122_v27, %v3907_v2  ;;  %v1999_v55 = vcombine.low %v1967_v17, %v1982_v44  ;;  %v2000_v40 = vcombine.high %v1967_v17, %v1982_v44  ;;  %v2140_v62 = vrot.slane %v2122_v27, %v4103_v4 }
 0xddc   :  { %v2035_v16 = vcombine.low %v4472_v1, %v1948_v3  ;;  %v1991_v19 = vrot.slane %v1983_v5, %v4115_v18  ;;  %v1998_v24 = vrot.slane %v1984_v11, %v4115_v18  ;;  %v3526_v5 = vcombine.high %v4462_v51, %v4466_v41 }
 0xddd   :  { %v2147_v6 = vrot.slane %v2133_v39, %v4103_v4  ;;  %v2007_v61 = vrot.slane %v1999_v55, %v4115_v18  ;;  %v2014_v12 = vrot.slane %v2000_v40, %v4115_v18  ;;  %v3527_v39 = vcombine.high %v4472_v1, %v1948_v3 }
 0xdde   :  { %v2069_v52 = vcombine.low %v1991_v19, %v1998_v24  ;;  %v3528_v55 = vcombine.high %v1991_v19, %v1998_v24 }
 0xddf   :  { %v2085_v33 = vcombine.low %v2007_v61, %v2014_v12  ;;  %v3529_v34 = vcombine.high %v2007_v61, %v2014_v12  ;;  %v2050_v11 = vrot.slane %v3527_v39, %v4103_v4 }
 0xde0   :  { %v2076_v61 = vrot.slane %v2069_v52, %v4103_v4  ;;  %v2084_v12 = vrot.slane %v3528_v55, %v4103_v4 }
 0xe45   :  { %v2126_v57 = vpop.permute.xlu1 %2125 }
 0xe46   :  { %v2148_v63 = vcombine.high %v2126_v57, %v3907_v2  ;;  %v2155_v0 = vrot.slane %v2126_v57, %v4103_v4 }
 0xe48   :  { %v2162_v7 = vrot.slane %v2148_v63, %v4103_v4  ;;  %v2163_v9 = vcombine.low %v2140_v62, %v2155_v0  ;;  %v2164_v10 = vcombine.high %v2140_v62, %v2155_v0 }
 0xe49   :  { %v2128_v58 = vpop.permute.xlu0 %2127 }
 0xe4a   :  { %v2171_v8 = vrot.slane %v2163_v9, %v4115_v18  ;;  %v2178_v13 = vrot.slane %v2164_v10, %v4115_v18  ;;  %v2179_v14 = vcombine.low %v2147_v6, %v2162_v7  ;;  %v2180_v15 = vcombine.high %v2147_v6, %v2162_v7 }
 0xe4b   :  { %v2214_v20 = vcombine.high %v2128_v58, %v3907_v2  ;;  %v2221_v53 = vrot.slane %v2128_v58, %v4103_v4  ;;  %v2092_v6 = vrot.slane %v2085_v33, %v4103_v4  ;;  %v2100_v7 = vrot.slane %v3529_v34, %v4103_v4 }
 0xe4c   :  { %v2187_v54 = vrot.slane %v2179_v14, %v4115_v18  ;;  %v2194_v56 = vrot.slane %v2180_v15, %v4115_v18  ;;  %v2265_v59 = vcombine.low %v2171_v8, %v2178_v13  ;;  %v3530_v23 = vcombine.high %v2171_v8, %v2178_v13 }
 0xe4d   :  { %v2228_v26 = vrot.slane %v2214_v20, %v4103_v4  ;;  %v2229_v31 = vcombine.low %v2206_v28, %v2221_v53  ;;  %v2230_v32 = vcombine.high %v2206_v28, %v2221_v53  ;;  %v2019_v28 = vcombine.low %v4462_v51, %v4466_v41 }
 0xe4e   :  { %v2281_v35 = vcombine.low %v2187_v54, %v2194_v56  ;;  %v3531_v36 = vcombine.high %v2187_v54, %v2194_v56  ;;  %v2272_v27 = vrot.slane %v2265_v59, %v4103_v4  ;;  %v2280_v45 = vrot.slane %v3530_v23, %v4103_v4 }
 0xe4f   :  { %v2237_v37 = vrot.slane %v2229_v31, %v4115_v18  ;;  %v2244_v42 = vrot.slane %v2230_v32, %v4115_v18  ;;  %v2245_v43 = vcombine.low %v2213_v60, %v2228_v26  ;;  %v2246_v44 = vcombine.high %v2213_v60, %v2228_v26 }
 0xe50   :  { %v2288_v46 = vrot.slane %v2281_v35, %v4103_v4  ;;  %v2296_v47 = vrot.slane %v3531_v36, %v4103_v4  ;;  %v2297_v9 = vcombine.low %v2272_v27, %v2280_v45  ;;  %v2042_v60 = vrot.slane %v2035_v16, %v4103_v4 }
 0xe51   :  { %v2253_v48 = vrot.slane %v2245_v43, %v4115_v18  ;;  %v2260_v17 = vrot.slane %v2246_v44, %v4115_v18  ;;  %v2315_v50 = vcombine.low %v2237_v37, %v2244_v42  ;;  %v3532_v38 = vcombine.high %v2237_v37, %v2244_v42 }
 0xe52   :  { %v2305_v40 = vcombine.low %v2288_v46, %v2296_v47  ;;  %v2026_v58 = vrot.slane %v2019_v28, %v4103_v4  ;;  %v2034_v8 = vrot.slane %v3526_v5, %v4103_v4  ;;  %v2109_v13 = vcombine.low %v2092_v6, %v2100_v7 }
 0xe53   :  { %v2322_v57 = vrot.slane %v2315_v50, %v4103_v4  ;;  %v2330_v62 = vrot.slane %v3532_v38, %v4103_v4  ;;  %v2331_v63 = vcombine.low %v2253_v48, %v2260_v17  ;;  %v3533_v0 = vcombine.high %v2253_v48, %v2260_v17  ;;  %v3882_v48 = vld [vmem:[%s4757_s26] sm:$0xff] }
 0xe54   :  { %v2312_v51 = vrot.slane %v2305_v40, %v4115_v18  ;;  %v2304_v14 = vrot.slane %v2297_v9, %v4115_v18  ;;  %v2059_v19 = vcombine.low %v2042_v60, %v2050_v11  ;;  %v2101_v20 = vcombine.low %v2076_v61, %v2084_v12  ;;  %v3883_v40 = vld [vmem:[%s4757_s26 + $0x8] sm:$0xff] }
 0xe55   :  { %v2338_v1 = vrot.slane %v2331_v63, %v4103_v4  ;;  %v2346_v3 = vrot.slane %v3533_v0, %v4103_v4  ;;  %v2347_v10 = vcombine.low %v2322_v57, %v2330_v62  ;;  %v2051_v23 = vcombine.low %v2026_v58, %v2034_v8 }
 0xe56   :  { %v2313_v53 = vcombine.low %v2304_v14, %v2312_v51  ;;  %v2314_v56 = vcombine.high %v2304_v14, %v2312_v51  ;;  %v2116_v31 = vrot.slane %v2109_v13, %v4115_v18  ;;  %v2066_v34 = vrot.slane %v2059_v19, %v4115_v18 }
 0xe57   :  { %v2355_v41 = vcombine.low %v2338_v1, %v2346_v3  ;;  %v2354_v15 = vrot.slane %v2347_v10, %v4115_v18  ;;  %v2108_v35 = vrot.slane %v2101_v20, %v4115_v18  ;;  %v2058_v36 = vrot.slane %v2051_v23, %v4115_v18 }
 0xe59   :  { %v2362_v16 = vrot.slane %v2355_v41, %v4115_v18  ;;  %v2117_v37 = vcombine.low %v2108_v35, %v2116_v31  ;;  %v2118_v42 = vcombine.high %v2108_v35, %v2116_v31  ;;  %v2067_v43 = vcombine.low %v2058_v36, %v2066_v34 }
 0xe5a   :  { %v2068_v44 = vcombine.high %v2058_v36, %v2066_v34 }
 0xe5b   :  { %v2363_v54 = vcombine.low %v2354_v15, %v2362_v16  ;;  %v2364_v59 = vcombine.high %v2354_v15, %v2362_v16  ;;  %v2119_v27 = vpack.c.bf16 %v2117_v37, %v2067_v43 }
 0xe5c   :  { %v2120_v45 = vpack.c.bf16 %v2118_v42, %v2068_v44 }
 0xe5d   :  { %v2365_v24 = vpack.c.bf16 %v2363_v54, %v2313_v53  ;;  %v2366_v26 = vpack.c.bf16 %v2364_v59, %v2314_v56 }
 0xe5f   :  { %v2617_v32 = vsel %vm1006_vm5, %v2365_v24, 0  ;;  %v2664_v33 = vsel %vm1006_vm5, %v2366_v26, 0 }
 0xe60   :  { %3720 = vmatpush3.bf16.xpose.msra.mxu0 %v2617_v32  ;;  %3726 = vmatpush3.bf16.xpose.msra.mxu1 %v2664_v33 }
 0xe61   :  { %3731 = vmatprep.subr.bf16.mxu0 %v3907_v2  ;;  %3737 = vmatprep.subr.bf16.mxu1 %v3907_v2 }
 0xe67   :  { %3722 = vmatmul.mubr.msk.bf16.vlgmr.msra.gmra.mxu0 %vm1006_vm5, %v2119_v27  ;;  %3728 = vmatmul.mubr.msk.bf16.vlgmr.msra.gmra.mxu1 %vm1006_vm5, %v2120_v45 }
 0xe68   :  { %3733 = vmatprep.mubr.msk.bf16.mxu0 %vm3908_vm0, %v3907_v2  ;;  %3739 = vmatprep.mubr.msk.bf16.mxu1 %vm3908_vm0, %v3907_v2 }
 0xf27   :  { %v2653_v46 = vpop.f32.mrf.mxu0  ;;  %v2700_v47 = vpop.f32.mrf.mxu1 }
 0xf28   :  { %v2654_v17 = vadd.f32 %v3882_v48, %v2653_v46  ;;  %v2701_v28 = vadd.f32 %v3882_v48, %v2700_v47 }
 0xf29   :  { %v3723_v50 = vpop.f32.mrf.mxu0  ;;  %v3729_v38 = vpop.f32.mrf.mxu1 }
 0xf2a   :  { %v2707_v39 = vsel %vm1006_vm5, %v2654_v17, -inf  ;;  %v2713_v7 = vsel %vm1006_vm5, %v2701_v28, -inf }
 0xf2b   :  { %v2703_v52 = vpop.f32.mrf.mxu1  ;;  %2708 = vmax.xlane.f32.xlu1 %v2707_v39  ;;  %v2656_v55 = vpop.f32.mrf.mxu0 }
 0xf2c   :  { %v2704_v57 = vadd.f32 %v3883_v40, %v2703_v52  ;;  %v2657_v62 = vadd.f32 %v3883_v40, %v2656_v55 }
 0xf2d   :  { %v3724_v63 = vpop.f32.mrf.mxu0  ;;  %v3730_v0 = vpop.f32.mrf.mxu1 }
 0xf2e   :  { %v2716_v5 = vsel %vm1006_vm5, %v2704_v57, -inf  ;;  %v2710_v6 = vsel %vm1006_vm5, %v2657_v62, -inf }
 0xf2f   :  { %2717 = vmax.xlane.f32.xlu1 %v2716_v5  ;;  %2711 = vmax.xlane.f32.xlu0 %v2710_v6 }
 0xf33   :  { %2714 = vmax.xlane.f32.xlu0 %v2713_v7 }
 0xf40   :  { %2369 = vrot.lane.b32.xlu1 %v4424_v25, %s3913_s28 }
 0xf49   :  { %2367 = vrot.lane.b32.xlu0 %v4420_v22, %s3913_s28 }
 0xfb4   :  { %v2709_v1 = vpop.xlane.xlu1 %2708 }
 0xfb5   :  { %v2719_v3 = vsub.f32 %v2654_v17, %v2709_v1 }
 0xfb7   :  { %v2723_v9 = vmul.f32 1.442695, %v2719_v3 }
 0xfb8   :  { %v2718_v10 = vpop.xlane.xlu1 %2717  ;;  %v2712_v60 = vpop.xlane.xlu0 %2711 }
 0xfb9   :  { %3858 = vpow2.f32 %v2723_v9  ;;  %v2722_v11 = vsub.f32 %v2704_v57, %v2718_v10  ;;  %v2720_v61 = vsub.f32 %v2657_v62, %v2712_v60 }
 0xfbb   :  { %v2725_v12 = vmul.f32 1.442695, %v2720_v61  ;;  %v2729_v51 = vmul.f32 1.442695, %v2722_v11 }
 0xfbc   :  { %v2715_v41 = vpop.xlane.xlu0 %2714  ;;  %v2370_v54 = vpop.permute.xlu1 %2369 }
 0xfbd   :  { %v2721_v58 = vsub.f32 %v2701_v28, %v2715_v41  ;;  %3860 = vpow2.f32 %v2725_v12  ;;  %v2445_v23 = vcombine.high %v2370_v54, %v3907_v2  ;;  %v2452_v32 = vrot.slane %v2370_v54, %v4103_v4 }
 0xfbe   :  { %3862 = vpow2.f32 %v2729_v51 }
 0xfbf   :  { %v2727_v8 = vmul.f32 1.442695, %v2721_v58  ;;  %v2459_v33 = vrot.slane %v2445_v23, %v4103_v4 }
 0xfc0   :  { %v2368_v53 = vpop.permute.xlu0 %2367 }
 0xfc1   :  { %3864 = vpow2.f32 %v2727_v8  ;;  %v2379_v31 = vcombine.high %v2368_v53, %v3907_v2 }
 0xfc3   :  { %v2393_v37 = vrot.slane %v2379_v31, %v4103_v4 }
 0xfc6   :  { %v4548_v25 = vpop.eup %3858 }
 0xfc7   :  { %v2731_v22 = vsel %vm1006_vm5, %v4548_v25, 0.0 }
 0xfc8   :  { %2732 = vadd.xlane.f32.xlu0 %v2731_v22 }
 0xfca   :  { %v4552_v13 = vpop.eup %3860 }
 0xfcb   :  { %v2734_v14 = vsel %vm1006_vm5, %v4552_v13, 0.0  ;;  %v4556_v15 = vpop.eup %3862 }
 0xfcc   :  { %2735 = vadd.xlane.f32.xlu1 %v2734_v14  ;;  %v2740_v20 = vsel %vm1006_vm5, %v4556_v15, 0.0 }
 0xfce   :  { %v4558_v16 = vpop.eup %3864 }
 0xfcf   :  { %v2737_v19 = vsel %vm1006_vm5, %v4558_v16, 0.0 }
 0xfd0   :  { %2738 = vadd.xlane.f32.xlu0 %v2737_v19  ;;  %2741 = vadd.xlane.f32.xlu1 %v2740_v20 }
 0xfe1   :  { %2371 = vrot.lane.b32.xlu1 %v4432_v29, %s3913_s28  ;;  %v2386_v29 = vrot.slane %v2368_v53, %v4103_v4 }
 0xfe6   :  { %2373 = vrot.lane.b32.xlu0 %v4436_v30, %s3913_s28 }
0x1051   :  { %v2733_v56 = vpop.xlane.xlu0 %2732 }
0x1055   :  { %v2736_v59 = vpop.xlane.xlu1 %2735 }
0x1056   :  { %3866 = vrcp.f32 %v2736_v59 }
0x1059   :  { %v2739_v24 = vpop.xlane.xlu0 %2738  ;;  %v2742_v26 = vpop.xlane.xlu1 %2741 }
0x105a   :  { %3868 = vrcp.f32 %v2739_v24 }
0x105b   :  { %3870 = vrcp.f32 %v2742_v26 }
0x105c   :  { %3872 = vrcp.f32 %v2733_v56 }
0x105d   :  { %v2374_v34 = vpop.permute.xlu0 %2373  ;;  %v2372_v35 = vpop.permute.xlu1 %2371 }
0x105e   :  { %v2460_v30 = vcombine.high %v2374_v34, %v3907_v2  ;;  %v2467_v36 = vrot.slane %v2374_v34, %v4103_v4  ;;  %v2394_v42 = vcombine.high %v2372_v35, %v3907_v2  ;;  %v2401_v43 = vrot.slane %v2372_v35, %v4103_v4 }
0x1060   :  { %v2474_v44 = vrot.slane %v2460_v30, %v4103_v4  ;;  %v2475_v27 = vcombine.low %v2452_v32, %v2467_v36  ;;  %v2476_v45 = vcombine.high %v2452_v32, %v2467_v36  ;;  %v2408_v46 = vrot.slane %v2394_v42, %v4103_v4 }
0x1061   :  { %v2409_v47 = vcombine.low %v2386_v29, %v2401_v43  ;;  %v2410_v48 = vcombine.high %v2386_v29, %v2401_v43 }
0x1062   :  { %v2483_v17 = vrot.slane %v2475_v27, %v4115_v18  ;;  %v2490_v50 = vrot.slane %v2476_v45, %v4115_v18  ;;  %v2491_v38 = vcombine.low %v2459_v33, %v2474_v44  ;;  %v2492_v39 = vcombine.high %v2459_v33, %v2474_v44 }
0x1063   :  { %v2417_v52 = vrot.slane %v2409_v47, %v4115_v18  ;;  %v2424_v55 = vrot.slane %v2410_v48, %v4115_v18  ;;  %v2425_v40 = vcombine.low %v2393_v37, %v2408_v46  ;;  %v2426_v57 = vcombine.high %v2393_v37, %v2408_v46  ;;  %v3867_v53 = vpop.eup %3866 }
0x1064   :  { %v2499_v62 = vrot.slane %v2491_v38, %v4115_v18  ;;  %v2506_v63 = vrot.slane %v2492_v39, %v4115_v18  ;;  %v2561_v0 = vcombine.low %v2483_v17, %v2490_v50  ;;  %v3536_v28 = vcombine.high %v2483_v17, %v2490_v50 }
0x1065   :  { %v2433_v5 = vrot.slane %v2425_v40, %v4115_v18  ;;  %v2440_v6 = vrot.slane %v2426_v57, %v4115_v18  ;;  %v2511_v7 = vcombine.low %v2417_v52, %v2424_v55  ;;  %v3534_v1 = vcombine.high %v2417_v52, %v2424_v55 }
0x1066   :  { %v2568_v3 = vrot.slane %v2561_v0, %v4103_v4  ;;  %v2576_v9 = vrot.slane %v3536_v28, %v4103_v4  ;;  %v2577_v10 = vcombine.low %v2499_v62, %v2506_v63  ;;  %v3537_v60 = vcombine.high %v2499_v62, %v2506_v63 }
0x1067   :  { %v2518_v11 = vrot.slane %v2511_v7, %v4103_v4  ;;  %v2526_v61 = vrot.slane %v3534_v1, %v4103_v4  ;;  %v2527_v12 = vcombine.low %v2433_v5, %v2440_v6  ;;  %v3535_v51 = vcombine.high %v2433_v5, %v2440_v6  ;;  %v3869_v56 = vpop.eup %3868 }
0x1068   :  { %v2584_v41 = vrot.slane %v2577_v10, %v4103_v4  ;;  %v2592_v58 = vrot.slane %v3537_v60, %v4103_v4  ;;  %v2593_v8 = vcombine.low %v2568_v3, %v2576_v9  ;;  %v3871_v24 = vpop.eup %3870  ;;  %v2748_v30 = vmul.f32 %v3867_v53, %v4552_v13 }
0x1069   :  { %v2534_v22 = vrot.slane %v2527_v12, %v4103_v4  ;;  %v2542_v14 = vrot.slane %v3535_v51, %v4103_v4  ;;  %v2543_v19 = vcombine.low %v2518_v11, %v2526_v61  ;;  %v3873_v32 = vpop.eup %3872  ;;  %v2749_v36 = vmul.f32 %v3869_v56, %v4558_v16 }
0x106a   :  { %v2601_v20 = vcombine.low %v2584_v41, %v2592_v58  ;;  %v2600_v59 = vrot.slane %v2593_v8, %v4115_v18  ;;  %v2750_v37 = vmul.f32 %v3871_v24, %v4556_v15  ;;  %v2747_v44 = vmul.f32 %v3873_v32, %v4548_v25  ;;  %v3816_v25 = vld [vmem:[%s4738_s8 + $0x18] sm:$0xff]  }
0x106b   :  { %v2551_v54 = vcombine.low %v2534_v22, %v2542_v14  ;;  %v2550_v26 = vrot.slane %v2543_v19, %v4115_v18 }
0x106c   :  { %v2608_v23 = vrot.slane %v2601_v20, %v4115_v18  ;;  %v2751_v27 = vpack.c.bf16 %v2748_v30, %v2747_v44  ;;  %v2752_v45 = vpack.c.bf16 %v2750_v37, %v2749_v36 }
0x106d   :  { %v2558_v31 = vrot.slane %v2551_v54, %v4115_v18 }
0x106e   :  { %v2609_v33 = vcombine.low %v2600_v59, %v2608_v23  ;;  %v2610_v34 = vcombine.high %v2600_v59, %v2608_v23 }
0x106f   :  { %v2559_v29 = vcombine.low %v2550_v26, %v2558_v31  ;;  %v2560_v35 = vcombine.high %v2550_v26, %v2558_v31 }
0x1071   :  { %v2611_v42 = vpack.c.bf16 %v2609_v33, %v2559_v29  ;;  %v2612_v43 = vpack.c.bf16 %v2610_v34, %v2560_v35 }
0x1073   :  { %3732 = vmatpush3.bf16.msra.mxu0 %v2611_v42  ;;  %3738 = vmatpush3.bf16.msra.mxu1 %v2612_v43  ;;  %v3817_v43 = vld [vmem:[%s4738_s8 + $0x10] sm:$0xff]  }
0x1074   :  { %3743 = vmatprep.subr.bf16.mxu0 %v3907_v2  ;;  %3751 = vmatprep.subr.bf16.mxu1 %v3907_v2 }
0x1076   :  { %3734 = vmatmul.mubr.msk.bf16.vlgmr.msra.gmra.mxu0 %vm1006_vm5, %v2751_v27  ;;  %3740 = vmatmul.mubr.msk.bf16.vlgmr.msra.gmra.mxu1 %vm1006_vm5, %v2752_v45 }
0x1077   :  { %3747 = vmatprep.mubr.msk.bf16.mxu0 %vm3908_vm0, %v3907_v2  ;;  %3755 = vmatprep.mubr.msk.bf16.mxu1 %vm3908_vm0, %v3907_v2 }
0x1078   :  { %3744 = vmatpush3.bf16.msra.mxu0 %v3816_v25 }
0x1079   :  { %3745 = vmatprep.subr.bf16.mxu0 %v3907_v2 }
0x107c   :  { %3746 = vmatpush3.bf16.msra.mxu0 %v3817_v43 }
0x107d   :  { %3759 = vmatprep.subr.bf16.mxu0 %v3907_v2 }
0x1136   :  { %v2790_v13 = vpop.f32.mrf.mxu0  ;;  %v2834_v15 = vpop.f32.mrf.mxu1 }
0x1137   :  { %v2841_v16 = vcombine.high %v2790_v13, %v3907_v2  ;;  %v2848_v46 = vrot.slane %v2790_v13, %v4103_v4  ;;  %v2856_v47 = vcombine.high %v2834_v15, %v3907_v2  ;;  %v2863_v48 = vrot.slane %v2834_v15, %v4103_v4 }
0x1138   :  { %v3735_v17 = vpop.f32.mrf.mxu0  ;;  %v3741_v50 = vpop.f32.mrf.mxu1 }
0x1139   :  { %v2855_v38 = vrot.slane %v2841_v16, %v4103_v4  ;;  %v2870_v39 = vrot.slane %v2856_v47, %v4103_v4  ;;  %v2871_v52 = vcombine.low %v2848_v46, %v2863_v48  ;;  %v2872_v55 = vcombine.high %v2848_v46, %v2863_v48 }
0x113a   :  { %v2793_v40 = vpop.f32.mrf.mxu0  ;;  %v2837_v57 = vpop.f32.mrf.mxu1 }
0x113b   :  { %v2879_v62 = vrot.slane %v2871_v52, %v4115_v18  ;;  %v2886_v63 = vrot.slane %v2872_v55, %v4115_v18  ;;  %v2887_v0 = vcombine.low %v2855_v38, %v2870_v39  ;;  %v2888_v28 = vcombine.high %v2855_v38, %v2870_v39 }
0x113c   :  { %v2907_v5 = vcombine.high %v2793_v40, %v3907_v2  ;;  %v2914_v6 = vrot.slane %v2793_v40, %v4103_v4  ;;  %v2922_v7 = vcombine.high %v2837_v57, %v3907_v2  ;;  %v2929_v1 = vrot.slane %v2837_v57, %v4103_v4  ;;  %v3736_v3 = vpop.f32.mrf.mxu0  ;;  %v3742_v9 = vpop.f32.mrf.mxu1 }
0x113d   :  { %v2895_v10 = vrot.slane %v2887_v0, %v4115_v18  ;;  %v2902_v60 = vrot.slane %v2888_v28, %v4115_v18  ;;  %v2973_v11 = vcombine.low %v2879_v62, %v2886_v63  ;;  %v3542_v61 = vcombine.high %v2879_v62, %v2886_v63 }
0x113e   :  { %v2921_v12 = vrot.slane %v2907_v5, %v4103_v4  ;;  %v2936_v51 = vrot.slane %v2922_v7, %v4103_v4  ;;  %v2937_v41 = vcombine.low %v2914_v6, %v2929_v1  ;;  %v2938_v58 = vcombine.high %v2914_v6, %v2929_v1 }
0x113f   :  { %v2980_v8 = vrot.slane %v2973_v11, %v4103_v4  ;;  %v2988_v22 = vrot.slane %v3542_v61, %v4103_v4  ;;  %v2989_v14 = vcombine.low %v2895_v10, %v2902_v60  ;;  %v3543_v19 = vcombine.high %v2895_v10, %v2902_v60 }
0x1140   :  { %v2945_v20 = vrot.slane %v2937_v41, %v4115_v18  ;;  %v2952_v53 = vrot.slane %v2938_v58, %v4115_v18  ;;  %v2953_v54 = vcombine.low %v2921_v12, %v2936_v51  ;;  %v2954_v56 = vcombine.high %v2921_v12, %v2936_v51  ;;  %v3818_v41 = vld [vmem:[%s4742_s12 + $0x18] sm:$0xff]   ;;  %v3819_v58 = vld [vmem:[%s4742_s12 + $0x10] sm:$0xff]  }
0x1141   :  { %v2996_v59 = vrot.slane %v2989_v14, %v4103_v4  ;;  %v3004_v23 = vrot.slane %v3543_v19, %v4103_v4  ;;  %v3005_v24 = vcombine.low %v2980_v8, %v2988_v22  ;;  %3752 = vmatpush3.bf16.msra.mxu1 %v3818_v41 }
0x1142   :  { %v2961_v26 = vrot.slane %v2953_v54, %v4115_v18  ;;  %v2968_v31 = vrot.slane %v2954_v56, %v4115_v18  ;;  %v3023_v32 = vcombine.low %v2945_v20, %v2952_v53  ;;  %v3544_v33 = vcombine.high %v2945_v20, %v2952_v53  ;;  %3753 = vmatprep.subr.bf16.mxu1 %v3907_v2 }
0x1143   :  { %v3013_v34 = vcombine.low %v2996_v59, %v3004_v23  ;;  %v3012_v37 = vrot.slane %v3005_v24, %v4115_v18  ;;  %v3557_v59 = vld [vmem:[%s4740_s10 + $0x1] ss:$0 sm:$0xff] }
0x1144   :  { %v3030_v29 = vrot.slane %v3023_v32, %v4103_v4  ;;  %v3038_v35 = vrot.slane %v3544_v33, %v4103_v4  ;;  %v3039_v30 = vcombine.low %v2961_v26, %v2968_v31  ;;  %v3545_v36 = vcombine.high %v2961_v26, %v2968_v31  ;;  %v3558_v31 = vld [vmem:[%s4741_s11 + $0x1] ss:$0 sm:$0xff] }
0x1145   :  { %v3020_v42 = vrot.slane %v3013_v34, %v4115_v18  ;;  %3754 = vmatpush3.bf16.msra.mxu1 %v3819_v58  ;;  %v3583_v58 = vld [vmem:[%s4747_s17] ss:$0 sm:$0xff] }
0x1146   :  { %v3046_v44 = vrot.slane %v3039_v30, %v4103_v4  ;;  %v3054_v27 = vrot.slane %v3545_v36, %v4103_v4  ;;  %v3055_v45 = vcombine.low %v3030_v29, %v3038_v35  ;;  %3771 = vmatprep.subr.bf16.mxu1 %v3907_v2  ;;  %v3820_v35 = vld [vmem:[%s4744_s14 + $0x38] sm:$0xff]   ;;  %v3821_v30 = vld [vmem:[%s4744_s14 + $0x30] sm:$0xff]   ;;  %v3822_v36 = vld [vmem:[%s4744_s14 + $0x28] sm:$0xff]  }
0x1147   :  { %v3021_v25 = vcombine.low %v3012_v37, %v3020_v42  ;;  %v3022_v46 = vcombine.high %v3012_v37, %v3020_v42  ;;  %v3823_v37 = vld [vmem:[%s4744_s14 + $0x20] sm:$0xff]  }
0x1148   :  { %v3063_v13 = vcombine.low %v3046_v44, %v3054_v27  ;;  %v3062_v15 = vrot.slane %v3055_v45, %v4115_v18  ;;  %v3564_v42 = vld [vmem:[%s4743_s13 + $0x1] ss:$0 sm:$0xff] }
0x114a   :  { %v3070_v16 = vrot.slane %v3063_v13, %v4115_v18  ;;  %v3551_v18 = vld [vmem:[%s4739_s9 + $0x1] ss:$0 sm:$0xff] }
0x114c   :  { %v3072_v47 = vcombine.high %v3062_v15, %v3070_v16  ;;  %v3071_v48 = vcombine.low %v3062_v15, %v3070_v16 }
0x114e   :  { %v3795_v17 = vpack.i.bf16 %v3072_v47, %v3022_v46 }
0x1150   :  { %3796 = vrot.lane.b32.xlu1 %v3795_v17, %s3914_s1 }
0x11c2   :  { %v3797_v50 = vpop.permute.xlu1 %3796 }
0x11c3   :  { %v3799_v38 = vunpack.i.h.bf16 %v3797_v50  ;;  %v3798_v39 = vunpack.i.l.bf16 %v3797_v50 }
0x11c5   :  { %v3081_v4 = vsel %vm1006_vm5, %v3021_v25, %v3798_v39  ;;  %v3082_v52 = vsel %vm1006_vm5, %v3071_v48, %v3799_v38 }
0x11c6   :  { %v3083_v55 = vpack.c.bf16 %v3082_v52, %v3081_v4 }
0x11c8   :  { %3748 = vmatmul.mubr.msk.bf16.vlgmr.msra.gmra.mxu0 %vm160_vm4, %v3083_v55 }
0x11c9   :  { %3767 = vmatprep.mubr.msk.bf16.mxu0 %vm3908_vm0, %v3907_v2  ;;  %3760 = vmatpush3.bf16.msra.mxu0 %v3820_v35 }
0x11ca   :  { %3761 = vmatprep.subr.bf16.mxu0 %v3907_v2 }
0x11cd   :  { %3762 = vmatpush3.bf16.msra.mxu0 %v3821_v30 }
0x11ce   :  { %3763 = vmatprep.subr.bf16.mxu0 %v3907_v2 }
0x11d1   :  { %3764 = vmatpush3.bf16.msra.mxu0 %v3822_v36 }
0x11d2   :  { %3765 = vmatprep.subr.bf16.mxu0 %v3907_v2 }
0x11d5   :  { %3766 = vmatpush3.bf16.msra.mxu0 %v3823_v37 }
0x1288   :  { %v3146_v40 = vpop.f32.mrf.mxu0 }
0x1289   :  { %v3147_v57 = vadd.f32 %v3551_v18, %v3146_v40 }
0x128a   :  { %v3749_v62 = vpop.f32.mrf.mxu0 }
0x128b   :  { %v4662_v63 = vadd.f32 %v3147_v57, %v4387_v49 }
0x128c   :  { %v3149_v0 = vpop.f32.mrf.mxu0 }
0x128d   :  { %v3150_v28 = vadd.f32 %v3551_v18, %v3149_v0  ;;  %v3159_v5 = vsel %vm160_vm4, %v4662_v63, 0.0 }
0x128e   :  { %3160 = vadd.xlane.f32.xlu0 %v3159_v5  ;;  %v3750_v6 = vpop.f32.mrf.mxu0 }
0x128f   :  { %v4667_v7 = vadd.f32 %v3150_v28, %v4392_v21  ;;  %v3824_v6 = vld [vmem:[%s4746_s16 + $0x8] sm:$0xff]  }
0x1291   :  { %v3162_v1 = vsel %vm160_vm4, %v4667_v7, 0.0 }
0x1292   :  { %3163 = vadd.xlane.f32.xlu1 %v3162_v1  ;;  %v3825_v1 = vld [vmem:[%s4746_s16] sm:$0xff]  }
0x1317   :  { %v3161_v3 = vpop.xlane.xlu0 %3160 }
0x1318   :  { %v3165_v9 = vmul.f32 0.03125, %v3161_v3 }
0x131a   :  { %v3167_v10 = vsub.f32 %v4662_v63, %v3165_v9  ;;  %v3577_v9 = vld [vmem:[%s4745_s15 + $0x1] ss:$0 sm:$0xff]  ;;  %s3915_s15 = smov [#allocation2]  }
0x131b   :  { %v3164_v49 = vpop.xlane.xlu1 %3163  ;;  %s3456_s8 = sshll.u32 %s3915_s15, 4  ;;  %s3457_s8 = int_to_ptr.vmem [resolvable:$true] %s3456_s8 }
0x131c   :  { %v3166_v60 = vmul.f32 0.03125, %v3164_v49  ;;  %v3169_v11 = vmul.f32 %v3167_v10, %v3167_v10  ;;  %s3884_s19 = scalar_lea.vmem %s3457_s8, 32  ;;  %p3889_p1 = scmp.lt.s32.totalorder %s3457_s8, %s3457_s8 }
0x131d   :  { %p3885_p0 = scmp.ne.s32.totalorder %s3457_s8, %s3884_s19  ;;  %p3890_p2 = scmp.lt.s32.totalorder %s3884_s19, %s3884_s19 }
0x131e   :  { %v3168_v61 = vsub.f32 %v4667_v7, %v3166_v60  ;;  %v3171_v12 = vsel %vm160_vm4, %v3169_v11, 0.0 }
0x131f   :  { %3172 = vadd.xlane.f32.xlu0 %v3171_v12  ;;  %p3891_p3 = por %p3890_p2, %p3889_p1 }
0x1320   :  { %v3170_v51 = vmul.f32 %v3168_v61, %v3168_v61 }
0x1321   :  { %p3892_p4 = pnand %p3891_p3, %p3885_p0 }
0x1322   :  { %v3174_v21 = vsel %vm160_vm4, %v3170_v51, 0.0 }
0x1323   :  { %3175 = vadd.xlane.f32.xlu0 %v3174_v21 }
0x13a8   :  { %v3173_v8 = vpop.xlane.xlu0 %3172 }
0x13a9   :  { %v3177_v22 = vmul.f32 0.03125, %v3173_v8 }
0x13ab   :  { %v3179_v14 = vadd.f32 1e-05, %v3177_v22 }
0x13ac   :  { %v3176_v19 = vpop.xlane.xlu0 %3175 }
0x13ad   :  { %3874 = vrsqrt.f32 %v3179_v14  ;;  %v3178_v20 = vmul.f32 0.03125, %v3176_v19 }
0x13af   :  { %v3180_v53 = vadd.f32 1e-05, %v3178_v20 }
0x13b1   :  { %3876 = vrsqrt.f32 %v3180_v53 }
0x13ba   :  { %v3875_v54 = vpop.eup %3874 }
0x13bb   :  { %v3183_v56 = vmul.f32 %v3875_v54, %v3167_v10 }
0x13bd   :  { %v3191_v26 = vmul.f32 %v3557_v59, %v3183_v56 }
0x13be   :  { %v3877_v23 = vpop.eup %3876 }
0x13bf   :  { %v3184_v24 = vmul.f32 %v3877_v23, %v3168_v61  ;;  %v3199_v33 = vadd.f32 %v3558_v31, %v3191_v26 }
0x13c1   :  { %v3192_v32 = vmul.f32 %v3557_v59, %v3184_v24 }
0x13c3   :  { %v3200_v34 = vadd.f32 %v3558_v31, %v3192_v32 }
0x13c5   :  { %v3201_v29 = vpack.c.bf16 %v3200_v34, %v3199_v33 }
0x13c7   :  { %3756 = vmatmul.mubr.msk.bf16.vlgmr.msra.gmra.mxu1 %vm160_vm4, %v3201_v29 }
0x13c8   :  { %3775 = vmatprep.mubr.msk.bf16.mxu1 %vm3908_vm0, %v3907_v2  ;;  %3772 = vmatpush3.bf16.msra.mxu1 %v3824_v6 }
0x13c9   :  { %3773 = vmatprep.subr.bf16.mxu1 %v3907_v2 }
0x13cc   :  { %3774 = vmatpush3.bf16.msra.mxu1 %v3825_v1 }
0x1487   :  { %v3264_v43 = vpop.f32.mrf.mxu1 }
0x1488   :  { %v3265_v44 = vadd.f32 %v3564_v42, %v3264_v43 }
0x1489   :  { %v3757_v27 = vpop.f32.mrf.mxu1 }
0x148a   :  { %v3271_v45 = vmul.f32 %v3265_v44, %v3265_v44 }
0x148b   :  { %v3267_v25 = vpop.f32.mrf.mxu1 }
0x148c   :  { %v3273_v13 = vmul.f32 %v3271_v45, %v3265_v44  ;;  %v3268_v15 = vadd.f32 %v3564_v42, %v3267_v25 }
0x148d   :  { %v3758_v16 = vpop.f32.mrf.mxu1 }
0x148e   :  { %v3275_v46 = vmul.f32 0.044715, %v3273_v13  ;;  %v3272_v47 = vmul.f32 %v3268_v15, %v3268_v15 }
0x1490   :  { %v3277_v48 = vadd.f32 %v3275_v46, %v3265_v44  ;;  %v3274_v17 = vmul.f32 %v3272_v47, %v3268_v15 }
0x1492   :  { %v3279_v50 = vmul.f32 0.7978846, %v3277_v48  ;;  %v3276_v38 = vmul.f32 0.044715, %v3274_v17 }
0x1494   :  { %3878 = vtanh.f32 %v3279_v50  ;;  %v3278_v39 = vadd.f32 %v3276_v38, %v3268_v15 }
0x1496   :  { %v3280_v4 = vmul.f32 0.7978846, %v3278_v39 }
0x1498   :  { %3880 = vtanh.f32 %v3280_v4 }
0x14a1   :  { %v3879_v52 = vpop.eup %3878 }
0x14a2   :  { %v3283_v55 = vadd.f32 1.0, %v3879_v52 }
0x14a4   :  { %v3285_v40 = vmul.f32 0.5, %v3283_v55 }
0x14a5   :  { %v3881_v18 = vpop.eup %3880 }
0x14a6   :  { %v3284_v57 = vadd.f32 1.0, %v3881_v18  ;;  %v3287_v0 = vmul.f32 %v3285_v40, %v3265_v44 }
0x14a8   :  { %v3286_v62 = vmul.f32 0.5, %v3284_v57 }
0x14aa   :  { %v3288_v28 = vmul.f32 %v3286_v62, %v3268_v15 }
0x14ac   :  { %v3289_v5 = vpack.c.bf16 %v3288_v28, %v3287_v0 }
0x14ae   :  { %3768 = vmatmul.mubr.msk.bf16.vlgmr.msra.gmra.mxu0 %vm111_vm3, %v3289_v5 }
0x156e   :  { %v3368_v3 = vpop.f32.mrf.mxu0 }
0x156f   :  { %v3369_v60 = vadd.f32 %v3577_v9, %v3368_v3 }
0x1570   :  { %v3769_v10 = vpop.f32.mrf.mxu0 }
0x1571   :  { %v3375_v2 = vadd.f32 %v3369_v60, %v4662_v63 }
0x1572   :  { %v3371_v49 = vpop.f32.mrf.mxu0 }
0x1573   :  { %v3372_v11 = vadd.f32 %v3577_v9, %v3371_v49 }
0x1574   :  { %v3770_v61 = vpop.f32.mrf.mxu0 }
0x1575   :  { %v3376_v12 = vadd.f32 %v3372_v11, %v4667_v7 }
0x1577   :  { %v3378_v51 = vrot.slane %v3376_v12, 7 }
0x1579   :  { %v3381_v21 = vsel %vm3380_vm6, %v3375_v2, %v3378_v51 }
0x157a   :  { %v3382_v41 = vpack.c.bf16 %v3381_v21, %v3381_v21 }
0x157c   :  { %3776 = vmatmul.mubr.msk.bf16.vlgmr.msra.gmra.mxu1 %vm160_vm4, %v3382_v41 }
0x163c   :  { %v3443_v8 = vpop.f32.mrf.mxu1 }
0x163d   :  { %v3444_v22 = vadd.f32 %v3583_v58, %v3443_v8 }
0x163e   :  { %v3777_v14 = vpop.f32.mrf.mxu1 }
0x163f   :  { %3449 = vst [vmem:[#allocation2] sm:$0x3] %v3444_v22 }
0x1640   :  { %v3446_v7 = vpop.f32.mrf.mxu1 }
0x1641   :  { %3895 = shalt.err (!%p3892_p4)
}
0x1642   :  { %3459 = dma.vmem_to_hbm [thread:$0]  %s3457_s8, 32, %s4748_s18, [#allocation3]   ;;  %v3778_v63 = vpop.f32.mrf.mxu1 }
0x1643   :  { %3904 = dma.done.wait [#allocation3], 32  }
0x1644   :  { %3905 = vsyncadd [#allocation3], 4294967264 }
0x1645   :  { %3463 = vsyncpa [#allocation3], 1 }

// kernel: multilingual_clip_forward.3
= control target key start
LH: loop header
LB: loop body
LE: loop exit
PB: predicated region body
PF: predicated region fallthrough
CT: control target
= control target key end

     0   :  { %s3913_s0 = inlined_call_operand.vmem [shape: f32[8,192], index: 0, kind: input, shape index: {}]   ;;  %s3914_s1 = inlined_call_operand.vmem [shape: f32[10,10], index: 1, kind: input, shape index: {}]   ;;  %s3915_s2 = inlined_call_operand.vmem [shape: bf16[192,32], index: 2, kind: input, shape index: {}]   ;;  %s3916_s3 = inlined_call_operand.vmem [shape: f32[1,32], index: 3, kind: input, shape index: {}]   ;;  %s3917_s4 = inlined_call_operand.vmem [shape: f32[4,32], index: 4, kind: input, shape index: {}]   ;;  %s3918_s5 = inlined_call_operand.vmem [shape: f32[2,1,32], index: 5, kind: input, shape index: {}]   ;;  %s3919_s6 = inlined_call_operand.vmem [shape: f32[2,1,32], index: 6, kind: input, shape index: {}]   ;;  %s3920_s7 = inlined_call_operand.vmem [shape: bf16[2,32,96], index: 7, kind: input, shape index: {}]   ;;  %s3921_s8 = inlined_call_operand.vmem [shape: f32[2,1,96], index: 8, kind: input, shape index: {}]   ;;  %s3922_s9 = inlined_call_operand.vmem [shape: bf16[2,32,32], index: 9, kind: input, shape index: {}]   ;;  %s3923_s10 = inlined_call_operand.vmem [shape: f32[2,1,32], index: 10, kind: input, shape index: {}]   ;;  %s3924_s11 = inlined_call_operand.vmem [shape: f32[2,1,32], index: 11, kind: input, shape index: {}]   ;;  %s3925_s12 = inlined_call_operand.vmem [shape: f32[2,1,32], index: 12, kind: input, shape index: {}]   ;;  %s3926_s13 = inlined_call_operand.vmem [shape: bf16[2,32,64], index: 13, kind: input, shape index: {}]   ;;  %s3927_s14 = inlined_call_operand.vmem [shape: f32[2,1,64], index: 14, kind: input, shape index: {}]   ;;  %s3928_s15 = inlined_call_operand.vmem [shape: bf16[2,64,32], index: 15, kind: input, shape index: {}]   ;;  %s3929_s16 = inlined_call_operand.vmem [shape: f32[2,1,32], index: 16, kind: input, shape index: {}]   ;;  %s3930_s17 = inlined_call_operand.vmem [shape: bf16[32,128], index: 17, kind: input, shape index: {}]   ;;  %s3931_s18 = inlined_call_operand.vmem [shape: f32[1,128], index: 18, kind: input, shape index: {}]   ;;  %s3932_s19 = inlined_call_operand.hbm [shape: f32[2,128], index: 19, kind: output, shape index: {}]  }
   0x1   :  { %3936 = sst [smem:[#allocation5_spill]] %s3913_s0 }
   0x2   :  { %3937 = sst [smem:[#allocation6_spill]] %s3914_s1 }
   0x3   :  { %3938 = sst [smem:[#allocation7_spill]] %s3915_s2 }
   0x4   :  { %3939 = sst [smem:[#allocation8_spill]] %s3916_s3 }
   0x5   :  { %s3940_s20 = sld [smem:[#allocation7_spill]]  ;;  %v3189_v1 = vmov 0   ;;  %vm164_vm0 = vcmask 523264  }
   0x6   :  { %168 = vmatprep.subr.bf16.mxu0 %v3189_v1  ;;  %s3941_s28 = sld [smem:[#allocation5_spill]] }
   0xb   :  { %v3077_v0 = vld [vmem:[%s3940_s20 + $0x38] sm:$0xff]   ;;  %v3078_v2 = vld [vmem:[%s3940_s20 + $0x30] sm:$0xff]   ;;  %v3079_v3 = vld [vmem:[%s3940_s20 + $0x28] sm:$0xff]  }
   0xc   :  { %169 = vmatpush1.bf16.msra.mxu0 %v3077_v0  ;;  %v3080_v4 = vld [vmem:[%s3940_s20 + $0x20] sm:$0xff]   ;;  %v3081_v5 = vld [vmem:[%s3940_s20 + $0x18] sm:$0xff]   ;;  %v65_v6 = vld [vmem:[%s3941_s28 + $0x8] sm:$0xff] }
   0xd   :  { %170 = vmatprep.subr.bf16.mxu0 %v3189_v1  ;;  %v67_v7 = vpack.c.bf16 %v65_v6, %v65_v6  ;;  %v3082_v8 = vld [vmem:[%s3940_s20 + $0x10] sm:$0xff]   ;;  %v3083_v9 = vld [vmem:[%s3940_s20 + $0x8] sm:$0xff]   ;;  %v3084_v10 = vld [vmem:[%s3940_s20] sm:$0xff]  }
   0xf   :  { %2781 = vmatprep.mubr.msk.bf16.mxu0 %vm164_vm0, %v67_v7 }
  0x10   :  { %171 = vmatpush1.bf16.msra.mxu0 %v3078_v2 }
  0x11   :  { %172 = vmatprep.subr.bf16.mxu0 %v3189_v1 }
  0x14   :  { %173 = vmatpush1.bf16.msra.mxu0 %v3079_v3 }
  0x15   :  { %174 = vmatprep.subr.bf16.mxu0 %v3189_v1 }
  0x18   :  { %175 = vmatpush1.bf16.msra.mxu0 %v3080_v4 }
  0x19   :  { %176 = vmatprep.subr.bf16.mxu0 %v3189_v1 }
  0x1c   :  { %177 = vmatpush1.bf16.msra.mxu0 %v3081_v5 }
  0x1d   :  { %178 = vmatprep.subr.bf16.mxu0 %v3189_v1 }
  0x20   :  { %179 = vmatpush1.bf16.msra.mxu0 %v3082_v8 }
  0x21   :  { %180 = vmatprep.subr.bf16.mxu0 %v3189_v1 }
  0x24   :  { %181 = vmatpush1.bf16.msra.mxu0 %v3083_v9 }
  0x25   :  { %182 = vmatprep.subr.bf16.mxu0 %v3189_v1 }
  0x26   :  { %24 = vsyncpa [#allocation3], 0  ;;  %v3085_v11 = vld [vmem:[%s3940_s20 + $0x58] sm:$0xff]   ;;  %v3086_v12 = vld [vmem:[%s3940_s20 + $0x50] sm:$0xff]   ;;  %v219_v17 = vlaneseq  ;;  %s3942_s2 = sld [smem:[#allocation8_spill]]  ;;  %vm227_vm1 = vcmask 1040384  }
  0x27   :  { %v3087_v13 = vld [vmem:[%s3940_s20 + $0x48] sm:$0xff]   ;;  %v3088_v14 = vld [vmem:[%s3940_s20 + $0x40] sm:$0xff]   ;;  %vm229_vm2 = vcmask 1044480   ;;  %vm231_vm3 = vcmask 1045504   ;;  %vm237_vm4 = vcmask 261120   ;;  %vm241_vm5 = vcmask 254976  }
  0x28   :  { %183 = vmatpush1.bf16.msra.mxu0 %v3084_v10  ;;  %v64_v15 = vld [vmem:[%s3941_s28] sm:$0xff]  ;;  %v3345_v19 = vshrl.u32 %v219_v17, 7  ;;  %v3089_v47 = vld [vmem:[%s3920_s7 + $0x8] sm:$0xff]   ;;  %v3190_v48 = vmov 0.0   ;;  %vm3191_vm6 = vmmov 0   ;;  %s3192_s30 = smov 112  }
  0x29   :  { %192 = vmatprep.subr.bf16.mxu0 %v3189_v1  ;;  %v66_v16 = vpack.c.bf16 %v64_v15, %v64_v15  ;;  %v208_v18 = vld [vmem:[%s3917_s4] sm:$0xf]  ;;  %2929 = vmatprep.subr.bf16.mxu1 %v3190_v48  ;;  %s3193_s21 = smov 96   ;;  %v3195_v17 = vmov 1934713408   ;;  %vm790_vm7 = vcmask 130048  }
  0x2a   :  { %v212_v20 = vrot.slane %v208_v18, 4  ;;  %v221_v21 = vsub.s32 0, %v3345_v19  ;;  %2933 = vmatprep.mubr.msk.bf16.mxu1 %vm3191_vm6, %v3190_v48  ;;  %2930 = vmatpush3.bf16.msra.mxu1 %v3089_v47  ;;  %v3090_v49 = vld [vmem:[%s3920_s7] sm:$0xff]   ;;  %s3943_s20 = sld [smem:[#allocation6_spill]]  ;;  %vm885_vm8 = vcmask 80896   ;;  %vm889_vm9 = vcmask 74752  }
  0x2b   :  { %2931 = vmatprep.subr.bf16.mxu1 %v3190_v48  ;;  %v2782_v58 = vld [vmem:[%s3918_s5] ss:$0 sm:$0xff]  ;;  %s3196_s28 = smov 64   ;;  %s3197_s26 = smov 16  }
  0x2c   :  { %193 = vmatpush2.bf16.msra.mxu0 %v3085_v11  ;;  %v209_v22 = vld [vmem:[%s3942_s2] sm:$0x1] }
  0x2d   :  { %194 = vmatprep.subr.bf16.mxu0 %v3189_v1  ;;  %v222_v27 = vrot.slane %v209_v22, %v221_v21  ;;  %v2783_v62 = vld [vmem:[%s3919_s6] ss:$0 sm:$0xff] }
  0x2e   :  { %2932 = vmatpush3.bf16.msra.mxu1 %v3090_v49  ;;  %v2784_v3 = vld [vmem:[%s3921_s8] ss:$0 sm:$0xff] }
  0x2f   :  { %2937 = vmatprep.subr.bf16.mxu1 %v3190_v48 }
  0x30   :  { %195 = vmatpush2.bf16.msra.mxu0 %v3086_v12  ;;  %v3194_v12 = vmov 1983009808  }
  0x31   :  { %196 = vmatprep.subr.bf16.mxu0 %v3189_v1 }
  0x34   :  { %197 = vmatpush2.bf16.msra.mxu0 %v3087_v13  ;;  %v359_v13 = vunpack.c.l.s4 %v3194_v12 }
  0x35   :  { %198 = vmatprep.subr.bf16.mxu0 %v3189_v1 }
  0x38   :  { %199 = vmatpush2.bf16.msra.mxu0 %v3088_v14  ;;  %v360_v14 = vunpack.c.0.s8 %v359_v13 }
  0x39   :  { %2969 = vmatprep.subr.bf16.mxu0 %v3190_v48 }
  0x3b   :  { %201 = vmatmul.mubr.bf16.vlgmr.msra.gmra.mxu0 %v66_v16  ;;  %v3415_v16 = vsub.s32 %v360_v14, %v3345_v19 }
  0x3c   :  { %2973 = vmatprep.mubr.msk.bf16.mxu0 %vm3191_vm6, %v3190_v48 }
  0xfb   :  { %v202_v23 = vpop.f32.mrf.mxu0 }
  0xfc   :  { %v210_v24 = vadd.f32 %v208_v18, %v202_v23  ;;  %v214_v25 = vadd.f32 %v212_v20, %v202_v23  ;;  %v390_v18 = vunpack.c.l.s4 %v3195_v17 }
  0xfd   :  { %v204_v26 = vpop.f32.mrf.mxu0 }
  0xfe   :  { %v216_v28 = vrot.slane %v210_v24, 7  ;;  %v3351_v30 = vrot.slane %v214_v25, 6 }
  0xff   :  { %v205_v29 = vpop.f32.mrf.mxu0 }
 0x100   :  { %v228_v31 = vsel %vm227_vm1, %v209_v22, %v216_v28  ;;  %v242_v36 = vsel %vm241_vm5, %v3351_v30, 0.0  ;;  %v391_v22 = vunpack.c.0.s8 %v390_v18 }
 0x101   :  { %v206_v32 = vpop.f32.mrf.mxu0  ;;  %v230_v33 = vsel %vm229_vm2, %v228_v31, %v222_v27 }
 0x102   :  { %v3356_v34 = vsel %vm231_vm3, %v230_v33, %v3351_v30  ;;  %v3427_v31 = vsub.s32 %v391_v22, %v3345_v19 }
 0x103   :  { %v238_v35 = vsel %vm237_vm4, %v3356_v34, 0.0 }
 0x104   :  { %239 = vadd.xlane.f32.xlu0 %v238_v35 }
 0x108   :  { %243 = vadd.xlane.f32.xlu0 %v242_v36 }
 0x18d   :  { %v240_v37 = vpop.xlane.xlu0 %239 }
 0x18e   :  { %v246_v38 = vmul.f32 0.03125, %v240_v37 }
 0x190   :  { %v248_v39 = vsub.f32 %v3356_v34, %v246_v38 }
 0x191   :  { %v244_v40 = vpop.xlane.xlu0 %243 }
 0x192   :  { %v247_v41 = vmul.f32 0.03125, %v244_v40  ;;  %v250_v42 = vmul.f32 %v248_v39, %v248_v39 }
 0x194   :  { %v249_v43 = vsub.f32 %v3351_v30, %v247_v41  ;;  %v252_v44 = vsel %vm237_vm4, %v250_v42, 0.0 }
 0x195   :  { %253 = vadd.xlane.f32.xlu1 %v252_v44 }
 0x196   :  { %v251_v45 = vmul.f32 %v249_v43, %v249_v43 }
 0x198   :  { %v255_v46 = vsel %vm241_vm5, %v251_v45, 0.0 }
 0x199   :  { %256 = vadd.xlane.f32.xlu1 %v255_v46 }
 0x21e   :  { %v254_v50 = vpop.xlane.xlu1 %253 }
 0x21f   :  { %v258_v51 = vmul.f32 0.03125, %v254_v50 }
 0x221   :  { %v260_v52 = vadd.f32 1e-05, %v258_v51 }
 0x222   :  { %v257_v53 = vpop.xlane.xlu1 %256 }
 0x223   :  { %3111 = vrsqrt.f32 %v260_v52  ;;  %v259_v54 = vmul.f32 0.03125, %v257_v53 }
 0x225   :  { %v261_v55 = vadd.f32 1e-05, %v259_v54 }
 0x227   :  { %3113 = vrsqrt.f32 %v261_v55 }
 0x230   :  { %v3112_v56 = vpop.eup %3111 }
 0x231   :  { %v264_v57 = vmul.f32 %v3112_v56, %v248_v39 }
 0x233   :  { %v272_v61 = vmul.f32 %v2782_v58, %v264_v57 }
 0x234   :  { %v3114_v59 = vpop.eup %3113 }
 0x235   :  { %v265_v60 = vmul.f32 %v3114_v59, %v249_v43  ;;  %v280_v0 = vadd.f32 %v2783_v62, %v272_v61 }
 0x237   :  { %v273_v63 = vmul.f32 %v2782_v58, %v265_v60 }
 0x239   :  { %v281_v1 = vadd.f32 %v2783_v62, %v273_v63 }
 0x23b   :  { %v282_v2 = vpack.c.bf16 %v281_v1, %v280_v0 }
 0x23d   :  { %2934 = vmatmul.mubr.msk.bf16.vlgmr.msra.gmra.mxu1 %vm237_vm4, %v282_v2 }
 0x23e   :  { %2939 = vmatprep.mubr.msk.bf16.mxu1 %vm3191_vm6, %v3190_v48 }
 0x2fd   :  { %v343_v4 = vpop.f32.mrf.mxu1 }
 0x2fe   :  { %v3392_v5 = vadd.f32 %v2784_v3, %v343_v4 }
 0x2ff   :  { %v2935_v6 = vpop.f32.mrf.mxu1 }
 0x300   :  { %352 = vrot.lane.b32.xlu0 %v3392_v5, %s3192_s30  ;;  %v357_v20 = vcombine.high %v3392_v5, %v3190_v48  ;;  %v364_v26 = vrot.slane %v3392_v5, %v3415_v16 }
 0x301   :  { %v346_v7 = vpop.f32.mrf.mxu1 }
 0x302   :  { %v3396_v8 = vadd.f32 %v2784_v3, %v346_v7  ;;  %v371_v23 = vrot.slane %v357_v20, %v3415_v16 }
 0x303   :  { %v2936_v9 = vpop.f32.mrf.mxu1 }
 0x304   :  { %496 = vrot.lane.b32.xlu0 %v3396_v8, %s3193_s21  ;;  %354 = vrot.lane.b32.xlu1 %v3396_v8, %s3192_s30 }
 0x308   :  { %494 = vrot.lane.b32.xlu1 %v3392_v5, %s3193_s21 }
 0x372   :  { %v3404_v10 = vpop.permute.xlu0 %352 }
 0x373   :  { %498 = vrot.lane.b32.xlu1 %v3404_v10, %s3193_s21  ;;  %v372_v15 = vcombine.high %v3404_v10, %v3190_v48  ;;  %v379_v24 = vrot.slane %v3404_v10, %v3415_v16 }
 0x375   :  { %v386_v21 = vrot.slane %v372_v15, %v3415_v16  ;;  %v387_v32 = vcombine.low %v364_v26, %v379_v24  ;;  %v388_v33 = vcombine.high %v364_v26, %v379_v24 }
 0x376   :  { %v3408_v11 = vpop.permute.xlu1 %354  ;;  %v497_v47 = vpop.permute.xlu0 %496 }
 0x377   :  { %500 = vrot.lane.b32.xlu1 %v3408_v11, %s3193_s21  ;;  %v403_v27 = vcombine.low %v371_v23, %v386_v21  ;;  %v404_v28 = vcombine.high %v371_v23, %v386_v21  ;;  %v395_v44 = vrot.slane %v387_v32, %v3427_v31  ;;  %v402_v45 = vrot.slane %v388_v33, %v3427_v31 }
 0x378   :  { %v424_v62 = vcombine.low %v3396_v8, %v3408_v11 }
 0x379   :  { %v411_v39 = vrot.slane %v403_v27, %v3427_v31  ;;  %v418_v40 = vrot.slane %v404_v28, %v3427_v31  ;;  %v432_v60 = vcombine.low %v395_v44, %v402_v45  ;;  %v2788_v61 = vcombine.high %v395_v44, %v402_v45  ;;  %v3477_v45 = vld [vmem:[%s3943_s20] sm:$0xff] }
 0x37a   :  { %v495_v25 = vpop.permute.xlu1 %494  ;;  %v431_v14 = vrot.slane %v424_v62, %v3427_v31 }
 0x37b   :  { %v504_v29 = vcombine.high %v495_v25, %v3190_v48  ;;  %v511_v36 = vrot.slane %v495_v25, %v3415_v16  ;;  %v448_v53 = vcombine.low %v411_v39, %v418_v40  ;;  %v2789_v54 = vcombine.high %v411_v39, %v418_v40 }
 0x37c   :  { %v439_v15 = vrot.slane %v432_v60, %v3415_v16  ;;  %v447_v17 = vrot.slane %v2788_v61, %v3415_v16  ;;  %v482_v25 = vcombine.high %v431_v14, %v3190_v48 }
 0x37d   :  { %v518_v41 = vrot.slane %v504_v29, %v3415_v16  ;;  %v455_v4 = vrot.slane %v448_v53, %v3415_v16  ;;  %v463_v7 = vrot.slane %v2789_v54, %v3415_v16 }
 0x37e   :  { %v464_v24 = vcombine.low %v439_v15, %v447_v17  ;;  %v483_v33 = vcombine.low %v431_v14, %v482_v25 }
 0x37f   :  { %v472_v21 = vcombine.low %v455_v4, %v463_v7 }
 0x380   :  { %v471_v32 = vrot.slane %v464_v24, %v3427_v31  ;;  %v490_v39 = vrot.slane %v483_v33, %v3427_v31 }
 0x381   :  { %v479_v28 = vrot.slane %v472_v21, %v3427_v31 }
 0x3e5   :  { %v499_v35 = vpop.permute.xlu1 %498 }
 0x3e6   :  { %v519_v37 = vcombine.high %v499_v35, %v3190_v48  ;;  %v526_v38 = vrot.slane %v499_v35, %v3415_v16 }
 0x3e8   :  { %v533_v42 = vrot.slane %v519_v37, %v3415_v16  ;;  %v534_v43 = vcombine.low %v511_v36, %v526_v38  ;;  %v535_v19 = vcombine.high %v511_v36, %v526_v38  ;;  %v480_v37 = vcombine.low %v471_v32, %v479_v28 }
 0x3e9   :  { %v501_v46 = vpop.permute.xlu1 %500 }
 0x3ea   :  { %v542_v49 = vrot.slane %v534_v43, %v3427_v31  ;;  %v549_v50 = vrot.slane %v535_v19, %v3427_v31  ;;  %v550_v51 = vcombine.low %v518_v41, %v533_v42  ;;  %v551_v52 = vcombine.high %v518_v41, %v533_v42 }
 0x3eb   :  { %v572_v55 = vcombine.low %v497_v47, %v501_v46  ;;  %v492_v41 = vpack.c.bf16 %v490_v39, %v480_v37  ;;  %v481_v43 = vcombine.high %v471_v32, %v479_v28  ;;  %v491_v19 = vcombine.high %v490_v39, %v3190_v48 }
 0x3ec   :  { %v558_v56 = vrot.slane %v550_v51, %v3427_v31  ;;  %v565_v57 = vrot.slane %v551_v52, %v3427_v31  ;;  %v580_v58 = vcombine.low %v542_v49, %v549_v50  ;;  %v2790_v59 = vcombine.high %v542_v49, %v549_v50  ;;  %v3483_v50 = vld [vmem:[%s3943_s20 + $0x8] sm:$0x3] }
 0x3ed   :  { %v579_v63 = vrot.slane %v572_v55, %v3427_v31  ;;  %v493_v44 = vpack.c.bf16 %v491_v19, %v481_v43 }
 0x3ee   :  { %v587_v0 = vrot.slane %v580_v58, %v3415_v16  ;;  %v595_v1 = vrot.slane %v2790_v59, %v3415_v16  ;;  %v596_v2 = vcombine.low %v558_v56, %v565_v57  ;;  %v2791_v3 = vcombine.high %v558_v56, %v565_v57 }
 0x3ef   :  { %v630_v6 = vcombine.high %v579_v63, %v3190_v48 }
 0x3f0   :  { %v603_v9 = vrot.slane %v596_v2, %v3415_v16  ;;  %v611_v12 = vrot.slane %v2791_v3, %v3415_v16  ;;  %v612_v13 = vcombine.low %v587_v0, %v595_v1 }
 0x3f1   :  { %v631_v18 = vcombine.low %v579_v63, %v630_v6 }
 0x3f2   :  { %v620_v20 = vcombine.low %v603_v9, %v611_v12  ;;  %v619_v22 = vrot.slane %v612_v13, %v3427_v31 }
 0x3f3   :  { %v638_v26 = vrot.slane %v631_v18, %v3427_v31 }
 0x3f4   :  { %v627_v23 = vrot.slane %v620_v20, %v3427_v31 }
 0x3f5   :  { %v639_v38 = vcombine.high %v638_v26, %v3190_v48 }
 0x3f6   :  { %v628_v27 = vcombine.low %v619_v22, %v627_v23  ;;  %v629_v36 = vcombine.high %v619_v22, %v627_v23 }
 0x3f8   :  { %v640_v29 = vpack.c.bf16 %v638_v26, %v628_v27  ;;  %v641_v40 = vpack.c.bf16 %v639_v38, %v629_v36 }
 0x3fa   :  { %v795_v35 = vsel %vm790_vm7, %v640_v29, 0  ;;  %v842_v42 = vsel %vm790_vm7, %v641_v40, 0 }
 0x3fb   :  { %2938 = vmatpush3.bf16.xpose.msra.mxu1 %v795_v35 }
 0x3fc   :  { %2943 = vmatprep.subr.bf16.mxu1 %v3190_v48 }
 0x402   :  { %2940 = vmatmul.mubr.msk.bf16.vlgmr.msra.gmra.mxu1 %vm790_vm7, %v492_v41 }
 0x403   :  { %2944 = vmatpush3.bf16.xpose.msra.mxu1 %v842_v42  ;;  %2945 = vmatprep.mubr.msk.bf16.mxu1 %vm3191_vm6, %v3190_v48 }
 0x404   :  { %2949 = vmatprep.subr.bf16.mxu1 %v3190_v48 }
 0x40a   :  { %2946 = vmatmul.mubr.msk.bf16.vlgmr.msra.gmra.mxu1 %vm790_vm7, %v493_v44 }
 0x40b   :  { %2951 = vmatprep.mubr.msk.bf16.mxu1 %vm3191_vm6, %v3190_v48 }
 0x4c2   :  { %v831_v46 = vpop.f32.mrf.mxu1 }
 0x4c3   :  { %v832_v47 = vadd.f32 %v831_v46, %v3477_v45 }
 0x4c4   :  { %v2941_v49 = vpop.f32.mrf.mxu1 }
 0x4c5   :  { %v886_v51 = vsel %vm885_vm8, %v832_v47, -inf }
 0x4c6   :  { %887 = vmax.xlane.f32.xlu0 %v886_v51  ;;  %v834_v52 = vpop.f32.mrf.mxu1 }
 0x4c7   :  { %v835_v53 = vadd.f32 %v834_v52, %v3483_v50 }
 0x4c8   :  { %v2942_v54 = vpop.f32.mrf.mxu1 }
 0x4c9   :  { %v890_v55 = vsel %vm889_vm9, %v835_v53, -inf }
 0x4ca   :  { %891 = vmax.xlane.f32.xlu1 %v890_v55  ;;  %v878_v56 = vpop.f32.mrf.mxu1 }
 0x4cb   :  { %v879_v57 = vadd.f32 %v878_v56, %v3477_v45 }
 0x4cc   :  { %v2947_v58 = vpop.f32.mrf.mxu1 }
 0x4cd   :  { %v893_v59 = vsel %vm885_vm8, %v879_v57, -inf }
 0x4ce   :  { %894 = vmax.xlane.f32.xlu0 %v893_v59  ;;  %v881_v60 = vpop.f32.mrf.mxu1 }
 0x4cf   :  { %v882_v61 = vadd.f32 %v881_v60, %v3483_v50 }
 0x4d0   :  { %v2948_v62 = vpop.f32.mrf.mxu1 }
 0x4d1   :  { %v896_v63 = vsel %vm889_vm9, %v882_v61, -inf }
 0x4d2   :  { %897 = vmax.xlane.f32.xlu0 %v896_v63 }
 0x4db   :  { %646 = vrot.lane.b32.xlu1 %v3404_v10, %s3196_s28 }
 0x4e8   :  { %642 = vrot.lane.b32.xlu0 %v3392_v5, %s3196_s28 }
 0x54f   :  { %v888_v0 = vpop.xlane.xlu0 %887 }
 0x550   :  { %v899_v1 = vsub.f32 %v832_v47, %v888_v0 }
 0x552   :  { %v903_v2 = vmul.f32 1.442695, %v899_v1 }
 0x553   :  { %v892_v3 = vpop.xlane.xlu1 %891 }
 0x554   :  { %3115 = vpow2.f32 %v903_v2  ;;  %v900_v4 = vsub.f32 %v835_v53, %v892_v3 }
 0x556   :  { %v905_v6 = vmul.f32 1.442695, %v900_v4 }
 0x557   :  { %v895_v7 = vpop.xlane.xlu0 %894  ;;  %v647_v25 = vpop.permute.xlu1 %646 }
 0x558   :  { %3117 = vpow2.f32 %v905_v6  ;;  %v901_v9 = vsub.f32 %v879_v57, %v895_v7  ;;  %v667_v27 = vcombine.high %v647_v25, %v3190_v48  ;;  %v674_v33 = vrot.slane %v647_v25, %v3415_v16  ;;  %v3091_v25 = vld [vmem:[%s3922_s9 + $0x8] sm:$0xff]  }
 0x55a   :  { %v907_v12 = vmul.f32 1.442695, %v901_v9  ;;  %v681_v29 = vrot.slane %v667_v27, %v3415_v16 }
 0x55b   :  { %v898_v13 = vpop.xlane.xlu0 %897 }
 0x55c   :  { %3119 = vpow2.f32 %v907_v12  ;;  %v902_v14 = vsub.f32 %v882_v61, %v898_v13 }
 0x55e   :  { %v909_v15 = vmul.f32 1.442695, %v902_v14 }
 0x55f   :  { %v643_v24 = vpop.permute.xlu0 %642 }
 0x560   :  { %3121 = vpow2.f32 %v909_v15  ;;  %v652_v26 = vcombine.high %v643_v24, %v3190_v48  ;;  %v659_v32 = vrot.slane %v643_v24, %v3415_v16 }
 0x561   :  { %v3496_v10 = vpop.eup %3115 }
 0x562   :  { %v911_v5 = vsel %vm885_vm8, %v3496_v10, 0.0  ;;  %v666_v28 = vrot.slane %v652_v26, %v3415_v16  ;;  %v683_v37 = vcombine.high %v659_v32, %v674_v33 }
 0x563   :  { %912 = vadd.xlane.f32.xlu0 %v911_v5 }
 0x564   :  { %v698_v35 = vcombine.low %v666_v28, %v681_v29  ;;  %v699_v36 = vcombine.high %v666_v28, %v681_v29  ;;  %v697_v41 = vrot.slane %v683_v37, %v3427_v31 }
 0x565   :  { %v3118_v17 = vpop.eup %3117 }
 0x566   :  { %v914_v18 = vsel %vm889_vm9, %v3118_v17, 0.0  ;;  %v713_v38 = vrot.slane %v699_v36, %v3427_v31 }
 0x567   :  { %915 = vadd.xlane.f32.xlu1 %v914_v18 }
 0x569   :  { %v3501_v20 = vpop.eup %3119 }
 0x56a   :  { %v917_v21 = vsel %vm885_vm8, %v3501_v20, 0.0 }
 0x56b   :  { %918 = vadd.xlane.f32.xlu1 %v917_v21 }
 0x56d   :  { %v3505_v22 = vpop.eup %3121 }
 0x56e   :  { %v920_v23 = vsel %vm889_vm9, %v3505_v22, 0.0 }
 0x56f   :  { %921 = vadd.xlane.f32.xlu0 %v920_v23 }
 0x57c   :  { %648 = vrot.lane.b32.xlu1 %v3408_v11, %s3196_s28  ;;  %v682_v11 = vcombine.low %v659_v32, %v674_v33 }
 0x57e   :  { %v690_v40 = vrot.slane %v682_v11, %v3427_v31 }
 0x580   :  { %v728_v46 = vcombine.low %v690_v40, %v697_v41  ;;  %v2792_v47 = vcombine.high %v690_v40, %v697_v41 }
 0x582   :  { %v735_v53 = vrot.slane %v728_v46, %v3415_v16  ;;  %v743_v54 = vrot.slane %v2792_v47, %v3415_v16 }
 0x584   :  { %v760_v60 = vcombine.low %v735_v53, %v743_v54 }
 0x585   :  { %644 = vrot.lane.b32.xlu0 %v3396_v8, %s3196_s28  ;;  %v706_v8 = vrot.slane %v698_v35, %v3427_v31 }
 0x586   :  { %v767_v0 = vrot.slane %v760_v60, %v3427_v31 }
 0x587   :  { %v744_v43 = vcombine.low %v706_v8, %v713_v38  ;;  %v2793_v19 = vcombine.high %v706_v8, %v713_v38 }
 0x589   :  { %v751_v51 = vrot.slane %v744_v43, %v3415_v16  ;;  %v759_v52 = vrot.slane %v2793_v19, %v3415_v16 }
 0x58b   :  { %v768_v58 = vcombine.low %v751_v51, %v759_v52 }
 0x58d   :  { %v775_v62 = vrot.slane %v768_v58, %v3427_v31 }
 0x58f   :  { %v776_v3 = vcombine.low %v767_v0, %v775_v62  ;;  %v777_v9 = vcombine.high %v767_v0, %v775_v62 }
 0x5ec   :  { %v913_v42 = vpop.xlane.xlu0 %912 }
 0x5f0   :  { %v916_v39 = vpop.xlane.xlu1 %915 }
 0x5f1   :  { %3123 = vrcp.f32 %v916_v39 }
 0x5f2   :  { %3125 = vrcp.f32 %v913_v42 }
 0x5f4   :  { %v919_v44 = vpop.xlane.xlu1 %918 }
 0x5f8   :  { %v922_v49 = vpop.xlane.xlu0 %921  ;;  %v649_v55 = vpop.permute.xlu1 %648 }
 0x5f9   :  { %3127 = vrcp.f32 %v922_v49 }
 0x5fa   :  { %3129 = vrcp.f32 %v919_v44 }
 0x5fc   :  { %v645_v56 = vpop.permute.xlu0 %644 }
 0x5fd   :  { %v720_v57 = vcombine.low %v645_v56, %v649_v55 }
 0x5fe   :  { %v3124_v1 = vpop.eup %3123 }
 0x5ff   :  { %v727_v59 = vrot.slane %v720_v57, %v3427_v31  ;;  %v3126_v4 = vpop.eup %3125  ;;  %v928_v7 = vmul.f32 %v3124_v1, %v3118_v17  ;;  %v3092_v57 = vld [vmem:[%s3922_s9] sm:$0xff]  }
 0x600   :  { %v927_v14 = vmul.f32 %v3126_v4, %v3496_v10 }
 0x601   :  { %v778_v61 = vcombine.high %v727_v59, %v3190_v48 }
 0x602   :  { %v931_v5 = vpack.c.bf16 %v928_v7, %v927_v14 }
 0x603   :  { %v779_v63 = vcombine.low %v727_v59, %v778_v61 }
 0x605   :  { %v786_v2 = vrot.slane %v779_v63, %v3427_v31 }
 0x606   :  { %v3128_v18 = vpop.eup %3127 }
 0x607   :  { %v788_v6 = vpack.c.bf16 %v786_v2, %v776_v3  ;;  %v787_v12 = vcombine.high %v786_v2, %v3190_v48  ;;  %v3130_v23 = vpop.eup %3129  ;;  %v930_v17 = vmul.f32 %v3128_v18, %v3505_v22  ;;  %v2800_v18 = vld [vmem:[%s3923_s10] ss:$0 sm:$0xff] }
 0x608   :  { %v929_v10 = vmul.f32 %v3130_v23, %v3501_v20 }
 0x609   :  { %v937_v13 = vsel %vm229_vm2, %v788_v6, 0  ;;  %v789_v15 = vpack.c.bf16 %v787_v12, %v777_v9 }
 0x60a   :  { %2950 = vmatpush3.bf16.msra.mxu1 %v937_v13  ;;  %v932_v24 = vpack.c.bf16 %v930_v17, %v929_v10 }
 0x60b   :  { %2955 = vmatprep.subr.bf16.mxu1 %v3190_v48  ;;  %v984_v21 = vsel %vm229_vm2, %v789_v15, 0 }
 0x60d   :  { %2952 = vmatmul.mubr.msk.bf16.vlgmr.msra.gmra.mxu1 %vm885_vm8, %v931_v5 }
 0x60e   :  { %2956 = vmatpush3.bf16.msra.mxu1 %v984_v21  ;;  %2957 = vmatprep.mubr.msk.bf16.mxu1 %vm3191_vm6, %v3190_v48 }
 0x60f   :  { %2961 = vmatprep.subr.bf16.mxu1 %v3190_v48 }
 0x615   :  { %2958 = vmatmul.mubr.msk.bf16.vlgmr.msra.gmra.mxu1 %vm885_vm8, %v932_v24 }
 0x616   :  { %2965 = vmatprep.mubr.msk.bf16.mxu1 %vm3191_vm6, %v3190_v48  ;;  %2962 = vmatpush3.bf16.msra.mxu1 %v3091_v25 }
 0x617   :  { %2963 = vmatprep.subr.bf16.mxu1 %v3190_v48 }
 0x61a   :  { %2964 = vmatpush3.bf16.msra.mxu1 %v3092_v57 }
 0x61b   :  { %2977 = vmatprep.subr.bf16.mxu1 %v3190_v48 }
 0x6cd   :  { %v973_v26 = vpop.f32.mrf.mxu1 }
 0x6ce   :  { %v1027_v29 = vcombine.high %v973_v26, %v3190_v48  ;;  %v1034_v32 = vrot.slane %v973_v26, %v3415_v16 }
 0x6cf   :  { %v2953_v27 = vpop.f32.mrf.mxu1 }
 0x6d0   :  { %v1041_v11 = vrot.slane %v1027_v29, %v3415_v16 }
 0x6d1   :  { %v976_v22 = vpop.f32.mrf.mxu1 }
 0x6d3   :  { %v2954_v28 = vpop.f32.mrf.mxu1 }
 0x6d5   :  { %v1020_v20 = vpop.f32.mrf.mxu1 }
 0x6d6   :  { %v1042_v33 = vcombine.high %v1020_v20, %v3190_v48  ;;  %v1049_v35 = vrot.slane %v1020_v20, %v3415_v16 }
 0x6d7   :  { %v2959_v36 = vpop.f32.mrf.mxu1 }
 0x6d8   :  { %v1056_v37 = vrot.slane %v1042_v33, %v3415_v16  ;;  %v1057_v8 = vcombine.low %v1034_v32, %v1049_v35  ;;  %v1058_v38 = vcombine.high %v1034_v32, %v1049_v35 }
 0x6d9   :  { %v1023_v39 = vpop.f32.mrf.mxu1 }
 0x6da   :  { %v1065_v40 = vrot.slane %v1057_v8, %v3427_v31  ;;  %v1072_v41 = vrot.slane %v1058_v38, %v3427_v31  ;;  %v1073_v42 = vcombine.low %v1041_v11, %v1056_v37  ;;  %v1074_v43 = vcombine.high %v1041_v11, %v1056_v37  ;;  %v3093_v8 = vld [vmem:[%s3926_s13 + $0x8] sm:$0xff]   ;;  %v3094_v38 = vld [vmem:[%s3926_s13] sm:$0xff]  }
 0x6db   :  { %v1093_v19 = vcombine.low %v976_v22, %v1023_v39  ;;  %v2960_v44 = vpop.f32.mrf.mxu1  ;;  %2970 = vmatpush3.bf16.msra.mxu0 %v3093_v8 }
 0x6dc   :  { %v1081_v46 = vrot.slane %v1073_v42, %v3427_v31  ;;  %v1088_v47 = vrot.slane %v1074_v43, %v3427_v31  ;;  %v1101_v49 = vcombine.low %v1065_v40, %v1072_v41  ;;  %v2798_v51 = vcombine.high %v1065_v40, %v1072_v41  ;;  %2971 = vmatprep.subr.bf16.mxu0 %v3190_v48 }
 0x6dd   :  { %v1100_v52 = vrot.slane %v1093_v19, %v3427_v31 }
 0x6de   :  { %v1108_v53 = vrot.slane %v1101_v49, %v3415_v16  ;;  %v1116_v54 = vrot.slane %v2798_v51, %v3415_v16  ;;  %v1117_v55 = vcombine.low %v1081_v46, %v1088_v47  ;;  %v2799_v56 = vcombine.high %v1081_v46, %v1088_v47  ;;  %v2804_v47 = vld [vmem:[%s3924_s11] ss:$0 sm:$0xff] }
 0x6df   :  { %v1151_v58 = vcombine.high %v1100_v52, %v3190_v48  ;;  %2972 = vmatpush3.bf16.msra.mxu0 %v3094_v38 }
 0x6e0   :  { %v1124_v59 = vrot.slane %v1117_v55, %v3415_v16  ;;  %v1132_v60 = vrot.slane %v2799_v56, %v3415_v16  ;;  %v1133_v61 = vcombine.low %v1108_v53, %v1116_v54  ;;  %2989 = vmatprep.subr.bf16.mxu0 %v3190_v48  ;;  %v2805_v53 = vld [vmem:[%s3925_s12] ss:$0 sm:$0xff] }
 0x6e1   :  { %v1152_v62 = vcombine.low %v1100_v52, %v1151_v58  ;;  %v3095_v58 = vld [vmem:[%s3928_s15 + $0x18] sm:$0xff]  }
 0x6e2   :  { %v1141_v63 = vcombine.low %v1124_v59, %v1132_v60  ;;  %v1140_v1 = vrot.slane %v1133_v61, %v3427_v31  ;;  %v3096_v59 = vld [vmem:[%s3928_s15 + $0x10] sm:$0xff]   ;;  %v3097_v60 = vld [vmem:[%s3928_s15 + $0x8] sm:$0xff]   ;;  %v3098_v61 = vld [vmem:[%s3928_s15] sm:$0xff]  }
 0x6e3   :  { %v1159_v0 = vrot.slane %v1152_v62, %v3427_v31  ;;  %v2806_v62 = vld [vmem:[%s3927_s14] ss:$0 sm:$0xff] }
 0x6e4   :  { %v1148_v2 = vrot.slane %v1141_v63, %v3427_v31 }
 0x6e5   :  { %v1160_v6 = vcombine.high %v1159_v0, %v3190_v48 }
 0x6e6   :  { %v1149_v3 = vcombine.low %v1140_v1, %v1148_v2  ;;  %v1150_v4 = vcombine.high %v1140_v1, %v1148_v2 }
 0x6e8   :  { %v3067_v7 = vpack.i.bf16 %v1160_v6, %v1150_v4 }
 0x6ea   :  { %3068 = vrot.lane.b32.xlu1 %v3067_v7, %s3197_s26 }
 0x75c   :  { %v3069_v9 = vpop.permute.xlu1 %3068 }
 0x75d   :  { %v3071_v12 = vunpack.i.h.bf16 %v3069_v9  ;;  %v3070_v13 = vunpack.i.l.bf16 %v3069_v9 }
 0x75f   :  { %v1170_v14 = vsel %vm790_vm7, %v1159_v0, %v3071_v12  ;;  %v1169_v15 = vsel %vm790_vm7, %v1149_v3, %v3070_v13 }
 0x760   :  { %v1171_v5 = vpack.c.bf16 %v1170_v14, %v1169_v15 }
 0x762   :  { %2966 = vmatmul.mubr.msk.bf16.vlgmr.msra.gmra.mxu1 %vm237_vm4, %v1171_v5 }
 0x763   :  { %2985 = vmatprep.mubr.msk.bf16.mxu1 %vm3191_vm6, %v3190_v48  ;;  %2978 = vmatpush3.bf16.msra.mxu1 %v3095_v58 }
 0x764   :  { %2979 = vmatprep.subr.bf16.mxu1 %v3190_v48 }
 0x767   :  { %2980 = vmatpush3.bf16.msra.mxu1 %v3096_v59 }
 0x768   :  { %2981 = vmatprep.subr.bf16.mxu1 %v3190_v48 }
 0x76b   :  { %2982 = vmatpush3.bf16.msra.mxu1 %v3097_v60  ;;  %v2818_v60 = vld [vmem:[%s3918_s5 + $0x1] ss:$0 sm:$0xff] }
 0x76c   :  { %2983 = vmatprep.subr.bf16.mxu1 %v3190_v48 }
 0x76f   :  { %2984 = vmatpush3.bf16.msra.mxu1 %v3098_v61 }
 0x770   :  { %3003 = vmatprep.subr.bf16.mxu1 %v3190_v48 }
 0x822   :  { %v1232_v21 = vpop.f32.mrf.mxu1 }
 0x823   :  { %v1233_v23 = vadd.f32 %v2800_v18, %v1232_v21 }
 0x824   :  { %v2967_v17 = vpop.f32.mrf.mxu1 }
 0x825   :  { %v3584_v10 = vadd.f32 %v1233_v23, %v3356_v34 }
 0x826   :  { %v1235_v24 = vpop.f32.mrf.mxu1 }
 0x827   :  { %v1236_v25 = vadd.f32 %v2800_v18, %v1235_v24  ;;  %v1243_v26 = vsel %vm237_vm4, %v3584_v10, 0.0 }
 0x828   :  { %1244 = vadd.xlane.f32.xlu1 %v1243_v26  ;;  %v2968_v27 = vpop.f32.mrf.mxu1 }
 0x829   :  { %v3589_v22 = vadd.f32 %v1236_v25, %v3351_v30 }
 0x82b   :  { %v1246_v28 = vsel %vm241_vm5, %v3589_v22, 0.0 }
 0x82c   :  { %1247 = vadd.xlane.f32.xlu0 %v1246_v28 }
 0x8b1   :  { %v1245_v29 = vpop.xlane.xlu1 %1244 }
 0x8b2   :  { %v1249_v20 = vmul.f32 0.03125, %v1245_v29 }
 0x8b4   :  { %v1251_v32 = vsub.f32 %v3584_v10, %v1249_v20 }
 0x8b5   :  { %v1248_v34 = vpop.xlane.xlu0 %1247 }
 0x8b6   :  { %v1250_v33 = vmul.f32 0.03125, %v1248_v34  ;;  %v1253_v35 = vmul.f32 %v1251_v32, %v1251_v32 }
 0x8b8   :  { %v1252_v36 = vsub.f32 %v3589_v22, %v1250_v33  ;;  %v1255_v11 = vsel %vm237_vm4, %v1253_v35, 0.0 }
 0x8b9   :  { %1256 = vadd.xlane.f32.xlu0 %v1255_v11 }
 0x8ba   :  { %v1254_v37 = vmul.f32 %v1252_v36, %v1252_v36 }
 0x8bc   :  { %v1258_v30 = vsel %vm241_vm5, %v1254_v37, 0.0 }
 0x8bd   :  { %1259 = vadd.xlane.f32.xlu0 %v1258_v30 }
 0x942   :  { %v1257_v39 = vpop.xlane.xlu0 %1256 }
 0x943   :  { %v1261_v40 = vmul.f32 0.03125, %v1257_v39 }
 0x945   :  { %v1263_v41 = vadd.f32 1e-05, %v1261_v40 }
 0x946   :  { %v1260_v42 = vpop.xlane.xlu0 %1259 }
 0x947   :  { %3131 = vrsqrt.f32 %v1263_v41  ;;  %v1262_v43 = vmul.f32 0.03125, %v1260_v42 }
 0x949   :  { %v1264_v19 = vadd.f32 1e-05, %v1262_v43 }
 0x94b   :  { %3133 = vrsqrt.f32 %v1264_v19 }
 0x954   :  { %v3132_v44 = vpop.eup %3131 }
 0x955   :  { %v1267_v46 = vmul.f32 %v3132_v44, %v1251_v32  ;;  %v2810_v32 = vld [vmem:[%s3929_s16] ss:$0 sm:$0xff] }
 0x957   :  { %v1275_v52 = vmul.f32 %v2804_v47, %v1267_v46 }
 0x958   :  { %v3134_v49 = vpop.eup %3133 }
 0x959   :  { %v1268_v51 = vmul.f32 %v3134_v49, %v1252_v36  ;;  %v1283_v55 = vadd.f32 %v2805_v53, %v1275_v52  ;;  %v3099_v49 = vld [vmem:[%s3920_s7 + $0x18] sm:$0xff]  }
 0x95b   :  { %v1276_v54 = vmul.f32 %v2804_v47, %v1268_v51  ;;  %v3100_v51 = vld [vmem:[%s3920_s7 + $0x10] sm:$0xff]  }
 0x95d   :  { %v1284_v56 = vadd.f32 %v2805_v53, %v1276_v54 }
 0x95f   :  { %v1285_v57 = vpack.c.bf16 %v1284_v56, %v1283_v55 }
 0x961   :  { %2974 = vmatmul.mubr.msk.bf16.vlgmr.msra.gmra.mxu0 %vm237_vm4, %v1285_v57 }
 0x962   :  { %2993 = vmatprep.mubr.msk.bf16.mxu0 %vm3191_vm6, %v3190_v48  ;;  %2990 = vmatpush3.bf16.msra.mxu0 %v3099_v49 }
 0x963   :  { %2991 = vmatprep.subr.bf16.mxu0 %v3190_v48 }
 0x966   :  { %2992 = vmatpush3.bf16.msra.mxu0 %v3100_v51 }
 0x967   :  { %2997 = vmatprep.subr.bf16.mxu0 %v3190_v48 }
 0xa21   :  { %v1346_v63 = vpop.f32.mrf.mxu0 }
 0xa22   :  { %v1347_v0 = vadd.f32 %v2806_v62, %v1346_v63 }
 0xa23   :  { %v2975_v1 = vpop.f32.mrf.mxu0 }
 0xa24   :  { %v1353_v2 = vmul.f32 %v1347_v0, %v1347_v0 }
 0xa25   :  { %v1349_v3 = vpop.f32.mrf.mxu0 }
 0xa26   :  { %v1355_v4 = vmul.f32 %v1353_v2, %v1347_v0  ;;  %v1350_v6 = vadd.f32 %v2806_v62, %v1349_v3 }
 0xa27   :  { %v2976_v7 = vpop.f32.mrf.mxu0 }
 0xa28   :  { %v1357_v9 = vmul.f32 0.044715, %v1355_v4  ;;  %v1354_v12 = vmul.f32 %v1350_v6, %v1350_v6 }
 0xa2a   :  { %v1359_v13 = vadd.f32 %v1357_v9, %v1347_v0  ;;  %v1356_v14 = vmul.f32 %v1354_v12, %v1350_v6 }
 0xa2c   :  { %v1361_v15 = vmul.f32 0.7978846, %v1359_v13  ;;  %v1358_v5 = vmul.f32 0.044715, %v1356_v14 }
 0xa2e   :  { %3135 = vtanh.f32 %v1361_v15  ;;  %v1360_v18 = vadd.f32 %v1358_v5, %v1350_v6 }
 0xa30   :  { %v1362_v21 = vmul.f32 0.7978846, %v1360_v18 }
 0xa32   :  { %3137 = vtanh.f32 %v1362_v21 }
 0xa3b   :  { %v3136_v23 = vpop.eup %3135 }
 0xa3c   :  { %v1365_v17 = vadd.f32 1.0, %v3136_v23 }
 0xa3e   :  { %v1367_v25 = vmul.f32 0.5, %v1365_v17 }
 0xa3f   :  { %v3138_v24 = vpop.eup %3137 }
 0xa40   :  { %v1366_v26 = vadd.f32 1.0, %v3138_v24  ;;  %v1369_v28 = vmul.f32 %v1367_v25, %v1347_v0  ;;  %v2819_v0 = vld [vmem:[%s3919_s6 + $0x1] ss:$0 sm:$0xff] }
 0xa42   :  { %v1368_v27 = vmul.f32 0.5, %v1366_v26 }
 0xa44   :  { %v1370_v29 = vmul.f32 %v1368_v27, %v1350_v6  ;;  %v2825_v6 = vld [vmem:[%s3921_s8 + $0x1] ss:$0 sm:$0xff] }
 0xa46   :  { %v1371_v20 = vpack.c.bf16 %v1370_v29, %v1369_v28 }
 0xa48   :  { %2986 = vmatmul.mubr.msk.bf16.vlgmr.msra.gmra.mxu1 %vm164_vm0, %v1371_v20 }
 0xa49   :  { %3005 = vmatprep.mubr.msk.bf16.mxu1 %vm3191_vm6, %v3190_v48 }
 0xb08   :  { %v1448_v34 = vpop.f32.mrf.mxu1 }
 0xb09   :  { %v1449_v33 = vadd.f32 %v2810_v32, %v1448_v34 }
 0xb0a   :  { %v2987_v35 = vpop.f32.mrf.mxu1 }
 0xb0b   :  { %v3640_v36 = vadd.f32 %v1449_v33, %v3584_v10 }
 0xb0c   :  { %v1451_v11 = vpop.f32.mrf.mxu1 }
 0xb0d   :  { %v1452_v37 = vadd.f32 %v2810_v32, %v1451_v11  ;;  %v1461_v30 = vsel %vm237_vm4, %v3640_v36, 0.0 }
 0xb0e   :  { %1462 = vadd.xlane.f32.xlu1 %v1461_v30  ;;  %v2988_v8 = vpop.f32.mrf.mxu1 }
 0xb0f   :  { %v3645_v38 = vadd.f32 %v1452_v37, %v3589_v22 }
 0xb11   :  { %v1464_v39 = vsel %vm241_vm5, %v3645_v38, 0.0 }
 0xb12   :  { %1465 = vadd.xlane.f32.xlu0 %v1464_v39 }
 0xb97   :  { %v1463_v40 = vpop.xlane.xlu1 %1462 }
 0xb98   :  { %v1467_v41 = vmul.f32 0.03125, %v1463_v40 }
 0xb9a   :  { %v1469_v42 = vsub.f32 %v3640_v36, %v1467_v41 }
 0xb9b   :  { %v1466_v10 = vpop.xlane.xlu0 %1465 }
 0xb9c   :  { %v1468_v43 = vmul.f32 0.03125, %v1466_v10  ;;  %v1471_v19 = vmul.f32 %v1469_v42, %v1469_v42 }
 0xb9e   :  { %v1470_v44 = vsub.f32 %v3645_v38, %v1468_v43  ;;  %v1473_v46 = vsel %vm237_vm4, %v1471_v19, 0.0 }
 0xb9f   :  { %1474 = vadd.xlane.f32.xlu1 %v1473_v46 }
 0xba0   :  { %v1472_v47 = vmul.f32 %v1470_v44, %v1470_v44 }
 0xba2   :  { %v1476_v22 = vsel %vm241_vm5, %v1472_v47, 0.0 }
 0xba3   :  { %1477 = vadd.xlane.f32.xlu0 %v1476_v22 }
 0xc28   :  { %v1475_v52 = vpop.xlane.xlu1 %1474 }
 0xc29   :  { %v1479_v53 = vmul.f32 0.03125, %v1475_v52 }
 0xc2b   :  { %v1481_v54 = vadd.f32 1e-05, %v1479_v53 }
 0xc2c   :  { %v1478_v55 = vpop.xlane.xlu0 %1477 }
 0xc2d   :  { %3139 = vrsqrt.f32 %v1481_v54  ;;  %v1480_v56 = vmul.f32 0.03125, %v1478_v55 }
 0xc2f   :  { %v1482_v57 = vadd.f32 1e-05, %v1480_v56 }
 0xc31   :  { %3141 = vrsqrt.f32 %v1482_v57 }
 0xc3a   :  { %v3140_v58 = vpop.eup %3139 }
 0xc3b   :  { %v1485_v59 = vmul.f32 %v3140_v58, %v1469_v42 }
 0xc3d   :  { %v1493_v63 = vmul.f32 %v2818_v60, %v1485_v59 }
 0xc3e   :  { %v3142_v61 = vpop.eup %3141 }
 0xc3f   :  { %v1486_v62 = vmul.f32 %v3142_v61, %v1470_v44  ;;  %v1501_v2 = vadd.f32 %v2819_v0, %v1493_v63 }
 0xc41   :  { %v1494_v1 = vmul.f32 %v2818_v60, %v1486_v62 }
 0xc43   :  { %v1502_v3 = vadd.f32 %v2819_v0, %v1494_v1 }
 0xc45   :  { %v1503_v4 = vpack.c.bf16 %v1502_v3, %v1501_v2 }
 0xc47   :  { %2994 = vmatmul.mubr.msk.bf16.vlgmr.msra.gmra.mxu0 %vm237_vm4, %v1503_v4 }
 0xc48   :  { %2999 = vmatprep.mubr.msk.bf16.mxu0 %vm3191_vm6, %v3190_v48 }
 0xd07   :  { %v1566_v7 = vpop.f32.mrf.mxu0 }
 0xd08   :  { %v3673_v9 = vadd.f32 %v2825_v6, %v1566_v7 }
 0xd09   :  { %v2995_v12 = vpop.f32.mrf.mxu0 }
 0xd0a   :  { %1575 = vrot.lane.b32.xlu1 %v3673_v9, %s3192_s30  ;;  %v1580_v23 = vcombine.high %v3673_v9, %v3190_v48  ;;  %v1587_v27 = vrot.slane %v3673_v9, %v3415_v16 }
 0xd0b   :  { %v1569_v13 = vpop.f32.mrf.mxu0 }
 0xd0c   :  { %v3677_v14 = vadd.f32 %v2825_v6, %v1569_v13  ;;  %v1594_v24 = vrot.slane %v1580_v23, %v3415_v16 }
 0xd0d   :  { %v2996_v15 = vpop.f32.mrf.mxu0 }
 0xd0e   :  { %1717 = vrot.lane.b32.xlu1 %v3673_v9, %s3193_s21  ;;  %1577 = vrot.lane.b32.xlu0 %v3677_v14, %s3192_s30 }
 0xd7c   :  { %v3683_v5 = vpop.permute.xlu1 %1575 }
 0xd7d   :  { %1721 = vrot.lane.b32.xlu1 %v3683_v5, %s3193_s21  ;;  %v1595_v21 = vcombine.high %v3683_v5, %v3190_v48  ;;  %v1602_v25 = vrot.slane %v3683_v5, %v3415_v16 }
 0xd7f   :  { %v1609_v17 = vrot.slane %v1595_v21, %v3415_v16  ;;  %v1610_v32 = vcombine.low %v1587_v27, %v1602_v25  ;;  %v1611_v34 = vcombine.high %v1587_v27, %v1602_v25 }
 0xd80   :  { %v3687_v18 = vpop.permute.xlu0 %1577  ;;  %v1718_v26 = vpop.permute.xlu1 %1717 }
 0xd81   :  { %1719 = vrot.lane.b32.xlu1 %v3677_v14, %s3193_s21  ;;  %1723 = vrot.lane.b32.xlu0 %v3687_v18, %s3193_s21  ;;  %v1626_v28 = vcombine.low %v1594_v24, %v1609_v17  ;;  %v1627_v29 = vcombine.high %v1594_v24, %v1609_v17  ;;  %v1727_v20 = vcombine.high %v1718_v26, %v3190_v48 }
 0xd82   :  { %v1734_v35 = vrot.slane %v1718_v26, %v3415_v16  ;;  %v1618_v10 = vrot.slane %v1610_v32, %v3427_v31  ;;  %v1625_v43 = vrot.slane %v1611_v34, %v3427_v31  ;;  %v1647_v19 = vcombine.low %v3677_v14, %v3687_v18 }
 0xd83   :  { %v1634_v30 = vrot.slane %v1626_v28, %v3427_v31  ;;  %v1641_v8 = vrot.slane %v1627_v29, %v3427_v31  ;;  %v1741_v39 = vrot.slane %v1727_v20, %v3415_v16 }
 0xd84   :  { %v1655_v59 = vcombine.low %v1618_v10, %v1625_v43  ;;  %v2829_v60 = vcombine.high %v1618_v10, %v1625_v43  ;;  %v1654_v61 = vrot.slane %v1647_v19, %v3427_v31 }
 0xd85   :  { %v1671_v52 = vcombine.low %v1634_v30, %v1641_v8  ;;  %v2830_v53 = vcombine.high %v1634_v30, %v1641_v8 }
 0xd86   :  { %v1662_v15 = vrot.slane %v1655_v59, %v3415_v16  ;;  %v1670_v21 = vrot.slane %v2829_v60, %v3415_v16  ;;  %v1705_v17 = vcombine.high %v1654_v61, %v3190_v48 }
 0xd87   :  { %v1678_v3 = vrot.slane %v1671_v52, %v3415_v16  ;;  %v1686_v6 = vrot.slane %v2830_v53, %v3415_v16 }
 0xd88   :  { %v1687_v29 = vcombine.low %v1662_v15, %v1670_v21  ;;  %v1706_v20 = vcombine.low %v1654_v61, %v1705_v17 }
 0xd89   :  { %v1695_v26 = vcombine.low %v1678_v3, %v1686_v6 }
 0xd8a   :  { %v1694_v30 = vrot.slane %v1687_v29, %v3427_v31  ;;  %v1713_v8 = vrot.slane %v1706_v20, %v3427_v31 }
 0xd8c   :  { %v1714_v10 = vcombine.high %v1713_v8, %v3190_v48 }
 0xdef   :  { %v1722_v33 = vpop.permute.xlu1 %1721 }
 0xdf0   :  { %v1742_v11 = vcombine.high %v1722_v33, %v3190_v48  ;;  %v1749_v37 = vrot.slane %v1722_v33, %v3415_v16 }
 0xdf2   :  { %v1756_v40 = vrot.slane %v1742_v11, %v3415_v16  ;;  %v1757_v41 = vcombine.low %v1734_v35, %v1749_v37  ;;  %v1758_v42 = vcombine.high %v1734_v35, %v1749_v37  ;;  %v1702_v35 = vrot.slane %v1695_v26, %v3427_v31 }
 0xdf3   :  { %v1720_v44 = vpop.permute.xlu1 %1719  ;;  %v1724_v51 = vpop.permute.xlu0 %1723 }
 0xdf4   :  { %v1765_v46 = vrot.slane %v1757_v41, %v3427_v31  ;;  %v1772_v47 = vrot.slane %v1758_v42, %v3427_v31  ;;  %v1773_v22 = vcombine.low %v1741_v39, %v1756_v40  ;;  %v1774_v49 = vcombine.high %v1741_v39, %v1756_v40 }
 0xdf5   :  { %v1795_v54 = vcombine.low %v1720_v44, %v1724_v51  ;;  %v1703_v41 = vcombine.low %v1694_v30, %v1702_v35  ;;  %v1704_v42 = vcombine.high %v1694_v30, %v1702_v35 }
 0xdf6   :  { %v1781_v55 = vrot.slane %v1773_v22, %v3427_v31  ;;  %v1788_v56 = vrot.slane %v1774_v49, %v3427_v31  ;;  %v1803_v57 = vcombine.low %v1765_v46, %v1772_v47  ;;  %v2831_v58 = vcombine.high %v1765_v46, %v1772_v47 }
 0xdf7   :  { %v1802_v62 = vrot.slane %v1795_v54, %v3427_v31  ;;  %v1715_v43 = vpack.c.bf16 %v1713_v8, %v1703_v41  ;;  %v1716_v19 = vpack.c.bf16 %v1714_v10, %v1704_v42 }
 0xdf8   :  { %v1810_v63 = vrot.slane %v1803_v57, %v3415_v16  ;;  %v1818_v0 = vrot.slane %v2831_v58, %v3415_v16  ;;  %v1819_v1 = vcombine.low %v1781_v55, %v1788_v56  ;;  %v2832_v2 = vcombine.high %v1781_v55, %v1788_v56 }
 0xdf9   :  { %v1853_v4 = vcombine.high %v1802_v62, %v3190_v48 }
 0xdfa   :  { %v1826_v7 = vrot.slane %v1819_v1, %v3415_v16  ;;  %v1834_v12 = vrot.slane %v2832_v2, %v3415_v16  ;;  %v1835_v13 = vcombine.low %v1810_v63, %v1818_v0 }
 0xdfb   :  { %v1854_v23 = vcombine.low %v1802_v62, %v1853_v4 }
 0xdfc   :  { %v1843_v24 = vcombine.low %v1826_v7, %v1834_v12  ;;  %v1842_v27 = vrot.slane %v1835_v13, %v3427_v31 }
 0xdfd   :  { %v1861_v25 = vrot.slane %v1854_v23, %v3427_v31 }
 0xdfe   :  { %v1850_v28 = vrot.slane %v1843_v24, %v3427_v31 }
 0xdff   :  { %v1862_v33 = vcombine.high %v1861_v25, %v3190_v48 }
 0xe00   :  { %v1851_v32 = vcombine.low %v1842_v27, %v1850_v28  ;;  %v1852_v34 = vcombine.high %v1842_v27, %v1850_v28 }
 0xe02   :  { %v1863_v11 = vpack.c.bf16 %v1861_v25, %v1851_v32  ;;  %v1864_v37 = vpack.c.bf16 %v1862_v33, %v1852_v34 }
 0xe04   :  { %v2017_v39 = vsel %vm790_vm7, %v1863_v11, 0  ;;  %v2064_v40 = vsel %vm790_vm7, %v1864_v37, 0 }
 0xe05   :  { %2998 = vmatpush3.bf16.xpose.msra.mxu0 %v2017_v39  ;;  %3004 = vmatpush3.bf16.xpose.msra.mxu1 %v2064_v40 }
 0xe06   :  { %3009 = vmatprep.subr.bf16.mxu0 %v3190_v48  ;;  %3015 = vmatprep.subr.bf16.mxu1 %v3190_v48 }
 0xe0c   :  { %3000 = vmatmul.mubr.msk.bf16.vlgmr.msra.gmra.mxu0 %vm790_vm7, %v1715_v43  ;;  %3006 = vmatmul.mubr.msk.bf16.vlgmr.msra.gmra.mxu1 %vm790_vm7, %v1716_v19 }
 0xe0d   :  { %3011 = vmatprep.mubr.msk.bf16.mxu0 %vm3191_vm6, %v3190_v48  ;;  %3017 = vmatprep.mubr.msk.bf16.mxu1 %vm3191_vm6, %v3190_v48 }
 0xecc   :  { %v2053_v44 = vpop.f32.mrf.mxu0  ;;  %v2100_v46 = vpop.f32.mrf.mxu1 }
 0xecd   :  { %v2054_v47 = vadd.f32 %v2053_v44, %v3477_v45  ;;  %v2101_v22 = vadd.f32 %v2100_v46, %v3477_v45 }
 0xece   :  { %v3001_v49 = vpop.f32.mrf.mxu0  ;;  %v3007_v51 = vpop.f32.mrf.mxu1 }
 0xecf   :  { %v2113_v52 = vsel %vm885_vm8, %v2101_v22, -inf  ;;  %v2107_v53 = vsel %vm885_vm8, %v2054_v47, -inf }
 0xed0   :  { %2114 = vmax.xlane.f32.xlu0 %v2113_v52  ;;  %v2103_v54 = vpop.f32.mrf.mxu1  ;;  %2108 = vmax.xlane.f32.xlu1 %v2107_v53  ;;  %v2056_v55 = vpop.f32.mrf.mxu0 }
 0xed1   :  { %v2057_v56 = vadd.f32 %v2056_v55, %v3483_v50  ;;  %v2104_v59 = vadd.f32 %v2103_v54, %v3483_v50 }
 0xed2   :  { %v3002_v57 = vpop.f32.mrf.mxu0  ;;  %v3008_v58 = vpop.f32.mrf.mxu1 }
 0xed3   :  { %v2110_v60 = vsel %vm889_vm9, %v2057_v56, -inf  ;;  %v2116_v45 = vsel %vm889_vm9, %v2104_v59, -inf }
 0xed4   :  { %2111 = vmax.xlane.f32.xlu0 %v2110_v60 }
 0xed8   :  { %2117 = vmax.xlane.f32.xlu0 %v2116_v45 }
 0xee1   :  { %1865 = vrot.lane.b32.xlu1 %v3673_v9, %s3196_s28 }
 0xf59   :  { %v2115_v61 = vpop.xlane.xlu0 %2114  ;;  %v2109_v62 = vpop.xlane.xlu1 %2108 }
 0xf5a   :  { %v2121_v63 = vsub.f32 %v2101_v22, %v2115_v61  ;;  %v2119_v0 = vsub.f32 %v2054_v47, %v2109_v62 }
 0xf5c   :  { %v2123_v1 = vmul.f32 1.442695, %v2119_v0  ;;  %v2127_v2 = vmul.f32 1.442695, %v2121_v63 }
 0xf5d   :  { %v2112_v3 = vpop.xlane.xlu0 %2111  ;;  %v1866_v26 = vpop.permute.xlu1 %1865 }
 0xf5e   :  { %v2120_v4 = vsub.f32 %v2057_v56, %v2112_v3  ;;  %3143 = vpow2.f32 %v2123_v1  ;;  %v1875_v34 = vcombine.high %v1866_v26, %v3190_v48  ;;  %v1882_v35 = vrot.slane %v1866_v26, %v3415_v16 }
 0xf5f   :  { %3145 = vpow2.f32 %v2127_v2 }
 0xf60   :  { %v2125_v6 = vmul.f32 1.442695, %v2120_v4  ;;  %v1889_v37 = vrot.slane %v1875_v34, %v3415_v16 }
 0xf61   :  { %v2118_v50 = vpop.xlane.xlu0 %2117 }
 0xf62   :  { %3147 = vpow2.f32 %v2125_v6  ;;  %v2122_v7 = vsub.f32 %v2104_v59, %v2118_v50 }
 0xf64   :  { %v2129_v12 = vmul.f32 1.442695, %v2122_v7 }
 0xf66   :  { %3149 = vpow2.f32 %v2129_v12 }
 0xf6b   :  { %v3759_v13 = vpop.eup %3143 }
 0xf6c   :  { %v2131_v9 = vsel %vm885_vm8, %v3759_v13, 0.0  ;;  %v3763_v15 = vpop.eup %3145 }
 0xf6d   :  { %2132 = vadd.xlane.f32.xlu1 %v2131_v9  ;;  %v2137_v17 = vsel %vm885_vm8, %v3763_v15, 0.0 }
 0xf6f   :  { %v3765_v21 = vpop.eup %3147 }
 0xf70   :  { %v2134_v23 = vsel %vm889_vm9, %v3765_v21, 0.0 }
 0xf71   :  { %2135 = vadd.xlane.f32.xlu0 %v2134_v23  ;;  %2138 = vadd.xlane.f32.xlu1 %v2137_v17 }
 0xf73   :  { %v3150_v24 = vpop.eup %3149 }
 0xf74   :  { %v2140_v25 = vsel %vm889_vm9, %v3150_v24, 0.0 }
 0xf75   :  { %2141 = vadd.xlane.f32.xlu0 %v2140_v25 }
 0xf82   :  { %1867 = vrot.lane.b32.xlu1 %v3677_v14, %s3196_s28 }
 0xf86   :  { %1871 = vrot.lane.b32.xlu1 %v3687_v18, %s3196_s28 }
 0xf8b   :  { %1869 = vrot.lane.b32.xlu0 %v3683_v5, %s3196_s28 }
 0xff6   :  { %v2133_v27 = vpop.xlane.xlu1 %2132 }
 0xff7   :  { %3151 = vrcp.f32 %v2133_v27 }
 0xffa   :  { %v2136_v28 = vpop.xlane.xlu0 %2135  ;;  %v2139_v29 = vpop.xlane.xlu1 %2138 }
 0xffb   :  { %3153 = vrcp.f32 %v2136_v28 }
 0xffe   :  { %v2142_v20 = vpop.xlane.xlu0 %2141  ;;  %v1868_v32 = vpop.permute.xlu1 %1867 }
 0xfff   :  { %3155 = vrcp.f32 %v2142_v20 }
0x1000   :  { %3157 = vrcp.f32 %v2139_v29 }
0x1002   :  { %v1870_v33 = vpop.permute.xlu0 %1869  ;;  %v1872_v11 = vpop.permute.xlu1 %1871 }
0x1003   :  { %v1890_v14 = vcombine.high %v1870_v33, %v3190_v48  ;;  %v1897_v18 = vrot.slane %v1870_v33, %v3415_v16  ;;  %v1943_v5 = vcombine.low %v1868_v32, %v1872_v11 }
0x1004   :  { %v3152_v60 = vpop.eup %3151 }
0x1005   :  { %v1904_v30 = vrot.slane %v1890_v14, %v3415_v16  ;;  %v1905_v8 = vcombine.low %v1882_v35, %v1897_v18  ;;  %v1906_v39 = vcombine.high %v1882_v35, %v1897_v18  ;;  %v1950_v40 = vrot.slane %v1943_v5, %v3427_v31 }
0x1006   :  { %v2147_v23 = vmul.f32 %v3152_v60, %v3759_v13  ;;  %v3101_v13 = vld [vmem:[%s3922_s9 + $0x18] sm:$0xff]  }
0x1007   :  { %v1913_v41 = vrot.slane %v1905_v8, %v3427_v31  ;;  %v1920_v42 = vrot.slane %v1906_v39, %v3427_v31  ;;  %v1921_v10 = vcombine.low %v1889_v37, %v1904_v30  ;;  %v1922_v43 = vcombine.high %v1889_v37, %v1904_v30 }
0x1008   :  { %v2001_v19 = vcombine.high %v1950_v40, %v3190_v48  ;;  %v3154_v45 = vpop.eup %3153 }
0x1009   :  { %v1929_v44 = vrot.slane %v1921_v10, %v3427_v31  ;;  %v1936_v46 = vrot.slane %v1922_v43, %v3427_v31  ;;  %v1951_v47 = vcombine.low %v1913_v41, %v1920_v42  ;;  %v2833_v22 = vcombine.high %v1913_v41, %v1920_v42 }
0x100a   :  { %v2002_v49 = vcombine.low %v1950_v40, %v2001_v19  ;;  %v2148_v50 = vmul.f32 %v3154_v45, %v3765_v21 }
0x100b   :  { %v1958_v51 = vrot.slane %v1951_v47, %v3415_v16  ;;  %v1966_v52 = vrot.slane %v2833_v22, %v3415_v16  ;;  %v1967_v53 = vcombine.low %v1929_v44, %v1936_v46  ;;  %v2834_v54 = vcombine.high %v1929_v44, %v1936_v46 }
0x100c   :  { %v2009_v58 = vrot.slane %v2002_v49, %v3427_v31  ;;  %v3156_v63 = vpop.eup %3155  ;;  %v2151_v25 = vpack.c.bf16 %v2148_v50, %v2147_v23 }
0x100d   :  { %v1974_v55 = vrot.slane %v1967_v53, %v3415_v16  ;;  %v1982_v56 = vrot.slane %v2834_v54, %v3415_v16  ;;  %v1983_v57 = vcombine.low %v1958_v51, %v1966_v52  ;;  %v3158_v0 = vpop.eup %3157  ;;  %v2150_v7 = vmul.f32 %v3156_v63, %v3150_v24  ;;  %v3102_v51 = vld [vmem:[%s3922_s9 + $0x10] sm:$0xff]   ;;  %s3198_s9 = smov [#allocation2]  }
0x100e   :  { %v2010_v3 = vcombine.high %v2009_v58, %v3190_v48  ;;  %v2149_v17 = vmul.f32 %v3158_v0, %v3763_v15  ;;  %s2761_s21 = sshll.u32 %s3198_s9, 4  ;;  %s2762_s21 = int_to_ptr.vmem [resolvable:$true] %s2761_s21 }
0x100f   :  { %v1991_v59 = vcombine.low %v1974_v55, %v1982_v56  ;;  %v1990_v61 = vrot.slane %v1983_v57, %v3427_v31  ;;  %p3172_p1 = scmp.lt.s32.totalorder %s2762_s21, %s2762_s21 }
0x1010   :  { %v2152_v26 = vpack.c.bf16 %v2150_v7, %v2149_v17 }
0x1011   :  { %v1998_v62 = vrot.slane %v1991_v59, %v3427_v31 }
0x1013   :  { %v1999_v1 = vcombine.low %v1990_v61, %v1998_v62  ;;  %v2000_v2 = vcombine.high %v1990_v61, %v1998_v62 }
0x1015   :  { %v2011_v4 = vpack.c.bf16 %v2009_v58, %v1999_v1  ;;  %v2012_v6 = vpack.c.bf16 %v2010_v3, %v2000_v2 }
0x1017   :  { %v2157_v12 = vsel %vm229_vm2, %v2011_v4, 0  ;;  %v2204_v9 = vsel %vm229_vm2, %v2012_v6, 0 }
0x1018   :  { %3010 = vmatpush3.bf16.msra.mxu0 %v2157_v12  ;;  %3016 = vmatpush3.bf16.msra.mxu1 %v2204_v9 }
0x1019   :  { %3021 = vmatprep.subr.bf16.mxu0 %v3190_v48  ;;  %3029 = vmatprep.subr.bf16.mxu1 %v3190_v48 }
0x101b   :  { %3012 = vmatmul.mubr.msk.bf16.vlgmr.msra.gmra.mxu0 %vm885_vm8, %v2151_v25  ;;  %3018 = vmatmul.mubr.msk.bf16.vlgmr.msra.gmra.mxu1 %vm885_vm8, %v2152_v26 }
0x101c   :  { %3025 = vmatprep.mubr.msk.bf16.mxu0 %vm3191_vm6, %v3190_v48  ;;  %3033 = vmatprep.mubr.msk.bf16.mxu1 %vm3191_vm6, %v3190_v48 }
0x101d   :  { %3022 = vmatpush3.bf16.msra.mxu0 %v3101_v13 }
0x101e   :  { %3023 = vmatprep.subr.bf16.mxu0 %v3190_v48 }
0x1021   :  { %3024 = vmatpush3.bf16.msra.mxu0 %v3102_v51  ;;  %v3108_v51 = vld [vmem:[%s3928_s15 + $0x20] sm:$0xff]  }
0x1022   :  { %3037 = vmatprep.subr.bf16.mxu0 %v3190_v48 }
0x10db   :  { %v2193_v15 = vpop.f32.mrf.mxu0  ;;  %v2240_v21 = vpop.f32.mrf.mxu1 }
0x10dc   :  { %v2247_v24 = vcombine.high %v2193_v15, %v3190_v48  ;;  %v2254_v27 = vrot.slane %v2193_v15, %v3415_v16  ;;  %v2262_v28 = vcombine.high %v2240_v21, %v3190_v48  ;;  %v2269_v29 = vrot.slane %v2240_v21, %v3415_v16 }
0x10dd   :  { %v3013_v20 = vpop.f32.mrf.mxu0  ;;  %v3019_v32 = vpop.f32.mrf.mxu1 }
0x10de   :  { %v2261_v34 = vrot.slane %v2247_v24, %v3415_v16  ;;  %v2276_v33 = vrot.slane %v2262_v28, %v3415_v16  ;;  %v2277_v35 = vcombine.low %v2254_v27, %v2269_v29  ;;  %v2278_v11 = vcombine.high %v2254_v27, %v2269_v29 }
0x10df   :  { %v2196_v14 = vpop.f32.mrf.mxu0  ;;  %v2243_v18 = vpop.f32.mrf.mxu1 }
0x10e0   :  { %v2285_v37 = vrot.slane %v2277_v35, %v3427_v31  ;;  %v2292_v5 = vrot.slane %v2278_v11, %v3427_v31  ;;  %v2293_v30 = vcombine.low %v2261_v34, %v2276_v33  ;;  %v2294_v8 = vcombine.high %v2261_v34, %v2276_v33  ;;  %v3104_v33 = vld [vmem:[%s3926_s13 + $0x10] sm:$0xff]  }
0x10e1   :  { %v2313_v39 = vcombine.low %v2196_v14, %v2243_v18  ;;  %v3014_v40 = vpop.f32.mrf.mxu0  ;;  %v3020_v41 = vpop.f32.mrf.mxu1 }
0x10e2   :  { %v2301_v42 = vrot.slane %v2293_v30, %v3427_v31  ;;  %v2308_v10 = vrot.slane %v2294_v8, %v3427_v31  ;;  %v2321_v43 = vcombine.low %v2285_v37, %v2292_v5  ;;  %v2839_v19 = vcombine.high %v2285_v37, %v2292_v5 }
0x10e3   :  { %v2320_v44 = vrot.slane %v2313_v39, %v3427_v31  ;;  %v2852_v39 = vld [vmem:[%s3924_s11 + $0x1] ss:$0 sm:$0xff] }
0x10e4   :  { %v2328_v46 = vrot.slane %v2321_v43, %v3415_v16  ;;  %v2336_v47 = vrot.slane %v2839_v19, %v3415_v16  ;;  %v2337_v22 = vcombine.low %v2301_v42, %v2308_v10  ;;  %v2840_v49 = vcombine.high %v2301_v42, %v2308_v10  ;;  %v2853_v10 = vld [vmem:[%s3925_s12 + $0x1] ss:$0 sm:$0xff] }
0x10e5   :  { %v2371_v52 = vcombine.high %v2320_v44, %v3190_v48 }
0x10e6   :  { %v2344_v53 = vrot.slane %v2337_v22, %v3415_v16  ;;  %v2352_v54 = vrot.slane %v2840_v49, %v3415_v16  ;;  %v2353_v55 = vcombine.low %v2328_v46, %v2336_v47  ;;  %v3105_v47 = vld [vmem:[%s3928_s15 + $0x38] sm:$0xff]   ;;  %v3106_v22 = vld [vmem:[%s3928_s15 + $0x30] sm:$0xff]   ;;  %v3107_v49 = vld [vmem:[%s3928_s15 + $0x28] sm:$0xff]  }
0x10e7   :  { %v2372_v56 = vcombine.low %v2320_v44, %v2371_v52  ;;  %v2859_v52 = vld [vmem:[%s3927_s14 + $0x1] ss:$0 sm:$0xff] }
0x10e8   :  { %v2361_v57 = vcombine.low %v2344_v53, %v2352_v54  ;;  %v2360_v59 = vrot.slane %v2353_v55, %v3427_v31 }
0x10e9   :  { %v2379_v58 = vrot.slane %v2372_v56, %v3427_v31 }
0x10ea   :  { %v2368_v60 = vrot.slane %v2361_v57, %v3427_v31  ;;  %v2846_v31 = vld [vmem:[%s3923_s10 + $0x1] ss:$0 sm:$0xff] }
0x10eb   :  { %v2380_v62 = vcombine.high %v2379_v58, %v3190_v48 }
0x10ec   :  { %v2369_v45 = vcombine.low %v2360_v59, %v2368_v60  ;;  %v2370_v61 = vcombine.high %v2360_v59, %v2368_v60 }
0x10ee   :  { %v3072_v63 = vpack.i.bf16 %v2380_v62, %v2370_v61 }
0x10f0   :  { %3073 = vrot.lane.b32.xlu1 %v3072_v63, %s3197_s26 }
0x1162   :  { %v3074_v16 = vpop.permute.xlu1 %3073 }
0x1163   :  { %v3076_v0 = vunpack.i.h.bf16 %v3074_v16  ;;  %v3075_v1 = vunpack.i.l.bf16 %v3074_v16 }
0x1165   :  { %v2390_v2 = vsel %vm790_vm7, %v2379_v58, %v3076_v0  ;;  %v2389_v3 = vsel %vm790_vm7, %v2369_v45, %v3075_v1 }
0x1166   :  { %v2391_v4 = vpack.c.bf16 %v2390_v2, %v2389_v3 }
0x1168   :  { %3026 = vmatmul.mubr.msk.bf16.vlgmr.msra.gmra.mxu0 %vm237_vm4, %v2391_v4 }
0x1169   :  { %3045 = vmatprep.mubr.msk.bf16.mxu0 %vm3191_vm6, %v3190_v48  ;;  %3038 = vmatpush3.bf16.msra.mxu0 %v3105_v47 }
0x116a   :  { %3039 = vmatprep.subr.bf16.mxu0 %v3190_v48 }
0x116d   :  { %3040 = vmatpush3.bf16.msra.mxu0 %v3106_v22 }
0x116e   :  { %3041 = vmatprep.subr.bf16.mxu0 %v3190_v48 }
0x1171   :  { %3042 = vmatpush3.bf16.msra.mxu0 %v3107_v49 }
0x1172   :  { %3043 = vmatprep.subr.bf16.mxu0 %v3190_v48 }
0x1175   :  { %3044 = vmatpush3.bf16.msra.mxu0 %v3108_v51 }
0x1228   :  { %v2454_v6 = vpop.f32.mrf.mxu0 }
0x1229   :  { %v2455_v50 = vadd.f32 %v2846_v31, %v2454_v6 }
0x122a   :  { %v3027_v7 = vpop.f32.mrf.mxu0 }
0x122b   :  { %v3849_v12 = vadd.f32 %v2455_v50, %v3640_v36 }
0x122c   :  { %v2457_v9 = vpop.f32.mrf.mxu0 }
0x122d   :  { %v2458_v23 = vadd.f32 %v2846_v31, %v2457_v9  ;;  %v2467_v17 = vsel %vm237_vm4, %v3849_v12, 0.0 }
0x122e   :  { %2468 = vadd.xlane.f32.xlu0 %v2467_v17  ;;  %v3028_v25 = vpop.f32.mrf.mxu0 }
0x122f   :  { %v2462_v26 = vadd.f32 %v2458_v23, %v3645_v38  ;;  %v3103_v38 = vld [vmem:[%s3926_s13 + $0x18] sm:$0xff]   ;;  %v3109_v25 = vld [vmem:[%s3930_s17 + $0x8] sm:$0xff]  }
0x1230   :  { %3030 = vmatpush3.bf16.msra.mxu1 %v3103_v38 }
0x1231   :  { %v2470_v13 = vsel %vm241_vm5, %v2462_v26, 0.0  ;;  %3031 = vmatprep.subr.bf16.mxu1 %v3190_v48 }
0x1232   :  { %2471 = vadd.xlane.f32.xlu1 %v2470_v13  ;;  %v2872_v13 = vld [vmem:[%s3929_s16 + $0x1] ss:$0 sm:$0xff]  ;;  %s3167_s16 = scalar_lea.vmem %s2762_s21, 32 }
0x1233   :  { %p3168_p0 = scmp.ne.s32.totalorder %s2762_s21, %s3167_s16  ;;  %p3173_p2 = scmp.lt.s32.totalorder %s3167_s16, %s3167_s16 }
0x1234   :  { %3032 = vmatpush3.bf16.msra.mxu1 %v3104_v33 }
0x1235   :  { %3049 = vmatprep.subr.bf16.mxu1 %v3190_v48  ;;  %p3174_p3 = por %p3173_p2, %p3172_p1 }
0x1237   :  { %p3175_p4 = pnand %p3174_p3, %p3168_p0 }
0x12b7   :  { %v2469_v15 = vpop.xlane.xlu0 %2468 }
0x12b8   :  { %v2473_v21 = vmul.f32 0.03125, %v2469_v15 }
0x12ba   :  { %v2475_v24 = vsub.f32 %v3849_v12, %v2473_v21 }
0x12bb   :  { %v2472_v27 = vpop.xlane.xlu1 %2471 }
0x12bc   :  { %v2474_v28 = vmul.f32 0.03125, %v2472_v27  ;;  %v2477_v36 = vmul.f32 %v2475_v24, %v2475_v24 }
0x12be   :  { %v2476_v29 = vsub.f32 %v2462_v26, %v2474_v28  ;;  %v2479_v20 = vsel %vm237_vm4, %v2477_v36, 0.0  ;;  %v3110_v26 = vld [vmem:[%s3930_s17] sm:$0xff]  }
0x12bf   :  { %2480 = vadd.xlane.f32.xlu0 %v2479_v20 }
0x12c0   :  { %v2478_v32 = vmul.f32 %v2476_v29, %v2476_v29 }
0x12c2   :  { %v2482_v34 = vsel %vm241_vm5, %v2478_v32, 0.0  ;;  %v2878_v32 = vld [vmem:[%s3931_s18] ss:$0 sm:$0xff] }
0x12c3   :  { %2483 = vadd.xlane.f32.xlu0 %v2482_v34 }
0x1348   :  { %v2481_v35 = vpop.xlane.xlu0 %2480 }
0x1349   :  { %v2485_v11 = vmul.f32 0.03125, %v2481_v35 }
0x134b   :  { %v2487_v14 = vadd.f32 1e-05, %v2485_v11 }
0x134c   :  { %v2484_v18 = vpop.xlane.xlu0 %2483 }
0x134d   :  { %3159 = vrsqrt.f32 %v2487_v14  ;;  %v2486_v37 = vmul.f32 0.03125, %v2484_v18 }
0x134f   :  { %v2488_v5 = vadd.f32 1e-05, %v2486_v37 }
0x1351   :  { %3161 = vrsqrt.f32 %v2488_v5 }
0x135a   :  { %v3160_v30 = vpop.eup %3159 }
0x135b   :  { %v2491_v8 = vmul.f32 %v3160_v30, %v2475_v24 }
0x135d   :  { %v2499_v42 = vmul.f32 %v2852_v39, %v2491_v8 }
0x135e   :  { %v3162_v40 = vpop.eup %3161 }
0x135f   :  { %v2492_v41 = vmul.f32 %v3162_v40, %v2476_v29  ;;  %v2507_v19 = vadd.f32 %v2853_v10, %v2499_v42 }
0x1361   :  { %v2500_v43 = vmul.f32 %v2852_v39, %v2492_v41 }
0x1363   :  { %v2508_v44 = vadd.f32 %v2853_v10, %v2500_v43 }
0x1365   :  { %v2509_v46 = vpack.c.bf16 %v2508_v44, %v2507_v19 }
0x1367   :  { %3034 = vmatmul.mubr.msk.bf16.vlgmr.msra.gmra.mxu1 %vm237_vm4, %v2509_v46 }
0x1368   :  { %3053 = vmatprep.mubr.msk.bf16.mxu1 %vm3191_vm6, %v3190_v48  ;;  %3050 = vmatpush3.bf16.msra.mxu1 %v3109_v25 }
0x1369   :  { %3051 = vmatprep.subr.bf16.mxu1 %v3190_v48 }
0x136c   :  { %3052 = vmatpush3.bf16.msra.mxu1 %v3110_v26 }
0x1427   :  { %v2572_v53 = vpop.f32.mrf.mxu1 }
0x1428   :  { %v2573_v54 = vadd.f32 %v2859_v52, %v2572_v53 }
0x1429   :  { %v3035_v55 = vpop.f32.mrf.mxu1 }
0x142a   :  { %v2579_v56 = vmul.f32 %v2573_v54, %v2573_v54 }
0x142b   :  { %v2575_v57 = vpop.f32.mrf.mxu1 }
0x142c   :  { %v2581_v58 = vmul.f32 %v2579_v56, %v2573_v54  ;;  %v2576_v59 = vadd.f32 %v2859_v52, %v2575_v57 }
0x142d   :  { %v3036_v60 = vpop.f32.mrf.mxu1 }
0x142e   :  { %v2583_v45 = vmul.f32 0.044715, %v2581_v58  ;;  %v2580_v61 = vmul.f32 %v2576_v59, %v2576_v59 }
0x1430   :  { %v2585_v62 = vadd.f32 %v2583_v45, %v2573_v54  ;;  %v2582_v63 = vmul.f32 %v2580_v61, %v2576_v59 }
0x1432   :  { %v2587_v16 = vmul.f32 0.7978846, %v2585_v62  ;;  %v2584_v0 = vmul.f32 0.044715, %v2582_v63 }
0x1434   :  { %3163 = vtanh.f32 %v2587_v16  ;;  %v2586_v1 = vadd.f32 %v2584_v0, %v2576_v59 }
0x1436   :  { %v2588_v2 = vmul.f32 0.7978846, %v2586_v1 }
0x1438   :  { %3165 = vtanh.f32 %v2588_v2 }
0x1441   :  { %v3164_v3 = vpop.eup %3163 }
0x1442   :  { %v2591_v4 = vadd.f32 1.0, %v3164_v3 }
0x1444   :  { %v2593_v6 = vmul.f32 0.5, %v2591_v4 }
0x1445   :  { %v3166_v31 = vpop.eup %3165 }
0x1446   :  { %v2592_v50 = vadd.f32 1.0, %v3166_v31  ;;  %v2595_v9 = vmul.f32 %v2593_v6, %v2573_v54 }
0x1448   :  { %v2594_v7 = vmul.f32 0.5, %v2592_v50 }
0x144a   :  { %v2596_v23 = vmul.f32 %v2594_v7, %v2576_v59 }
0x144c   :  { %v2597_v17 = vpack.c.bf16 %v2596_v23, %v2595_v9 }
0x144e   :  { %3046 = vmatmul.mubr.msk.bf16.vlgmr.msra.gmra.mxu0 %vm164_vm0, %v2597_v17 }
0x150e   :  { %v2676_v15 = vpop.f32.mrf.mxu0 }
0x150f   :  { %v2677_v21 = vadd.f32 %v2872_v13, %v2676_v15 }
0x1510   :  { %v3047_v24 = vpop.f32.mrf.mxu0 }
0x1511   :  { %v2682_v27 = vadd.f32 %v2677_v21, %v3849_v12 }
0x1512   :  { %v2679_v28 = vpop.f32.mrf.mxu0 }
0x1513   :  { %v2684_v36 = vrot.slane %v2682_v27, 4 }
0x1514   :  { %v3048_v29 = vpop.f32.mrf.mxu0 }
0x1515   :  { %v2686_v20 = vsel %vm227_vm1, %v2682_v27, %v2684_v36 }
0x1516   :  { %v2687_v48 = vpack.c.bf16 %v2686_v20, %v2686_v20 }
0x1518   :  { %3054 = vmatmul.mubr.msk.bf16.vlgmr.msra.gmra.mxu1 %vm237_vm4, %v2687_v48 }
0x15d8   :  { %v2748_v34 = vpop.f32.mrf.mxu1 }
0x15d9   :  { %v2749_v38 = vadd.f32 %v2878_v32, %v2748_v34 }
0x15da   :  { %v3055_v33 = vpop.f32.mrf.mxu1 }
0x15db   :  { %2754 = vst [vmem:[#allocation2] sm:$0x3] %v2749_v38 }
0x15dc   :  { %v2751_v12 = vpop.f32.mrf.mxu1 }
0x15dd   :  { %3178 = shalt.err (!%p3175_p4)
}
0x15de   :  { %2764 = dma.vmem_to_hbm [thread:$0]  %s2762_s21, 32, %s3932_s19, [#allocation3]   ;;  %v3056_v35 = vpop.f32.mrf.mxu1 }
0x15df   :  { %3187 = dma.done.wait [#allocation3], 32  }
0x15e0   :  { %3188 = vsyncadd [#allocation3], 4294967264 }
0x15e1   :  { %2768 = vsyncpa [#allocation3], 1 }

</bundles_post_ra>
